<compile_context>
chip_gen: v6e
topology: v6e:2x2x1
jax: 0.10.0
libtpu: 0.0.40
codegen_flags: <defaults>
</compile_context>

<pallas_src>
import jax
import jax.numpy as jnp
from jax.experimental import pallas as pl
from jax.experimental.pallas import tpu as pltpu


def _round_up(x, m):
    return ((x + m - 1) // m) * m


def _vmem_cap_bytes():
    # v5e/v6e: 128 MiB physical VMEM -> cap ~96 MiB; v7x: 64 MiB -> cap ~48 MiB.
    try:
        cap = int(pltpu.get_tpu_info().vmem_capacity_bytes) * 3 // 4
        return int(min(max(cap, 16 << 20), 96 << 20))
    except Exception:
        return 48 << 20  # conservative default, safe on every generation


def make_mlp_kernel(apply_act, negative_slope, compute_dtype):
    """apply_act[i]: PyTorch applies LeakyReLU (and Dropout) iff fc_dims[i] != 1."""
    num_layers = len(apply_act)

    def kernel(x_ref, *refs):
        out_ref = refs[-1]
        h = x_ref[...].astype(compute_dtype)          # in-kernel cast, no wrapper copy
        for i in range(num_layers):
            w = refs[2 * i][...]                      # (prev_p, dout_p) compute dtype
            b = refs[2 * i + 1][...]                  # (1, dout_p) f32 bias
            acc = jnp.dot(h, w, preferred_element_type=jnp.float32) + b
            if apply_act[i]:
                acc = jnp.maximum(acc, negative_slope * acc)   # LeakyReLU
            # TODO(synk): Dropout(p=0.4) is identity at inference; training-mode
            # dropout (RNG mask) is intentionally not implemented here.
            if i < num_layers - 1:
                h = acc.astype(w.dtype)               # back to MXU dtype for next layer
            else:
                out_ref[...] = acc.astype(out_ref.dtype)

    return kernel


def make_mlp_forward(input_dim, fc_dims, weights, biases, *, tile_n=1024,
                     negative_slope=0.01, compute_dtype=jnp.bfloat16):
    """Pads/casts parameters once; returns forward(x) for x of shape [N, input_dim]."""
    num_layers = len(fc_dims)
    itemsize = jnp.dtype(compute_dtype).itemsize

    # ---- pad every layer OUTPUT dim (incl. the last) to a multiple of 128 ----
    # (input feature dim is deliberately NOT padded)
    padded_w, padded_b = [], []
    prev_p = input_dim
    for w, b in zip(weights, biases):
        din, dout = w.shape
        dout_p = _round_up(dout, 128)
        w_p = jnp.zeros((prev_p, dout_p), compute_dtype).at[:din, :dout].set(
            w.astype(compute_dtype))
        b_p = jnp.zeros((1, dout_p), jnp.float32).at[:, :dout].set(
            b.astype(jnp.float32))
        padded_w.append(w_p)
        padded_b.append(b_p)
        prev_p = dout_p
    d_out = fc_dims[-1]
    d_out_p = prev_p
    flat_params = [a for wb in zip(padded_w, padded_b) for a in wb]

    apply_act = tuple(int(d) != 1 for d in fc_dims)
    kernel = make_mlp_kernel(apply_act, negative_slope, compute_dtype)
    param_bytes = (sum(w.size * itemsize for w in padded_w)
                   + sum(b.size * 4 for b in padded_b))
    vmem_cap = _vmem_cap_bytes()

    def forward(x):
        N, d_in = x.shape
        assert d_in == input_dim

        # Large row tile (amortize per-step overhead) but keep >= 2 grid steps so
        # both v7x TensorCores get work; tile is a multiple of 256 (sublane-aligned).
        tile = max(8, min(tile_n, _round_up(pl.cdiv(N, 2), 256)))
        grid_n = pl.cdiv(N, tile)

        # VMEM hint: double-buffered x/out tiles + resident params (x2 only once)
        # + headroom for in-kernel intermediate activations.
        bytes_x = 2 * tile * d_in * x.dtype.itemsize
        bytes_o = 2 * tile * d_out_p * 4
        vmem_bytes = int(min(max(bytes_x + bytes_o + 2 * param_bytes + (4 << 20),
                                 16 << 20), vmem_cap))

        # Advisory cost estimate.
        flops = 0
        prev = d_in
        for dp in (w.shape[1] for w in padded_w):
            flops += 2 * N * prev * dp
            prev = dp
        cost = pl.CostEstimate(
            flops=flops, transcendentals=0,
            bytes_accessed=int(x.size * x.dtype.itemsize + param_bytes
                               + N * d_out_p * 4))

        def run(single_buffer_params):
            in_specs = [pl.BlockSpec((tile, d_in), lambda i: (i, 0))]
            for p in flat_params:
                kw = ({"pipeline_mode": pl.Buffered(1)}
                      if single_buffer_params else {})
                in_specs.append(pl.BlockSpec(p.shape, lambda i: (0, 0), **kw))
            return pl.pallas_call(
                kernel,
                out_shape=jax.ShapeDtypeStruct((N, d_out_p), jnp.float32),
                grid_spec=pltpu.PrefetchScalarGridSpec(
                    num_scalar_prefetch=0,
                    grid=(grid_n,),
                    in_specs=in_specs,
                    out_specs=pl.BlockSpec((tile, d_out_p), lambda i: (i, 0)),
                ),
                compiler_params=pltpu.CompilerParams(
                    dimension_semantics=("parallel",),
                    vmem_limit_bytes=vmem_bytes),
                cost_estimate=cost,
            )(x, *flat_params)

        try:
            out = run(single_buffer_params=True)
        except Exception:
            # pipeline_mode=pl.Buffered(1) not supported on this JAX version:
            # fall back to default double-buffered resident params.
            out = run(single_buffer_params=False)

        return out[:, :d_out]      # drop lane padding (kept stores lane-dense)

    return forward


def init_params(key, input_dim, fc_dims, dtype=jnp.float32):
    """PyTorch-Linear-like init: U(-1/sqrt(fan_in), 1/sqrt(fan_in))."""
    weights, biases = [], []
    d = input_dim
    for dim in fc_dims:
        key, kw, kb = jax.random.split(key, 3)
        bound = 1.0 / jnp.sqrt(d)
        weights.append(jax.random.uniform(kw, (d, dim), dtype, -bound, bound))
        biases.append(jax.random.uniform(kb, (dim,), dtype, -bound, bound))
        d = dim
    return weights, biases


def mlp_reference(x, weights, biases, fc_dims, negative_slope=0.01):
    h = x
    for (w, b), dim in zip(zip(weights, biases), fc_dims):
        h = h @ w + b
        if dim != 1:
            h = jnp.where(h >= 0, h, negative_slope * h)
        # Dropout: identity at inference.
    return h


if __name__ == "__main__":
    # Small, module-consistent shapes: 1000 samples, input_dim=64, fc_dims=(128, 64, 1).
    # (1000 rows deliberately exercises the ragged-tail / masked-write path.)
    N, INPUT_DIM = 1000, 64
    FC_DIMS = (128, 64, 1)

    key = jax.random.PRNGKey(0)
    k_x, k_p = jax.random.split(key)
    x = jax.random.normal(k_x, (N, INPUT_DIM), jnp.float32)
    weights, biases = init_params(k_p, INPUT_DIM, FC_DIMS)

    ref = mlp_reference(x, weights, biases, FC_DIMS)

    # Structural-correctness check with f32 compute (validates tiling / padding /
    # masked tail / bias / LeakyReLU); tolerance allows for MXU matmul rounding.
    fwd_f32 = make_mlp_forward(INPUT_DIM, FC_DIMS, weights, biases,
                               compute_dtype=jnp.float32)
    out_f32 = jax.block_until_ready(fwd_f32(x))
    assert out_f32.shape == (N, FC_DIMS[-1])
    assert jnp.allclose(out_f32, ref, atol=1e-2, rtol=1e-2), "f32 mismatch vs reference"

    # Performance configuration: bf16 weights / in-kernel bf16 cast, f32 accumulation.
    fwd_bf16 = make_mlp_forward(INPUT_DIM, FC_DIMS, weights, biases,
                                compute_dtype=jnp.bfloat16)
    out_bf16 = jax.block_until_ready(fwd_bf16(x))
    assert out_bf16.shape == (N, FC_DIMS[-1])
    assert jnp.allclose(out_bf16, ref, atol=5e-2, rtol=5e-2), "bf16 mismatch vs reference"

    print("KERNEL_OK")
</pallas_src>

<mosaic_0001>
module attributes {stable_mosaic.version = 11 : i64} {
  func.func @kernel(%arg0: i32, %arg1: memref<512x64xf32, #tpu.memory_space<vmem>>, %arg2: memref<64x128xf32, #tpu.memory_space<vmem>>, %arg3: memref<1x128xf32, #tpu.memory_space<vmem>>, %arg4: memref<128x128xf32, #tpu.memory_space<vmem>>, %arg5: memref<1x128xf32, #tpu.memory_space<vmem>>, %arg6: memref<128x128xf32, #tpu.memory_space<vmem>>, %arg7: memref<1x128xf32, #tpu.memory_space<vmem>>, %arg8: memref<512x128xf32, #tpu.memory_space<vmem>>) attributes {dimension_semantics = [#tpu.dimension_semantics<parallel>], iteration_bounds = array<i64: 2>, scalar_prefetch = 0 : i64, scratch_operands = 0 : i64, tpu.core_type = #tpu.core_type<tc>, window_params = [{transform_indices = @transform_0, window_bounds = array<i64: 512, 64>}, {pipeline_mode = #tpu.pipeline_mode<synchronous>, transform_indices = @transform_1, window_bounds = array<i64: 64, 128>}, {pipeline_mode = #tpu.pipeline_mode<synchronous>, transform_indices = @transform_2, window_bounds = array<i64: 1, 128>}, {pipeline_mode = #tpu.pipeline_mode<synchronous>, transform_indices = @transform_3, window_bounds = array<i64: 128, 128>}, {pipeline_mode = #tpu.pipeline_mode<synchronous>, transform_indices = @transform_4, window_bounds = array<i64: 1, 128>}, {pipeline_mode = #tpu.pipeline_mode<synchronous>, transform_indices = @transform_5, window_bounds = array<i64: 128, 128>}, {pipeline_mode = #tpu.pipeline_mode<synchronous>, transform_indices = @transform_6, window_bounds = array<i64: 1, 128>}, {transform_indices = @transform_7, window_bounds = array<i64: 512, 128>}]} {
    %c0 = arith.constant 0 : index
    %c0_0 = arith.constant 0 : index
    %0 = vector.load %arg1[%c0, %c0_0] : memref<512x64xf32, #tpu.memory_space<vmem>>, vector<512x64xf32>
    %c0_1 = arith.constant 0 : index
    %c0_2 = arith.constant 0 : index
    %1 = vector.load %arg2[%c0_1, %c0_2] : memref<64x128xf32, #tpu.memory_space<vmem>>, vector<64x128xf32>
    %c0_3 = arith.constant 0 : index
    %c0_4 = arith.constant 0 : index
    %2 = vector.load %arg3[%c0_3, %c0_4] : memref<1x128xf32, #tpu.memory_space<vmem>>, vector<1x128xf32>
    %cst = arith.constant dense<0.000000e+00> : vector<512x128xf32>
    %3 = tpu.matmul %0, %1, %cst {dimension_numbers = #tpu.dot_dimension_numbers<[1], [0], [0], [1], [0, 0, 1, 1], [], []>} : vector<512x64xf32>, vector<64x128xf32>, vector<512x128xf32> -> vector<512x128xf32>
    %4 = vector.broadcast %2 : vector<1x128xf32> to vector<512x128xf32>
    %5 = arith.addf %3, %4 : vector<512x128xf32>
    %cst_5 = arith.constant 0.00999999977 : f32
    %6 = vector.broadcast %cst_5 : f32 to vector<512x128xf32>
    %7 = arith.mulf %6, %5 : vector<512x128xf32>
    %8 = arith.maximumf %5, %7 : vector<512x128xf32>
    %c0_6 = arith.constant 0 : index
    %c0_7 = arith.constant 0 : index
    %9 = vector.load %arg4[%c0_6, %c0_7] : memref<128x128xf32, #tpu.memory_space<vmem>>, vector<128x128xf32>
    %c0_8 = arith.constant 0 : index
    %c0_9 = arith.constant 0 : index
    %10 = vector.load %arg5[%c0_8, %c0_9] : memref<1x128xf32, #tpu.memory_space<vmem>>, vector<1x128xf32>
    %cst_10 = arith.constant dense<0.000000e+00> : vector<512x128xf32>
    %11 = tpu.matmul %8, %9, %cst_10 {dimension_numbers = #tpu.dot_dimension_numbers<[1], [0], [0], [1], [0, 0, 1, 1], [], []>} : vector<512x128xf32>, vector<128x128xf32>, vector<512x128xf32> -> vector<512x128xf32>
    %12 = vector.broadcast %10 : vector<1x128xf32> to vector<512x128xf32>
    %13 = arith.addf %11, %12 : vector<512x128xf32>
    %cst_11 = arith.constant 0.00999999977 : f32
    %14 = vector.broadcast %cst_11 : f32 to vector<512x128xf32>
    %15 = arith.mulf %14, %13 : vector<512x128xf32>
    %16 = arith.maximumf %13, %15 : vector<512x128xf32>
    %c0_12 = arith.constant 0 : index
    %c0_13 = arith.constant 0 : index
    %17 = vector.load %arg6[%c0_12, %c0_13] : memref<128x128xf32, #tpu.memory_space<vmem>>, vector<128x128xf32>
    %c0_14 = arith.constant 0 : index
    %c0_15 = arith.constant 0 : index
    %18 = vector.load %arg7[%c0_14, %c0_15] : memref<1x128xf32, #tpu.memory_space<vmem>>, vector<1x128xf32>
    %cst_16 = arith.constant dense<0.000000e+00> : vector<512x128xf32>
    %19 = tpu.matmul %16, %17, %cst_16 {dimension_numbers = #tpu.dot_dimension_numbers<[1], [0], [0], [1], [0, 0, 1, 1], [], []>} : vector<512x128xf32>, vector<128x128xf32>, vector<512x128xf32> -> vector<512x128xf32>
    %20 = vector.broadcast %18 : vector<1x128xf32> to vector<512x128xf32>
    %21 = arith.addf %19, %20 : vector<512x128xf32>
    %c0_17 = arith.constant 0 : index
    %c0_18 = arith.constant 0 : index
    %22 = vector.load %arg8[%c0_17, %c0_18] : memref<512x128xf32, #tpu.memory_space<vmem>>, vector<512x128xf32>
    tpu.vector_store %arg8[%c0_17, %c0_18], %21 {strides = array<i32>} : memref<512x128xf32, #tpu.memory_space<vmem>>, vector<512x128xf32>,
    return
  }
  func.func @transform_0(%arg0: i32) -> (i32, i32) {
    %c0_i32 = arith.constant 0 : i32
    %c0_i32_0 = arith.constant 0 : i32
    return %arg0, %c0_i32 : i32, i32
  }
  func.func @transform_1(%arg0: i32) -> (i32, i32) {
    %c0_i32 = arith.constant 0 : i32
    %c0_i32_0 = arith.constant 0 : i32
    %c0_i32_1 = arith.constant 0 : i32
    return %c0_i32, %c0_i32_0 : i32, i32
  }
  func.func @transform_2(%arg0: i32) -> (i32, i32) {
    %c0_i32 = arith.constant 0 : i32
    %c0_i32_0 = arith.constant 0 : i32
    %c0_i32_1 = arith.constant 0 : i32
    return %c0_i32, %c0_i32_0 : i32, i32
  }
  func.func @transform_3(%arg0: i32) -> (i32, i32) {
    %c0_i32 = arith.constant 0 : i32
    %c0_i32_0 = arith.constant 0 : i32
    %c0_i32_1 = arith.constant 0 : i32
    return %c0_i32, %c0_i32_0 : i32, i32
  }
  func.func @transform_4(%arg0: i32) -> (i32, i32) {
    %c0_i32 = arith.constant 0 : i32
    %c0_i32_0 = arith.constant 0 : i32
    %c0_i32_1 = arith.constant 0 : i32
    return %c0_i32, %c0_i32_0 : i32, i32
  }
  func.func @transform_5(%arg0: i32) -> (i32, i32) {
    %c0_i32 = arith.constant 0 : i32
    %c0_i32_0 = arith.constant 0 : i32
    %c0_i32_1 = arith.constant 0 : i32
    return %c0_i32, %c0_i32_0 : i32, i32
  }
  func.func @transform_6(%arg0: i32) -> (i32, i32) {
    %c0_i32 = arith.constant 0 : i32
    %c0_i32_0 = arith.constant 0 : i32
    %c0_i32_1 = arith.constant 0 : i32
    return %c0_i32, %c0_i32_0 : i32, i32
  }
  func.func @transform_7(%arg0: i32) -> (i32, i32) {
    %c0_i32 = arith.constant 0 : i32
    %c0_i32_0 = arith.constant 0 : i32
    return %arg0, %c0_i32 : i32, i32
  }
}

module attributes {stable_mosaic.version = 11 : i64} {
  func.func @kernel(%arg0: i32, %arg1: memref<512x64xf32, #tpu.memory_space<vmem>>, %arg2: memref<64x128xf32, #tpu.memory_space<vmem>>, %arg3: memref<1x128xf32, #tpu.memory_space<vmem>>, %arg4: memref<128x128xf32, #tpu.memory_space<vmem>>, %arg5: memref<1x128xf32, #tpu.memory_space<vmem>>, %arg6: memref<128x128xf32, #tpu.memory_space<vmem>>, %arg7: memref<1x128xf32, #tpu.memory_space<vmem>>, %arg8: memref<512x128xf32, #tpu.memory_space<vmem>>) attributes {dimension_semantics = [#tpu.dimension_semantics<parallel>], iteration_bounds = array<i64: 2>, scalar_prefetch = 0 : i64, scratch_operands = 0 : i64, tpu.core_type = #tpu.core_type<tc>, window_params = [{transform_indices = @transform_0, window_bounds = array<i64: 512, 64>}, {pipeline_mode = #tpu.pipeline_mode<synchronous>, transform_indices = @transform_1, window_bounds = array<i64: 64, 128>}, {pipeline_mode = #tpu.pipeline_mode<synchronous>, transform_indices = @transform_2, window_bounds = array<i64: 1, 128>}, {pipeline_mode = #tpu.pipeline_mode<synchronous>, transform_indices = @transform_3, window_bounds = array<i64: 128, 128>}, {pipeline_mode = #tpu.pipeline_mode<synchronous>, transform_indices = @transform_4, window_bounds = array<i64: 1, 128>}, {pipeline_mode = #tpu.pipeline_mode<synchronous>, transform_indices = @transform_5, window_bounds = array<i64: 128, 128>}, {pipeline_mode = #tpu.pipeline_mode<synchronous>, transform_indices = @transform_6, window_bounds = array<i64: 1, 128>}, {transform_indices = @transform_7, window_bounds = array<i64: 512, 128>}]} {
    %c0 = arith.constant 0 : index
    %c0_0 = arith.constant 0 : index
    %0 = vector.load %arg1[%c0, %c0_0] : memref<512x64xf32, #tpu.memory_space<vmem>>, vector<512x64xf32>
    %c0_1 = arith.constant 0 : index
    %c0_2 = arith.constant 0 : index
    %1 = vector.load %arg2[%c0_1, %c0_2] : memref<64x128xf32, #tpu.memory_space<vmem>>, vector<64x128xf32>
    %c0_3 = arith.constant 0 : index
    %c0_4 = arith.constant 0 : index
    %2 = vector.load %arg3[%c0_3, %c0_4] : memref<1x128xf32, #tpu.memory_space<vmem>>, vector<1x128xf32>
    %cst = arith.constant dense<0.000000e+00> : vector<512x128xf32>
    %3 = tpu.matmul %0, %1, %cst {dimension_numbers = #tpu.dot_dimension_numbers<[1], [0], [0], [1], [0, 0, 1, 1], [], []>} : vector<512x64xf32>, vector<64x128xf32>, vector<512x128xf32> -> vector<512x128xf32>
    %4 = vector.broadcast %2 : vector<1x128xf32> to vector<512x128xf32>
    %5 = arith.addf %3, %4 : vector<512x128xf32>
    %cst_5 = arith.constant 0.00999999977 : f32
    %6 = vector.broadcast %cst_5 : f32 to vector<512x128xf32>
    %7 = arith.mulf %6, %5 : vector<512x128xf32>
    %8 = arith.maximumf %5, %7 : vector<512x128xf32>
    %c0_6 = arith.constant 0 : index
    %c0_7 = arith.constant 0 : index
    %9 = vector.load %arg4[%c0_6, %c0_7] : memref<128x128xf32, #tpu.memory_space<vmem>>, vector<128x128xf32>
    %c0_8 = arith.constant 0 : index
    %c0_9 = arith.constant 0 : index
    %10 = vector.load %arg5[%c0_8, %c0_9] : memref<1x128xf32, #tpu.memory_space<vmem>>, vector<1x128xf32>
    %cst_10 = arith.constant dense<0.000000e+00> : vector<512x128xf32>
    %11 = tpu.matmul %8, %9, %cst_10 {dimension_numbers = #tpu.dot_dimension_numbers<[1], [0], [0], [1], [0, 0, 1, 1], [], []>} : vector<512x128xf32>, vector<128x128xf32>, vector<512x128xf32> -> vector<512x128xf32>
    %12 = vector.broadcast %10 : vector<1x128xf32> to vector<512x128xf32>
    %13 = arith.addf %11, %12 : vector<512x128xf32>
    %cst_11 = arith.constant 0.00999999977 : f32
    %14 = vector.broadcast %cst_11 : f32 to vector<512x128xf32>
    %15 = arith.mulf %14, %13 : vector<512x128xf32>
    %16 = arith.maximumf %13, %15 : vector<512x128xf32>
    %c0_12 = arith.constant 0 : index
    %c0_13 = arith.constant 0 : index
    %17 = vector.load %arg6[%c0_12, %c0_13] : memref<128x128xf32, #tpu.memory_space<vmem>>, vector<128x128xf32>
    %c0_14 = arith.constant 0 : index
    %c0_15 = arith.constant 0 : index
    %18 = vector.load %arg7[%c0_14, %c0_15] : memref<1x128xf32, #tpu.memory_space<vmem>>, vector<1x128xf32>
    %cst_16 = arith.constant dense<0.000000e+00> : vector<512x128xf32>
    %19 = tpu.matmul %16, %17, %cst_16 {dimension_numbers = #tpu.dot_dimension_numbers<[1], [0], [0], [1], [0, 0, 1, 1], [], []>} : vector<512x128xf32>, vector<128x128xf32>, vector<512x128xf32> -> vector<512x128xf32>
    %20 = vector.broadcast %18 : vector<1x128xf32> to vector<512x128xf32>
    %21 = arith.addf %19, %20 : vector<512x128xf32>
    %c0_17 = arith.constant 0 : index
    %c0_18 = arith.constant 0 : index
    %22 = vector.load %arg8[%c0_17, %c0_18] : memref<512x128xf32, #tpu.memory_space<vmem>>, vector<512x128xf32>
    tpu.vector_store %arg8[%c0_17, %c0_18], %21 {strides = array<i32>} : memref<512x128xf32, #tpu.memory_space<vmem>>, vector<512x128xf32>,
    return
  }
  func.func @transform_0(%arg0: i32) -> (i32, i32) {
    %c0_i32 = arith.constant 0 : i32
    %c0_i32_0 = arith.constant 0 : i32
    return %arg0, %c0_i32 : i32, i32
  }
  func.func @transform_1(%arg0: i32) -> (i32, i32) {
    %c0_i32 = arith.constant 0 : i32
    %c0_i32_0 = arith.constant 0 : i32
    %c0_i32_1 = arith.constant 0 : i32
    return %c0_i32, %c0_i32_0 : i32, i32
  }
  func.func @transform_2(%arg0: i32) -> (i32, i32) {
    %c0_i32 = arith.constant 0 : i32
    %c0_i32_0 = arith.constant 0 : i32
    %c0_i32_1 = arith.constant 0 : i32
    return %c0_i32, %c0_i32_0 : i32, i32
  }
  func.func @transform_3(%arg0: i32) -> (i32, i32) {
    %c0_i32 = arith.constant 0 : i32
    %c0_i32_0 = arith.constant 0 : i32
    %c0_i32_1 = arith.constant 0 : i32
    return %c0_i32, %c0_i32_0 : i32, i32
  }
  func.func @transform_4(%arg0: i32) -> (i32, i32) {
    %c0_i32 = arith.constant 0 : i32
    %c0_i32_0 = arith.constant 0 : i32
    %c0_i32_1 = arith.constant 0 : i32
    return %c0_i32, %c0_i32_0 : i32, i32
  }
  func.func @transform_5(%arg0: i32) -> (i32, i32) {
    %c0_i32 = arith.constant 0 : i32
    %c0_i32_0 = arith.constant 0 : i32
    %c0_i32_1 = arith.constant 0 : i32
    return %c0_i32, %c0_i32_0 : i32, i32
  }
  func.func @transform_6(%arg0: i32) -> (i32, i32) {
    %c0_i32 = arith.constant 0 : i32
    %c0_i32_0 = arith.constant 0 : i32
    %c0_i32_1 = arith.constant 0 : i32
    return %c0_i32, %c0_i32_0 : i32, i32
  }
  func.func @transform_7(%arg0: i32) -> (i32, i32) {
    %c0_i32 = arith.constant 0 : i32
    %c0_i32_0 = arith.constant 0 : i32
    return %arg0, %c0_i32 : i32, i32
  }
}

</mosaic_0001>

<bundles_post_ra>
// kernel: tpu_custom_call.1
= control target key start
LH: loop header
LB: loop body
LE: loop exit
PB: predicated region body
PF: predicated region fallthrough
CT: control target
= control target key end

     0   :  { %12 = vsyncpa [#allocation3], 0  ;;  %s3731_s0 = inlined_call_operand.vmem [shape: f32[1000,64], index: 0, kind: input, shape index: {}]   ;;  %s3732_s1 = inlined_call_operand.vmem [shape: f32[64,128], index: 1, kind: input, shape index: {}]   ;;  %s3733_s2 = inlined_call_operand.vmem [shape: f32[1,128], index: 2, kind: input, shape index: {}]   ;;  %s3734_s3 = inlined_call_operand.vmem [shape: f32[128,128], index: 3, kind: input, shape index: {}]   ;;  %s3735_s4 = inlined_call_operand.vmem [shape: f32[1,128], index: 4, kind: input, shape index: {}]   ;;  %s3736_s5 = inlined_call_operand.vmem [shape: f32[128,128], index: 5, kind: input, shape index: {}]   ;;  %s3737_s6 = inlined_call_operand.vmem [shape: f32[1,128], index: 6, kind: input, shape index: {}]   ;;  %s3738_s7 = inlined_call_operand.hbm [shape: f32[1000,128], index: 7, kind: output, shape index: {}]  }
   0x1   :  { %14 = vsyncpa [#allocation3 + $0x1], 0  ;;  %s3024_s24 = smov 0   ;;  %s3026_s25 = smov 0  }
   0x2   :  { %s3028_s26 = smov 0   ;;  %s3030_s27 = smov 0  }
   0x3 LB: > { %s3045_s28 = sadd.s32 4294967295, %s2979_s27   ;;  %s2179_s29 = sadd.s32 4294967294, %s2979_s27   ;;  %s2979_s27 = sphi %s3030_s27, %s3744_s27   ;;  %s2975_s26 = sphi %s3028_s26, %s3743_s26   ;;  %s2971_s25 = sphi %s3026_s25, %s3742_s25   ;;  %s2967_s24 = sphi %s3024_s24, %s3741_s24  }
   0x4   : > { %s3049_s30 = sadd.s32 1, %s2979_s27   ;;  %s179_s8 = sadd.s32 1, %s2975_s26 }
   0x5   : > { %s176_s9 = ssub.s32 %s2979_s27, %s3049_s30  ;;  %p189_p0 = scmp.ne.s32.totalorder %s2975_s26, %s2971_s25 }
   0x6   : > { %p177_p1 = scmp.eq.s32.totalorder %s176_s9, 0  ;;  %p190_p2 = scmp.eq.s32.totalorder %s3045_s28, 1 }
   0x7   : > { %p195_p3 = scmp.ne.s32.totalorder %s2971_s25, %s2967_s24  ;;  %p196_p4 = scmp.eq.s32.totalorder %s2179_s29, 1 }
   0x8   : > { %s3060_s10 = scalar_select %p177_p1, %s2975_s26, %s179_s8  }
   0x9   : > { %p3062_p5 = por %p190_p2, %p189_p0  ;;  %p3066_p6 = por %p196_p4, %p195_p3 }
   0xa   : > { %p2182_p7 = scmp.ge.s32.totalorder %s2979_s27, 1  ;;  %p249_p8 = scmp.lt.s32.totalorder %s2979_s27, 3 }
   0xc   : > { %p250_p9 = pnand %p2182_p7, %p249_p8 }
   0xd   : > { %s3079_s17 = sshll.u32 (!%p250_p9), %s3045_s28, 6  ;;  %s282_s13 = sand.u32 (!%p250_p9), 1, %s2971_s25  }
   0xe   : > { %253 = sbr.rel (%p250_p9) target bundleno = 789 (0x315), region = 48  ;;  %p290_p10 = scmp.lt.s32.totalorder (!%p250_p9), %s3079_s17, 124 }
   0xf   : > { %s2183_s15 = sshll.u32 (!%p250_p9), %s282_s13, 9 }
  0x10   : > { %s3540_s19 = scalar_lea.vmem (!%p250_p9), [#allocation2], %s2183_s15 }
  0x13   : > { %v375_v0 = vld [vmem:[%s3732_s1 + $0x38] sm:$0xff]  ;;  %v374_v1 = vld [vmem:[%s3732_s1 + $0x30] sm:$0xff]  ;;  %v373_v2 = vld [vmem:[%s3732_s1 + $0x28] sm:$0xff]  ;;  %s291_s20 = scalar_select %p290_p10, %s3079_s17, 124  ;;  %vm383_vm0 = vcmask 523264  }
  0x14   : > { %2495 = vmatprep.subr.mxu0 %v375_v0  ;;  %2863 = vmatprep.subr.mxu1 %v375_v0  ;;  %v372_v3 = vld [vmem:[%s3732_s1 + $0x20] sm:$0xff]  ;;  %v371_v4 = vld [vmem:[%s3732_s1 + $0x18] sm:$0xff]  ;;  %v370_v6 = vld [vmem:[%s3732_s1 + $0x10] sm:$0xff] }
  0x15   : > { %2496 = vmatpush3.msra.mxu0 %v375_v0  ;;  %2871 = vmatpush3.msra.mxu1 %v375_v0  ;;  %s2185_s23 = sshll.u32 %s291_s20, 3  ;;  %v369_v7 = vld [vmem:[%s3732_s1 + $0x8] sm:$0xff]  ;;  %v368_v8 = vld [vmem:[%s3732_s1] sm:$0xff]  ;;  %v1104_v11 = vld [vmem:[%s3734_s3 + $0x78] sm:$0xff]  ;;  %s2106_s20 = ssub.s32 (%p3062_p5), 125, %s3079_s17 }
  0x16   : > { %2497 = vmatprep.subr.mxu0 %v374_v1  ;;  %2864 = vmatprep.subr.mxu1 %v374_v1  ;;  %s3095_s14 = scalar_lea.vmem %s3731_s0, %s2185_s23  ;;  %v1103_v13 = vld [vmem:[%s3734_s3 + $0x70] sm:$0xff]  ;;  %v1102_v19 = vld [vmem:[%s3734_s3 + $0x68] sm:$0xff]  ;;  %v1101_v22 = vld [vmem:[%s3734_s3 + $0x60] sm:$0xff]  ;;  %p2107_p11 = scmp.lt.s32.totalorder (%p3062_p5), %s2106_s20, 64 }
  0x17   : > { %2498 = vmatpush3.msra.mxu0 %v374_v1  ;;  %2872 = vmatpush3.msra.mxu1 %v374_v1  ;;  %v304_v5 = vld [vmem:[%s3095_s14] sm:$0xff]  ;;  %v305_v9 = vld [vmem:[%s3095_s14 + $0x8] sm:$0xff]  ;;  %v306_v10 = vld [vmem:[%s3095_s14 + $0x10] sm:$0xff] }
  0x18   : > { %2499 = vmatprep.subr.mxu0 %v373_v2  ;;  %2865 = vmatprep.subr.mxu1 %v373_v2  ;;  %v336_v12 = vld [vmem:[%s3095_s14 + $0x100] sm:$0xff]  ;;  %v307_v14 = vld [vmem:[%s3095_s14 + $0x18] sm:$0xff]  ;;  %v337_v15 = vld [vmem:[%s3095_s14 + $0x108] sm:$0xff] }
  0x19   : > { %2500 = vmatpush3.msra.mxu0 %v373_v2  ;;  %2873 = vmatpush3.msra.mxu1 %v373_v2  ;;  %v338_v16 = vld [vmem:[%s3095_s14 + $0x110] sm:$0xff]  ;;  %v308_v17 = vld [vmem:[%s3095_s14 + $0x20] sm:$0xff]  ;;  %v339_v18 = vld [vmem:[%s3095_s14 + $0x118] sm:$0xff] }
  0x1a   : > { %2501 = vmatprep.subr.mxu0 %v372_v3  ;;  %2866 = vmatprep.subr.mxu1 %v372_v3  ;;  %v340_v20 = vld [vmem:[%s3095_s14 + $0x120] sm:$0xff]  ;;  %v309_v21 = vld [vmem:[%s3095_s14 + $0x28] sm:$0xff]  ;;  %v310_v23 = vld [vmem:[%s3095_s14 + $0x30] sm:$0xff] }
  0x1b   : > { %2502 = vmatpush3.msra.mxu0 %v372_v3  ;;  %2511 = vmatprep.mubr.msk.f32.mxu0 %vm383_vm0, %v304_v5  ;;  %v341_v24 = vld [vmem:[%s3095_s14 + $0x128] sm:$0xff]  ;;  %v1100_v25 = vld [vmem:[%s3734_s3 + $0x58] sm:$0xff]  ;;  %v342_v26 = vld [vmem:[%s3095_s14 + $0x130] sm:$0xff] }
  0x1c   : > { %2503 = vmatprep.subr.mxu0 %v371_v4  ;;  %2874 = vmatpush3.msra.mxu1 %v372_v3  ;;  %v311_v27 = vld [vmem:[%s3095_s14 + $0x38] sm:$0xff]  ;;  %v1099_v28 = vld [vmem:[%s3734_s3 + $0x50] sm:$0xff]  ;;  %v312_v29 = vld [vmem:[%s3095_s14 + $0x40] sm:$0xff] }
  0x1d   : > { %2504 = vmatpush3.msra.mxu0 %v371_v4  ;;  %2867 = vmatprep.subr.mxu1 %v371_v4  ;;  %v343_v30 = vld [vmem:[%s3095_s14 + $0x138] sm:$0xff]  ;;  %v1098_v31 = vld [vmem:[%s3734_s3 + $0x48] sm:$0xff]  ;;  %v344_v32 = vld [vmem:[%s3095_s14 + $0x140] sm:$0xff] }
  0x1e   : > { %2505 = vmatprep.subr.mxu0 %v370_v6  ;;  %2875 = vmatpush3.msra.mxu1 %v371_v4  ;;  %v313_v33 = vld [vmem:[%s3095_s14 + $0x48] sm:$0xff]  ;;  %v1097_v34 = vld [vmem:[%s3734_s3 + $0x40] sm:$0xff]  ;;  %v314_v35 = vld [vmem:[%s3095_s14 + $0x50] sm:$0xff] }
  0x1f   : > { %2506 = vmatpush3.msra.mxu0 %v370_v6  ;;  %2868 = vmatprep.subr.mxu1 %v370_v6  ;;  %v345_v36 = vld [vmem:[%s3095_s14 + $0x148] sm:$0xff]  ;;  %v1096_v37 = vld [vmem:[%s3734_s3 + $0x38] sm:$0xff]  ;;  %v346_v38 = vld [vmem:[%s3095_s14 + $0x150] sm:$0xff] }
  0x20   : > { %2507 = vmatprep.subr.mxu0 %v369_v7  ;;  %2876 = vmatpush3.msra.mxu1 %v370_v6  ;;  %v315_v39 = vld [vmem:[%s3095_s14 + $0x58] sm:$0xff]  ;;  %v1095_v40 = vld [vmem:[%s3734_s3 + $0x30] sm:$0xff]  ;;  %v316_v41 = vld [vmem:[%s3095_s14 + $0x60] sm:$0xff] }
  0x21   : > { %2508 = vmatpush3.msra.mxu0 %v369_v7  ;;  %2869 = vmatprep.subr.mxu1 %v369_v7  ;;  %v347_v42 = vld [vmem:[%s3095_s14 + $0x158] sm:$0xff]  ;;  %v1094_v43 = vld [vmem:[%s3734_s3 + $0x28] sm:$0xff]  ;;  %v348_v44 = vld [vmem:[%s3095_s14 + $0x160] sm:$0xff] }
  0x22   : > { %2509 = vmatprep.subr.mxu0 %v368_v8  ;;  %2877 = vmatpush3.msra.mxu1 %v369_v7  ;;  %v317_v45 = vld [vmem:[%s3095_s14 + $0x68] sm:$0xff]  ;;  %v1093_v46 = vld [vmem:[%s3734_s3 + $0x20] sm:$0xff]  ;;  %v318_v47 = vld [vmem:[%s3095_s14 + $0x70] sm:$0xff] }
  0x23   : > { %2510 = vmatpush3.msra.mxu0 %v368_v8  ;;  %2870 = vmatprep.subr.mxu1 %v368_v8  ;;  %v349_v48 = vld [vmem:[%s3095_s14 + $0x168] sm:$0xff]  ;;  %v1092_v49 = vld [vmem:[%s3734_s3 + $0x18] sm:$0xff]  ;;  %v350_v50 = vld [vmem:[%s3095_s14 + $0x170] sm:$0xff] }
  0x24   : > { %2512 = vmatmul.mubr.msk.f32.vlgmr.msra.gmra.mxu0 %vm383_vm0, %v305_v9  ;;  %2878 = vmatpush3.msra.mxu1 %v368_v8  ;;  %v319_v51 = vld [vmem:[%s3095_s14 + $0x78] sm:$0xff]  ;;  %v1091_v52 = vld [vmem:[%s3734_s3 + $0x10] sm:$0xff]  ;;  %v320_v53 = vld [vmem:[%s3095_s14 + $0x80] sm:$0xff] }
  0x25   : > { %2514 = vmatprep.mubr.msk.f32.mxu0 %vm383_vm0, %v306_v10  ;;  %2559 = vmatprep.mubr.msk.f32.mxu1 %vm383_vm0, %v336_v12  ;;  %v351_v54 = vld [vmem:[%s3095_s14 + $0x178] sm:$0xff]  ;;  %v352_v55 = vld [vmem:[%s3095_s14 + $0x180] sm:$0xff]  ;;  %v321_v56 = vld [vmem:[%s3095_s14 + $0x88] sm:$0xff] }
  0x26   : > { %2560 = vmatmul.mubr.msk.f32.vlgmr.msra.gmra.mxu1 %vm383_vm0, %v337_v15  ;;  %2607 = vmatprep.subr.mxu1 %v1104_v11  ;;  %v322_v57 = vld [vmem:[%s3095_s14 + $0x90] sm:$0xff]  ;;  %v353_v58 = vld [vmem:[%s3095_s14 + $0x188] sm:$0xff]  ;;  %v323_v60 = vld [vmem:[%s3095_s14 + $0x98] sm:$0xff] }
  0x27   : > { %2562 = vmatprep.mubr.msk.f32.mxu1 %vm383_vm0, %v338_v16  ;;  %2608 = vmatpush3.msra.mxu1 %v1104_v11  ;;  %v354_v59 = vld [vmem:[%s3095_s14 + $0x190] sm:$0xff]  ;;  %v324_v61 = vld [vmem:[%s3095_s14 + $0xa0] sm:$0xff]  ;;  %v355_v62 = vld [vmem:[%s3095_s14 + $0x198] sm:$0xff] }
  0x28   : > { %2515 = vmatmul.mubr.msk.f32.gmra.mxu0 %vm383_vm0, %v307_v14  ;;  %2609 = vmatprep.subr.mxu1 %v1103_v13  ;;  %v356_v63 = vld [vmem:[%s3095_s14 + $0x1a0] sm:$0xff]  ;;  %v325_v0 = vld [vmem:[%s3095_s14 + $0xa8] sm:$0xff]  ;;  %v326_v1 = vld [vmem:[%s3095_s14 + $0xb0] sm:$0xff] }
  0x29   : > { %2517 = vmatprep.mubr.msk.f32.mxu0 %vm383_vm0, %v308_v17  ;;  %2610 = vmatpush3.msra.mxu1 %v1103_v13  ;;  %v357_v2 = vld [vmem:[%s3095_s14 + $0x1a8] sm:$0xff]  ;;  %v358_v3 = vld [vmem:[%s3095_s14 + $0x1b0] sm:$0xff]  ;;  %v327_v4 = vld [vmem:[%s3095_s14 + $0xb8] sm:$0xff] }
  0x2a   : > { %2563 = vmatmul.mubr.msk.f32.gmra.mxu1 %vm383_vm0, %v339_v18  ;;  %2611 = vmatprep.subr.mxu1 %v1102_v19  ;;  %v328_v5 = vld [vmem:[%s3095_s14 + $0xc0] sm:$0xff]  ;;  %v359_v6 = vld [vmem:[%s3095_s14 + $0x1b8] sm:$0xff]  ;;  %v329_v8 = vld [vmem:[%s3095_s14 + $0xc8] sm:$0xff] }
  0x2b   : > { %2565 = vmatprep.mubr.msk.f32.mxu1 %vm383_vm0, %v340_v20  ;;  %2612 = vmatpush3.msra.mxu1 %v1102_v19  ;;  %v360_v7 = vld [vmem:[%s3095_s14 + $0x1c0] sm:$0xff]  ;;  %v330_v9 = vld [vmem:[%s3095_s14 + $0xd0] sm:$0xff]  ;;  %v361_v10 = vld [vmem:[%s3095_s14 + $0x1c8] sm:$0xff] }
  0x2c   : > { %2518 = vmatmul.mubr.msk.f32.gmra.mxu0 %vm383_vm0, %v309_v21  ;;  %2613 = vmatprep.subr.mxu1 %v1101_v22  ;;  %v362_v11 = vld [vmem:[%s3095_s14 + $0x1d0] sm:$0xff]  ;;  %v331_v12 = vld [vmem:[%s3095_s14 + $0xd8] sm:$0xff]  ;;  %v332_v13 = vld [vmem:[%s3095_s14 + $0xe0] sm:$0xff] }
  0x2d   : > { %2520 = vmatprep.mubr.msk.f32.mxu0 %vm383_vm0, %v310_v23  ;;  %2614 = vmatpush3.msra.mxu1 %v1101_v22  ;;  %v363_v14 = vld [vmem:[%s3095_s14 + $0x1d8] sm:$0xff]  ;;  %v364_v15 = vld [vmem:[%s3095_s14 + $0x1e0] sm:$0xff]  ;;  %v333_v16 = vld [vmem:[%s3095_s14 + $0xe8] sm:$0xff] }
  0x2e   : > { %2566 = vmatmul.mubr.msk.f32.gmra.mxu1 %vm383_vm0, %v341_v24  ;;  %2615 = vmatprep.subr.mxu1 %v1100_v25  ;;  %v334_v17 = vld [vmem:[%s3095_s14 + $0xf0] sm:$0xff]  ;;  %v365_v18 = vld [vmem:[%s3095_s14 + $0x1e8] sm:$0xff]  ;;  %v335_v20 = vld [vmem:[%s3095_s14 + $0xf8] sm:$0xff] }
  0x2f   : > { %2568 = vmatprep.mubr.msk.f32.mxu1 %vm383_vm0, %v342_v26  ;;  %2616 = vmatpush3.msra.mxu1 %v1100_v25  ;;  %v366_v19 = vld [vmem:[%s3095_s14 + $0x1f0] sm:$0xff]  ;;  %v367_v21 = vld [vmem:[%s3095_s14 + $0x1f8] sm:$0xff]  ;;  %v1090_v22 = vld [vmem:[%s3734_s3 + $0x8] sm:$0xff]  ;;  %s3671_s14 = scalar_lea.sflag [#allocation3], %s282_s13 }
  0x30   : > { %2521 = vmatmul.mubr.msk.f32.gmra.mxu0 %vm383_vm0, %v311_v27  ;;  %2617 = vmatprep.subr.mxu1 %v1099_v28  ;;  %v1089_v23 = vld [vmem:[%s3734_s3] sm:$0xff] }
  0x31   : > { %2523 = vmatprep.mubr.msk.f32.mxu0 %vm383_vm0, %v312_v29  ;;  %2618 = vmatpush3.msra.mxu1 %v1099_v28  ;;  %v3285_v24 = vld [vmem:[%s3733_s2] ss:$0 sm:$0xff] }
  0x32   : > { %2569 = vmatmul.mubr.msk.f32.gmra.mxu1 %vm383_vm0, %v343_v30  ;;  %2619 = vmatprep.subr.mxu1 %v1098_v31 }
  0x33   : > { %2571 = vmatprep.mubr.msk.f32.mxu1 %vm383_vm0, %v344_v32  ;;  %2620 = vmatpush3.msra.mxu1 %v1098_v31 }
  0x34   : > { %2524 = vmatmul.mubr.msk.f32.gmra.mxu0 %vm383_vm0, %v313_v33  ;;  %2621 = vmatprep.subr.mxu1 %v1097_v34 }
  0x35   : > { %2526 = vmatprep.mubr.msk.f32.mxu0 %vm383_vm0, %v314_v35  ;;  %2622 = vmatpush3.msra.mxu1 %v1097_v34 }
  0x36   : > { %2572 = vmatmul.mubr.msk.f32.gmra.mxu1 %vm383_vm0, %v345_v36  ;;  %2623 = vmatprep.subr.mxu1 %v1096_v37 }
  0x37   : > { %2574 = vmatprep.mubr.msk.f32.mxu1 %vm383_vm0, %v346_v38  ;;  %2624 = vmatpush3.msra.mxu1 %v1096_v37  ;;  %v1640_v37 = vld [vmem:[%s3736_s5 + $0x78] sm:$0xff]  ;;  %v1639_v38 = vld [vmem:[%s3736_s5 + $0x70] sm:$0xff] }
  0x38   : > { %2527 = vmatmul.mubr.msk.f32.gmra.mxu0 %vm383_vm0, %v315_v39  ;;  %2625 = vmatprep.subr.mxu1 %v1095_v40 }
  0x39   : > { %2529 = vmatprep.mubr.msk.f32.mxu0 %vm383_vm0, %v316_v41  ;;  %2626 = vmatpush3.msra.mxu1 %v1095_v40 }
  0x3a   : > { %2575 = vmatmul.mubr.msk.f32.gmra.mxu1 %vm383_vm0, %v347_v42  ;;  %2627 = vmatprep.subr.mxu1 %v1094_v43 }
  0x3b   : > { %2577 = vmatprep.mubr.msk.f32.mxu1 %vm383_vm0, %v348_v44  ;;  %2628 = vmatpush3.msra.mxu1 %v1094_v43 }
  0x3c   : > { %2530 = vmatmul.mubr.msk.f32.gmra.mxu0 %vm383_vm0, %v317_v45  ;;  %2629 = vmatprep.subr.mxu1 %v1093_v46  ;;  %v1638_v45 = vld [vmem:[%s3736_s5 + $0x68] sm:$0xff] }
  0x3d   : > { %2532 = vmatprep.mubr.msk.f32.mxu0 %vm383_vm0, %v318_v47  ;;  %2630 = vmatpush3.msra.mxu1 %v1093_v46 }
  0x3e   : > { %2578 = vmatmul.mubr.msk.f32.gmra.mxu1 %vm383_vm0, %v349_v48  ;;  %2631 = vmatprep.subr.mxu1 %v1092_v49 }
  0x3f   : > { %2580 = vmatprep.mubr.msk.f32.mxu1 %vm383_vm0, %v350_v50  ;;  %2632 = vmatpush3.msra.mxu1 %v1092_v49  ;;  %v1637_v50 = vld [vmem:[%s3736_s5 + $0x60] sm:$0xff] }
  0x40   : > { %2533 = vmatmul.mubr.msk.f32.gmra.mxu0 %vm383_vm0, %v319_v51  ;;  %2633 = vmatprep.subr.mxu1 %v1091_v52 }
  0x41   : > { %2535 = vmatprep.mubr.msk.f32.mxu0 %vm383_vm0, %v320_v53  ;;  %2634 = vmatpush3.msra.mxu1 %v1091_v52 }
  0x42   : > { %2581 = vmatmul.mubr.msk.f32.gmra.mxu1 %vm383_vm0, %v351_v54  ;;  %2635 = vmatprep.subr.mxu1 %v1090_v22 }
  0x43   : > { %2583 = vmatprep.mubr.msk.f32.mxu1 %vm383_vm0, %v352_v55  ;;  %2636 = vmatpush3.msra.mxu1 %v1090_v22 }
  0x44   : > { %2536 = vmatmul.mubr.msk.f32.gmra.mxu0 %vm383_vm0, %v321_v56  ;;  %2637 = vmatprep.subr.mxu1 %v1089_v23  ;;  %v1636_v56 = vld [vmem:[%s3736_s5 + $0x58] sm:$0xff] }
  0x45   : > { %2538 = vmatprep.mubr.msk.f32.mxu0 %vm383_vm0, %v322_v57  ;;  %2638 = vmatpush3.msra.mxu1 %v1089_v23 }
  0x46   : > { %2584 = vmatmul.mubr.msk.f32.gmra.mxu1 %vm383_vm0, %v353_v58  ;;  %2735 = vmatprep.subr.mxu0 %v1640_v37 }
  0x47   : > { %2586 = vmatprep.mubr.msk.f32.mxu1 %vm383_vm0, %v354_v59  ;;  %2736 = vmatpush3.msra.mxu0 %v1640_v37 }
  0x48   : > { %2539 = vmatmul.mubr.msk.f32.gmra.mxu0 %vm383_vm0, %v323_v60  ;;  %2737 = vmatprep.subr.mxu0 %v1639_v38 }
  0x49   : > { %2541 = vmatprep.mubr.msk.f32.mxu0 %vm383_vm0, %v324_v61  ;;  %2738 = vmatpush3.msra.mxu0 %v1639_v38  ;;  %v1635_v61 = vld [vmem:[%s3736_s5 + $0x50] sm:$0xff] }
  0x4a   : > { %2587 = vmatmul.mubr.msk.f32.gmra.mxu1 %vm383_vm0, %v355_v62  ;;  %2739 = vmatprep.subr.mxu0 %v1638_v45 }
  0x4b   : > { %2589 = vmatprep.mubr.msk.f32.mxu1 %vm383_vm0, %v356_v63  ;;  %2740 = vmatpush3.msra.mxu0 %v1638_v45 }
  0x4c   : > { %2542 = vmatmul.mubr.msk.f32.gmra.mxu0 %vm383_vm0, %v325_v0  ;;  %2741 = vmatprep.subr.mxu0 %v1637_v50 }
  0x4d   : > { %2544 = vmatprep.mubr.msk.f32.mxu0 %vm383_vm0, %v326_v1  ;;  %2742 = vmatpush3.msra.mxu0 %v1637_v50 }
  0x4e   : > { %2590 = vmatmul.mubr.msk.f32.gmra.mxu1 %vm383_vm0, %v357_v2  ;;  %2743 = vmatprep.subr.mxu0 %v1636_v56 }
  0x4f   : > { %2592 = vmatprep.mubr.msk.f32.mxu1 %vm383_vm0, %v358_v3  ;;  %2744 = vmatpush3.msra.mxu0 %v1636_v56  ;;  %v1634_v3 = vld [vmem:[%s3736_s5 + $0x48] sm:$0xff] }
  0x50   : > { %2545 = vmatmul.mubr.msk.f32.gmra.mxu0 %vm383_vm0, %v327_v4  ;;  %2745 = vmatprep.subr.mxu0 %v1635_v61 }
  0x51   : > { %2547 = vmatprep.mubr.msk.f32.mxu0 %vm383_vm0, %v328_v5  ;;  %2746 = vmatpush3.msra.mxu0 %v1635_v61 }
  0x52   : > { %2593 = vmatmul.mubr.msk.f32.gmra.mxu1 %vm383_vm0, %v359_v6  ;;  %2747 = vmatprep.subr.mxu0 %v1634_v3 }
  0x53   : > { %2595 = vmatprep.mubr.msk.f32.mxu1 %vm383_vm0, %v360_v7  ;;  %2748 = vmatpush3.msra.mxu0 %v1634_v3 }
  0x54   : > { %2548 = vmatmul.mubr.msk.f32.gmra.mxu0 %vm383_vm0, %v329_v8  ;;  %v1633_v8 = vld [vmem:[%s3736_s5 + $0x40] sm:$0xff] }
  0x55   : > { %2550 = vmatprep.mubr.msk.f32.mxu0 %vm383_vm0, %v330_v9  ;;  %2749 = vmatprep.subr.mxu0 %v1633_v8 }
  0x56   : > { %2596 = vmatmul.mubr.msk.f32.gmra.mxu1 %vm383_vm0, %v361_v10  ;;  %2750 = vmatpush3.msra.mxu0 %v1633_v8 }
  0x57   : > { %2598 = vmatprep.mubr.msk.f32.mxu1 %vm383_vm0, %v362_v11 }
  0x58   : > { %2551 = vmatmul.mubr.msk.f32.gmra.mxu0 %vm383_vm0, %v331_v12 }
  0x59   : > { %2553 = vmatprep.mubr.msk.f32.mxu0 %vm383_vm0, %v332_v13 }
  0x5a   : > { %2599 = vmatmul.mubr.msk.f32.gmra.mxu1 %vm383_vm0, %v363_v14  ;;  %v1632_v14 = vld [vmem:[%s3736_s5 + $0x38] sm:$0xff] }
  0x5b   : > { %2601 = vmatprep.mubr.msk.f32.mxu1 %vm383_vm0, %v364_v15  ;;  %2751 = vmatprep.subr.mxu0 %v1632_v14 }
  0x5c   : > { %2554 = vmatmul.mubr.msk.f32.gmra.mxu0 %vm383_vm0, %v333_v16 }
  0x5d   : > { %2556 = vmatprep.mubr.msk.f32.mxu0 %vm383_vm0, %v334_v17  ;;  %2752 = vmatpush3.msra.mxu0 %v1632_v14 }
  0x5e   : > { %2602 = vmatmul.mubr.msk.f32.gmra.mxu1 %vm383_vm0, %v365_v18 }
  0x5f   : > { %2604 = vmatprep.mubr.msk.f32.mxu1 %vm383_vm0, %v366_v19  ;;  %v1631_v19 = vld [vmem:[%s3736_s5 + $0x30] sm:$0xff] }
  0x60   : > { %2557 = vmatmul.mubr.msk.f32.gmra.mxu0 %vm383_vm0, %v335_v20  ;;  %2753 = vmatprep.subr.mxu0 %v1631_v19 }
  0x61   : > { %2754 = vmatpush3.msra.mxu0 %v1631_v19 }
  0x62   : > { %2605 = vmatmul.mubr.msk.f32.gmra.mxu1 %vm383_vm0, %v367_v21 }
  0xe4   : > { %v2513_v25 = vpop.f32.mrf.mxu0 }
  0xe5   : > { %v648_v26 = vadd.f32 %v2513_v25, %v3285_v24 }
  0xe6   : > { %v642_v27 = vpop.f32.mrf.mxu0  ;;  %v3288_v28 = vpop.f32.mrf.mxu1 }
  0xe7   : > { %v643_v29 = vadd.f32 %v3285_v24, %v642_v27  ;;  %v962_v30 = vmul.f32 0.01, %v648_v26 }
  0xe8   : > { %v2516_v31 = vpop.f32.mrf.mxu0  ;;  %v3291_v32 = vpop.f32.mrf.mxu1 }
  0xe9   : > { %v961_v33 = vmul.f32 0.01, %v643_v29  ;;  %v658_v34 = vadd.f32 %v2516_v31, %v3285_v24  ;;  %v1026_v41 = vmax.f32 %v648_v26, %v962_v30  ;;  %v1630_v26 = vld [vmem:[%s3736_s5 + $0x28] sm:$0xff] }
  0xea   : > { %v652_v35 = vpop.f32.mrf.mxu0  ;;  %v3294_v36 = vpop.f32.mrf.mxu1  ;;  %2755 = vmatprep.subr.mxu0 %v1630_v26 }
  0xeb   : > { %v1025_v39 = vmax.f32 %v643_v29, %v961_v33  ;;  %v653_v40 = vadd.f32 %v3285_v24, %v652_v35  ;;  %v964_v42 = vmul.f32 0.01, %v658_v34  ;;  %v1629_v33 = vld [vmem:[%s3736_s5 + $0x20] sm:$0xff]  ;;  %2756 = vmatpush3.msra.mxu0 %v1630_v26 }
  0xec   : > { %v2519_v43 = vpop.f32.mrf.mxu0  ;;  %v3303_v44 = vpop.f32.mrf.mxu1  ;;  %2757 = vmatprep.subr.mxu0 %v1629_v33 }
  0xed   : > { %v963_v46 = vmul.f32 0.01, %v653_v40  ;;  %v668_v47 = vadd.f32 %v2519_v43, %v3285_v24  ;;  %2639 = vmatprep.mubr.f32.mxu1 %v1025_v39  ;;  %v1028_v53 = vmax.f32 %v658_v34, %v964_v42  ;;  %2758 = vmatpush3.msra.mxu0 %v1629_v33 }
  0xee   : > { %v662_v48 = vpop.f32.mrf.mxu0  ;;  %2640 = vmatmul.mubr.f32.vlgmr.msra.gmra.mxu1 %v1026_v41  ;;  %v3309_v49 = vpop.f32.mrf.mxu1 }
  0xef   : > { %v1027_v51 = vmax.f32 %v653_v40, %v963_v46  ;;  %v663_v52 = vadd.f32 %v3285_v24, %v662_v48  ;;  %v966_v54 = vmul.f32 0.01, %v668_v47  ;;  %v1628_v40 = vld [vmem:[%s3736_s5 + $0x18] sm:$0xff]  ;;  %v1627_v46 = vld [vmem:[%s3736_s5 + $0x10] sm:$0xff] }
  0xf0   : > { %v2522_v55 = vpop.f32.mrf.mxu0  ;;  %v3319_v60 = vpop.f32.mrf.mxu1  ;;  %2759 = vmatprep.subr.mxu0 %v1628_v40 }
  0xf1   : > { %v965_v57 = vmul.f32 0.01, %v663_v52  ;;  %v678_v58 = vadd.f32 %v2522_v55, %v3285_v24  ;;  %2642 = vmatprep.mubr.f32.mxu1 %v1027_v51  ;;  %v1030_v0 = vmax.f32 %v668_v47, %v966_v54  ;;  %2760 = vmatpush3.msra.mxu0 %v1628_v40 }
  0xf2   : > { %v672_v59 = vpop.f32.mrf.mxu0  ;;  %2643 = vmatmul.mubr.f32.gmra.mxu1 %v1028_v53  ;;  %v3329_v7 = vpop.f32.mrf.mxu1  ;;  %2761 = vmatprep.subr.mxu0 %v1627_v46 }
  0xf3   : > { %v1029_v62 = vmax.f32 %v663_v52, %v965_v57  ;;  %v673_v63 = vadd.f32 %v3285_v24, %v672_v59  ;;  %v968_v1 = vmul.f32 0.01, %v678_v58  ;;  %2762 = vmatpush3.msra.mxu0 %v1627_v46 }
  0xf4   : > { %v2525_v2 = vpop.f32.mrf.mxu0  ;;  %v3339_v18 = vpop.f32.mrf.mxu1 }
  0xf5   : > { %v967_v4 = vmul.f32 0.01, %v673_v63  ;;  %v688_v5 = vadd.f32 %v2525_v2, %v3285_v24  ;;  %2645 = vmatprep.mubr.f32.mxu1 %v1029_v62  ;;  %v1032_v11 = vmax.f32 %v678_v58, %v968_v1 }
  0xf6   : > { %v682_v6 = vpop.f32.mrf.mxu0  ;;  %2646 = vmatmul.mubr.f32.gmra.mxu1 %v1030_v0  ;;  %v3349_v31 = vpop.f32.mrf.mxu1 }
  0xf7   : > { %v1031_v9 = vmax.f32 %v673_v63, %v967_v4  ;;  %v683_v10 = vadd.f32 %v3285_v24, %v682_v6  ;;  %v970_v12 = vmul.f32 0.01, %v688_v5 }
  0xf8   : > { %v2528_v13 = vpop.f32.mrf.mxu0  ;;  %v3359_v45 = vpop.f32.mrf.mxu1 }
  0xf9   : > { %v969_v15 = vmul.f32 0.01, %v683_v10  ;;  %v698_v16 = vadd.f32 %v2528_v13, %v3285_v24  ;;  %2648 = vmatprep.mubr.f32.mxu1 %v1031_v9  ;;  %v1034_v22 = vmax.f32 %v688_v5, %v970_v12 }
  0xfa   : > { %v692_v17 = vpop.f32.mrf.mxu0  ;;  %2649 = vmatmul.mubr.f32.gmra.mxu1 %v1032_v11  ;;  %v3366_v56 = vpop.f32.mrf.mxu1 }
  0xfb   : > { %v1033_v20 = vmax.f32 %v683_v10, %v969_v15  ;;  %v693_v21 = vadd.f32 %v3285_v24, %v692_v17  ;;  %v972_v23 = vmul.f32 0.01, %v698_v16 }
  0xfc   : > { %v2531_v25 = vpop.f32.mrf.mxu0  ;;  %v3370_v2 = vpop.f32.mrf.mxu1 }
  0xfd   : > { %v971_v27 = vmul.f32 0.01, %v693_v21  ;;  %v708_v29 = vadd.f32 %v2531_v25, %v3285_v24  ;;  %2651 = vmatprep.mubr.f32.mxu1 %v1033_v20  ;;  %v1036_v37 = vmax.f32 %v698_v16, %v972_v23 }
  0xfe   : > { %v702_v30 = vpop.f32.mrf.mxu0  ;;  %2652 = vmatmul.mubr.f32.gmra.mxu1 %v1034_v22  ;;  %v3374_v12 = vpop.f32.mrf.mxu1 }
  0xff   : > { %v1035_v34 = vmax.f32 %v693_v21, %v971_v27  ;;  %v703_v35 = vadd.f32 %v3285_v24, %v702_v30  ;;  %v974_v38 = vmul.f32 0.01, %v708_v29 }
 0x100   : > { %v2534_v39 = vpop.f32.mrf.mxu0  ;;  %v3378_v22 = vpop.f32.mrf.mxu1 }
 0x101   : > { %v973_v41 = vmul.f32 0.01, %v703_v35  ;;  %v718_v42 = vadd.f32 %v2534_v39, %v3285_v24  ;;  %2654 = vmatprep.mubr.f32.mxu1 %v1035_v34  ;;  %v1038_v50 = vmax.f32 %v708_v29, %v974_v38 }
 0x102   : > { %v712_v43 = vpop.f32.mrf.mxu0  ;;  %2655 = vmatmul.mubr.f32.gmra.mxu1 %v1036_v37 }
 0x103   : > { %v1037_v47 = vmax.f32 %v703_v35, %v973_v41  ;;  %v713_v48 = vadd.f32 %v3285_v24, %v712_v43  ;;  %v976_v51 = vmul.f32 0.01, %v718_v42  ;;  %v3382_v35 = vpop.f32.mrf.mxu1 }
 0x104   : > { %v2537_v52 = vpop.f32.mrf.mxu0 }
 0x105   : > { %v975_v53 = vmul.f32 0.01, %v713_v48  ;;  %v728_v54 = vadd.f32 %v2537_v52, %v3285_v24  ;;  %2657 = vmatprep.mubr.f32.mxu1 %v1037_v47  ;;  %v1040_v59 = vmax.f32 %v718_v42, %v976_v51  ;;  %v3386_v47 = vpop.f32.mrf.mxu1 }
 0x106   : > { %v722_v55 = vpop.f32.mrf.mxu0  ;;  %2658 = vmatmul.mubr.f32.gmra.mxu1 %v1038_v50 }
 0x107   : > { %v1039_v57 = vmax.f32 %v713_v48, %v975_v53  ;;  %v723_v58 = vadd.f32 %v3285_v24, %v722_v55  ;;  %v978_v61 = vmul.f32 0.01, %v728_v54 }
 0x108   : > { %v2540_v62 = vpop.f32.mrf.mxu0 }
 0x109   : > { %v977_v63 = vmul.f32 0.01, %v723_v58  ;;  %v738_v0 = vadd.f32 %v2540_v62, %v3285_v24  ;;  %2660 = vmatprep.mubr.f32.mxu1 %v1039_v57  ;;  %v1042_v5 = vmax.f32 %v728_v54, %v978_v61 }
 0x10a   : > { %v732_v1 = vpop.f32.mrf.mxu0  ;;  %2661 = vmatmul.mubr.f32.gmra.mxu1 %v1040_v59 }
 0x10b   : > { %v1041_v3 = vmax.f32 %v723_v58, %v977_v63  ;;  %v733_v4 = vadd.f32 %v3285_v24, %v732_v1  ;;  %v980_v6 = vmul.f32 0.01, %v738_v0  ;;  %v3390_v58 = vpop.f32.mrf.mxu1 }
 0x10c   : > { %v2543_v8 = vpop.f32.mrf.mxu0 }
 0x10d   : > { %v979_v9 = vmul.f32 0.01, %v733_v4  ;;  %v748_v10 = vadd.f32 %v2543_v8, %v3285_v24  ;;  %2663 = vmatprep.mubr.f32.mxu1 %v1041_v3  ;;  %v1044_v15 = vmax.f32 %v738_v0, %v980_v6  ;;  %v3396_v6 = vpop.f32.mrf.mxu1 }
 0x10e   : > { %v742_v11 = vpop.f32.mrf.mxu0  ;;  %2664 = vmatmul.mubr.f32.gmra.mxu1 %v1042_v5 }
 0x10f   : > { %v1043_v13 = vmax.f32 %v733_v4, %v979_v9  ;;  %v743_v14 = vadd.f32 %v3285_v24, %v742_v11  ;;  %v982_v16 = vmul.f32 0.01, %v748_v10  ;;  %v803_v4 = vadd.f32 %v3285_v24, %v3291_v32  ;;  %v3403_v32 = vpop.f32.mrf.mxu1 }
 0x110   : > { %v2546_v17 = vpop.f32.mrf.mxu0 }
 0x111   : > { %v981_v19 = vmul.f32 0.01, %v743_v14  ;;  %v758_v20 = vadd.f32 %v2546_v17, %v3285_v24  ;;  %2666 = vmatprep.mubr.f32.mxu1 %v1043_v13  ;;  %v1046_v26 = vmax.f32 %v748_v10, %v982_v16  ;;  %v808_v13 = vadd.f32 %v3288_v28, %v3285_v24 }
 0x112   : > { %v752_v21 = vpop.f32.mrf.mxu0  ;;  %2667 = vmatmul.mubr.f32.gmra.mxu1 %v1044_v15  ;;  %v993_v15 = vmul.f32 0.01, %v803_v4  ;;  %v813_v16 = vadd.f32 %v3285_v24, %v3303_v44  ;;  %v823_v28 = vadd.f32 %v3285_v24, %v3319_v60 }
 0x113   : > { %v1045_v23 = vmax.f32 %v743_v14, %v981_v19  ;;  %v753_v25 = vadd.f32 %v3285_v24, %v752_v21  ;;  %v984_v27 = vmul.f32 0.01, %v758_v20  ;;  %v818_v21 = vadd.f32 %v3294_v36, %v3285_v24 }
 0x114   : > { %v2549_v29 = vpop.f32.mrf.mxu0  ;;  %v833_v36 = vadd.f32 %v3285_v24, %v3339_v18  ;;  %v1626_v18 = vld [vmem:[%s3736_s5 + $0x8] sm:$0xff] }
 0x115   : > { %v983_v30 = vmul.f32 0.01, %v753_v25  ;;  %v768_v33 = vadd.f32 %v2549_v29, %v3285_v24  ;;  %2669 = vmatprep.mubr.f32.mxu1 %v1045_v23  ;;  %v1048_v39 = vmax.f32 %v758_v20, %v984_v27  ;;  %v994_v20 = vmul.f32 0.01, %v808_v13  ;;  %2763 = vmatprep.subr.mxu0 %v1626_v18 }
 0x116   : > { %v762_v34 = vpop.f32.mrf.mxu0  ;;  %2670 = vmatmul.mubr.f32.gmra.mxu1 %v1046_v26  ;;  %v1057_v23 = vmax.f32 %v803_v4, %v993_v15  ;;  %v3409_v26 = vpop.f32.mrf.mxu1  ;;  %v996_v27 = vmul.f32 0.01, %v818_v21  ;;  %v828_v29 = vadd.f32 %v3309_v49, %v3285_v24  ;;  %2764 = vmatpush3.msra.mxu0 %v1626_v18 }
 0x117   : > { %v1047_v37 = vmax.f32 %v753_v25, %v983_v30  ;;  %v763_v38 = vadd.f32 %v3285_v24, %v762_v34  ;;  %v986_v40 = vmul.f32 0.01, %v768_v33  ;;  %v995_v25 = vmul.f32 0.01, %v813_v16 }
 0x118   : > { %v2552_v41 = vpop.f32.mrf.mxu0  ;;  %v1058_v44 = vmax.f32 %v808_v13, %v994_v20  ;;  %v3415_v34 = vpop.f32.mrf.mxu1  ;;  %v998_v60 = vmul.f32 0.01, %v828_v29  ;;  %v893_v15 = vadd.f32 %v3285_v24, %v3409_v26 }
 0x119   : > { %v985_v42 = vmul.f32 0.01, %v763_v38  ;;  %v778_v43 = vadd.f32 %v2552_v41, %v3285_v24  ;;  %2672 = vmatprep.mubr.f32.mxu1 %v1047_v37  ;;  %v1050_v51 = vmax.f32 %v768_v33, %v986_v40  ;;  %v1059_v30 = vmax.f32 %v813_v16, %v995_v25 }
 0x11a   : > { %v772_v46 = vpop.f32.mrf.mxu0  ;;  %2673 = vmatmul.mubr.f32.gmra.mxu1 %v1048_v39  ;;  %v997_v33 = vmul.f32 0.01, %v823_v28  ;;  %v1060_v37 = vmax.f32 %v818_v21, %v996_v27  ;;  %v999_v40 = vmul.f32 0.01, %v833_v36  ;;  %v843_v41 = vadd.f32 %v3285_v24, %v3359_v45  ;;  %v902_v49 = vpop.f32.mrf.mxu1  ;;  %v1625_v45 = vld [vmem:[%s3736_s5] sm:$0xff] }
 0x11b   : > { %v1049_v48 = vmax.f32 %v763_v38, %v985_v42  ;;  %v773_v50 = vadd.f32 %v3285_v24, %v772_v46  ;;  %v988_v52 = vmul.f32 0.01, %v778_v43  ;;  %v838_v38 = vadd.f32 %v3329_v7, %v3285_v24  ;;  %2765 = vmatprep.subr.mxu0 %v1625_v45 }
 0x11c   : > { %v2555_v53 = vpop.f32.mrf.mxu0  ;;  %v1061_v39 = vmax.f32 %v823_v28, %v997_v33  ;;  %v1062_v42 = vmax.f32 %v828_v29, %v998_v60  ;;  %v848_v46 = vadd.f32 %v3349_v31, %v3285_v24  ;;  %v1001_v7 = vmul.f32 0.01, %v843_v41  ;;  %2766 = vmatpush3.msra.mxu0 %v1625_v45 }
 0x11d   : > { %v987_v54 = vmul.f32 0.01, %v773_v50  ;;  %v788_v55 = vadd.f32 %v2555_v53, %v3285_v24  ;;  %2675 = vmatprep.mubr.f32.mxu1 %v1049_v48  ;;  %v1052_v62 = vmax.f32 %v778_v43, %v988_v52  ;;  %v1000_v43 = vmul.f32 0.01, %v838_v38 }
 0x11e   : > { %v782_v57 = vpop.f32.mrf.mxu0  ;;  %2676 = vmatmul.mubr.f32.gmra.mxu1 %v1050_v51  ;;  %v1063_v48 = vmax.f32 %v833_v36, %v999_v40  ;;  %v2594_v51 = vpop.f32.mrf.mxu1  ;;  %v1002_v53 = vmul.f32 0.01, %v848_v46  ;;  %v858_v31 = vadd.f32 %v3366_v56, %v3285_v24  ;;  %v1011_v20 = vmul.f32 0.01, %v893_v15 }
 0x11f   : > { %v1051_v59 = vmax.f32 %v773_v50, %v987_v54  ;;  %v783_v61 = vadd.f32 %v3285_v24, %v782_v57  ;;  %v990_v63 = vmul.f32 0.01, %v788_v55  ;;  %v853_v50 = vadd.f32 %v3285_v24, %v3370_v2 }
 0x120   : > { %v2558_v0 = vpop.f32.mrf.mxu0  ;;  %v1064_v52 = vmax.f32 %v838_v38, %v1000_v43  ;;  %v1065_v54 = vmax.f32 %v843_v41, %v1001_v7  ;;  %v863_v2 = vadd.f32 %v3285_v24, %v3378_v22  ;;  %v912_v57 = vpop.f32.mrf.mxu1  ;;  %v878_v22 = vadd.f32 %v3382_v35, %v3285_v24 }
 0x121   : > { %v989_v1 = vmul.f32 0.01, %v783_v61  ;;  %v798_v3 = vadd.f32 %v2558_v0, %v3285_v24  ;;  %2678 = vmatprep.mubr.f32.mxu1 %v1051_v59  ;;  %v1054_v10 = vmax.f32 %v788_v55, %v990_v63  ;;  %v1003_v55 = vmul.f32 0.01, %v853_v50 }
 0x122   : > { %v792_v5 = vpop.f32.mrf.mxu0  ;;  %2679 = vmatmul.mubr.f32.gmra.mxu1 %v1052_v62  ;;  %v1066_v59 = vmax.f32 %v848_v46, %v1002_v53  ;;  %v868_v62 = vadd.f32 %v3374_v12, %v3285_v24  ;;  %v1005_v0 = vmul.f32 0.01, %v863_v2  ;;  %v2597_v56 = vpop.f32.mrf.mxu1  ;;  %v903_v21 = vadd.f32 %v3285_v24, %v902_v49 }
 0x123   : > { %v1053_v8 = vmax.f32 %v783_v61, %v989_v1  ;;  %v793_v9 = vadd.f32 %v3285_v24, %v792_v5  ;;  %v992_v11 = vmul.f32 0.01, %v798_v3  ;;  %v1004_v61 = vmul.f32 0.01, %v858_v31 }
 0x124   : > { %v1067_v63 = vmax.f32 %v853_v50, %v1003_v55  ;;  %v873_v1 = vadd.f32 %v3285_v24, %v3386_v47  ;;  %v1006_v4 = vmul.f32 0.01, %v868_v62  ;;  %v1069_v5 = vmax.f32 %v863_v2, %v1005_v0  ;;  %v922_v12 = vpop.f32.mrf.mxu1 }
 0x125   : > { %v991_v14 = vmul.f32 0.01, %v793_v9  ;;  %2681 = vmatprep.mubr.f32.mxu1 %v1053_v8  ;;  %v1056_v19 = vmax.f32 %v798_v3, %v992_v11  ;;  %v1068_v3 = vmax.f32 %v858_v31, %v1004_v61  ;;  %v1008_v11 = vmul.f32 0.01, %v878_v22 }
 0x126   : > { %2682 = vmatmul.mubr.f32.gmra.mxu1 %v1054_v10  ;;  %v1007_v8 = vmul.f32 0.01, %v873_v1  ;;  %v1070_v10 = vmax.f32 %v868_v62, %v1006_v4  ;;  %v888_v47 = vadd.f32 %v3390_v58, %v3285_v24  ;;  %v2600_v35 = vpop.f32.mrf.mxu1  ;;  %v908_v28 = vadd.f32 %v3415_v34, %v3285_v24  ;;  %v3465_v4 = vld [vmem:[%s3735_s4] ss:$0 sm:$0xff] }
 0x127   : > { %v1055_v17 = vmax.f32 %v793_v9, %v991_v14  ;;  %v883_v9 = vadd.f32 %v3285_v24, %v3396_v6  ;;  %v1072_v16 = vmax.f32 %v878_v22, %v1008_v11  ;;  %v898_v6 = vadd.f32 %v3403_v32, %v3285_v24 }
 0x128   : > { %v1071_v13 = vmax.f32 %v873_v1, %v1007_v8  ;;  %v1075_v26 = vmax.f32 %v893_v15, %v1011_v20  ;;  %v913_v27 = vadd.f32 %v3285_v24, %v912_v57  ;;  %v918_v33 = vadd.f32 %v2594_v51, %v3285_v24 }
 0x129   : > { %2684 = vmatprep.mubr.f32.mxu1 %v1055_v17  ;;  %v1009_v14 = vmul.f32 0.01, %v883_v9  ;;  %v1010_v17 = vmul.f32 0.01, %v888_v47  ;;  %v1012_v25 = vmul.f32 0.01, %v898_v6  ;;  %v923_v60 = vadd.f32 %v3285_v24, %v922_v12 }
 0x12a   : > { %2685 = vmatmul.mubr.f32.gmra.mxu1 %v1056_v19  ;;  %v1016_v34 = vmul.f32 0.01, %v918_v33  ;;  %v928_v40 = vadd.f32 %v2597_v56, %v3285_v24 }
 0x12b   : > { %2687 = vmatprep.mubr.f32.mxu1 %v1057_v23  ;;  %v1073_v19 = vmax.f32 %v883_v9, %v1009_v14  ;;  %v932_v23 = vpop.f32.mrf.mxu1  ;;  %v1074_v58 = vmax.f32 %v888_v47, %v1010_v17  ;;  %v1076_v32 = vmax.f32 %v898_v6, %v1012_v25  ;;  %v1017_v49 = vmul.f32 0.01, %v923_v60 }
 0x12c   : > { %v933_v18 = vadd.f32 %v3285_v24, %v932_v23  ;;  %v1080_v43 = vmax.f32 %v918_v33, %v1016_v34  ;;  %v1018_v46 = vmul.f32 0.01, %v928_v40 }
 0x12d   : > { %v2603_v29 = vpop.f32.mrf.mxu1  ;;  %v1081_v7 = vmax.f32 %v923_v60, %v1017_v49 }
 0x12e   : > { %2688 = vmatmul.mubr.f32.gmra.mxu1 %v1058_v44  ;;  %v1013_v44 = vmul.f32 0.01, %v903_v21  ;;  %v1019_v50 = vmul.f32 0.01, %v933_v18  ;;  %v948_v31 = vadd.f32 %v2603_v29, %v3285_v24 }
 0x12f   : > { %2690 = vmatprep.mubr.f32.mxu1 %v1059_v30  ;;  %v1014_v30 = vmul.f32 0.01, %v908_v28  ;;  %v942_v38 = vpop.f32.mrf.mxu1 }
 0x130   : > { %v1077_v36 = vmax.f32 %v903_v21, %v1013_v44  ;;  %v943_v45 = vadd.f32 %v3285_v24, %v942_v38 }
 0x132   : > { %2691 = vmatmul.mubr.f32.gmra.mxu1 %v1060_v37  ;;  %v1015_v37 = vmul.f32 0.01, %v913_v27  ;;  %v1021_v55 = vmul.f32 0.01, %v943_v45 }
 0x133   : > { %2693 = vmatprep.mubr.f32.mxu1 %v1061_v39  ;;  %v1078_v39 = vmax.f32 %v908_v28, %v1014_v30 }
 0x134   : > { %v1079_v41 = vmax.f32 %v913_v27, %v1015_v37  ;;  %v1085_v62 = vmax.f32 %v943_v45, %v1021_v55 }
 0x136   : > { %2694 = vmatmul.mubr.f32.gmra.mxu1 %v1062_v42  ;;  %v2606_v42 = vpop.f32.mrf.mxu1 }
 0x137   : > { %2696 = vmatprep.mubr.f32.mxu1 %v1063_v48  ;;  %v938_v48 = vadd.f32 %v2600_v35, %v3285_v24  ;;  %v958_v61 = vadd.f32 %v2606_v42, %v3285_v24 }
 0x138   : > { %v952_v51 = vpop.f32.mrf.mxu1 }
 0x139   : > { %v1020_v53 = vmul.f32 0.01, %v938_v48  ;;  %v953_v2 = vadd.f32 %v3285_v24, %v952_v51  ;;  %v1024_v1 = vmul.f32 0.01, %v958_v61 }
 0x13a   : > { %2697 = vmatmul.mubr.f32.gmra.mxu1 %v1064_v52  ;;  %v1082_v52 = vmax.f32 %v928_v40, %v1018_v46 }
 0x13b   : > { %2699 = vmatprep.mubr.f32.mxu1 %v1065_v54  ;;  %v1083_v54 = vmax.f32 %v933_v18, %v1019_v50  ;;  %v1084_v57 = vmax.f32 %v938_v48, %v1020_v53 }
 0x13e   : > { %2700 = vmatmul.mubr.f32.gmra.mxu1 %v1066_v59  ;;  %v1022_v59 = vmul.f32 0.01, %v948_v31 }
 0x13f   : > { %2702 = vmatprep.mubr.f32.mxu1 %v1067_v63  ;;  %v1023_v63 = vmul.f32 0.01, %v953_v2 }
 0x140   : > { %v1086_v0 = vmax.f32 %v948_v31, %v1022_v59 }
 0x141   : > { %v1087_v56 = vmax.f32 %v953_v2, %v1023_v63 }
 0x142   : > { %2703 = vmatmul.mubr.f32.gmra.mxu1 %v1068_v3  ;;  %v1088_v3 = vmax.f32 %v958_v61, %v1024_v1 }
 0x143   : > { %2705 = vmatprep.mubr.f32.mxu1 %v1069_v5 }
 0x146   : > { %2706 = vmatmul.mubr.f32.gmra.mxu1 %v1070_v10 }
 0x147   : > { %2708 = vmatprep.mubr.f32.mxu1 %v1071_v13 }
 0x14a   : > { %2709 = vmatmul.mubr.f32.gmra.mxu1 %v1072_v16 }
 0x14b   : > { %2711 = vmatprep.mubr.f32.mxu1 %v1073_v19 }
 0x14e   : > { %2712 = vmatmul.mubr.f32.gmra.mxu1 %v1074_v58 }
 0x14f   : > { %2714 = vmatprep.mubr.f32.mxu1 %v1075_v26 }
 0x152   : > { %2715 = vmatmul.mubr.f32.gmra.mxu1 %v1076_v32 }
 0x153   : > { %2717 = vmatprep.mubr.f32.mxu1 %v1077_v36 }
 0x156   : > { %2718 = vmatmul.mubr.f32.gmra.mxu1 %v1078_v39 }
 0x157   : > { %2720 = vmatprep.mubr.f32.mxu1 %v1079_v41 }
 0x15a   : > { %2721 = vmatmul.mubr.f32.gmra.mxu1 %v1080_v43 }
 0x15b   : > { %2723 = vmatprep.mubr.f32.mxu1 %v1081_v7 }
 0x15e   : > { %2724 = vmatmul.mubr.f32.gmra.mxu1 %v1082_v52 }
 0x15f   : > { %2726 = vmatprep.mubr.f32.mxu1 %v1083_v54 }
 0x162   : > { %2727 = vmatmul.mubr.f32.gmra.mxu1 %v1084_v57 }
 0x163   : > { %2729 = vmatprep.mubr.f32.mxu1 %v1085_v62 }
 0x166   : > { %2730 = vmatmul.mubr.f32.gmra.mxu1 %v1086_v0 }
 0x167   : > { %2732 = vmatprep.mubr.f32.mxu1 %v1087_v56 }
 0x16a   : > { %2733 = vmatmul.mubr.f32.gmra.mxu1 %v1088_v3 }
 0x1ae   : > { %v2641_v22 = vpop.f32.mrf.mxu1 }
 0x1af   : > { %v1184_v5 = vadd.f32 %v2641_v22, %v3465_v4 }
 0x1b0   : > { %v1178_v24 = vpop.f32.mrf.mxu1 }
 0x1b1   : > { %v1179_v8 = vadd.f32 %v3465_v4, %v1178_v24  ;;  %v1498_v9 = vmul.f32 0.01, %v1184_v5 }
 0x1b2   : > { %v2644_v12 = vpop.f32.mrf.mxu1 }
 0x1b3   : > { %v1497_v10 = vmul.f32 0.01, %v1179_v8  ;;  %v1194_v11 = vadd.f32 %v2644_v12, %v3465_v4  ;;  %v1562_v15 = vmax.f32 %v1184_v5, %v1498_v9 }
 0x1b4   : > { %v1188_v47 = vpop.f32.mrf.mxu1 }
 0x1b5   : > { %v1561_v13 = vmax.f32 %v1179_v8, %v1497_v10  ;;  %v1189_v14 = vadd.f32 %v3465_v4, %v1188_v47  ;;  %v1500_v35 = vmul.f32 0.01, %v1194_v11 }
 0x1b6   : > { %v2647_v16 = vpop.f32.mrf.mxu1 }
 0x1b7   : > { %v1499_v17 = vmul.f32 0.01, %v1189_v14  ;;  %v1204_v6 = vadd.f32 %v2647_v16, %v3465_v4  ;;  %2767 = vmatprep.mubr.f32.mxu0 %v1561_v13  ;;  %v1564_v23 = vmax.f32 %v1194_v11, %v1500_v35 }
 0x1b8   : > { %v1198_v19 = vpop.f32.mrf.mxu1  ;;  %2768 = vmatmul.mubr.f32.vlgmr.msra.gmra.mxu0 %v1562_v15 }
 0x1b9   : > { %v1563_v20 = vmax.f32 %v1189_v14, %v1499_v17  ;;  %v1199_v21 = vadd.f32 %v3465_v4, %v1198_v19  ;;  %v1502_v58 = vmul.f32 0.01, %v1204_v6 }
 0x1ba   : > { %v2650_v25 = vpop.f32.mrf.mxu1 }
 0x1bb   : > { %v1501_v28 = vmul.f32 0.01, %v1199_v21  ;;  %v1214_v26 = vadd.f32 %v2650_v25, %v3465_v4  ;;  %2770 = vmatprep.mubr.f32.mxu0 %v1563_v20  ;;  %v1566_v32 = vmax.f32 %v1204_v6, %v1502_v58 }
 0x1bc   : > { %v1208_v44 = vpop.f32.mrf.mxu1  ;;  %2771 = vmatmul.mubr.f32.gmra.mxu0 %v1564_v23 }
 0x1bd   : > { %v1565_v27 = vmax.f32 %v1199_v21, %v1501_v28  ;;  %v1209_v29 = vadd.f32 %v3465_v4, %v1208_v44  ;;  %v1504_v30 = vmul.f32 0.01, %v1214_v26 }
 0x1be   : > { %v2653_v33 = vpop.f32.mrf.mxu1 }
 0x1bf   : > { %v1503_v36 = vmul.f32 0.01, %v1209_v29  ;;  %v1224_v37 = vadd.f32 %v2653_v33, %v3465_v4  ;;  %2773 = vmatprep.mubr.f32.mxu0 %v1565_v27  ;;  %v1568_v34 = vmax.f32 %v1214_v26, %v1504_v30 }
 0x1c0   : > { %v1218_v60 = vpop.f32.mrf.mxu1  ;;  %2774 = vmatmul.mubr.f32.gmra.mxu0 %v1566_v32 }
 0x1c1   : > { %v1567_v38 = vmax.f32 %v1209_v29, %v1503_v36  ;;  %v1219_v39 = vadd.f32 %v3465_v4, %v1218_v60  ;;  %v1506_v40 = vmul.f32 0.01, %v1224_v37 }
 0x1c2   : > { %v2656_v41 = vpop.f32.mrf.mxu1 }
 0x1c3   : > { %v1505_v49 = vmul.f32 0.01, %v1219_v39  ;;  %v1234_v18 = vadd.f32 %v2656_v41, %v3465_v4  ;;  %2776 = vmatprep.mubr.f32.mxu0 %v1567_v38  ;;  %v1570_v48 = vmax.f32 %v1224_v37, %v1506_v40 }
 0x1c4   : > { %v1228_v42 = vpop.f32.mrf.mxu1  ;;  %2777 = vmatmul.mubr.f32.gmra.mxu0 %v1568_v34 }
 0x1c5   : > { %v1569_v43 = vmax.f32 %v1219_v39, %v1505_v49  ;;  %v1229_v46 = vadd.f32 %v3465_v4, %v1228_v42  ;;  %v1508_v7 = vmul.f32 0.01, %v1234_v18 }
 0x1c6   : > { %v2659_v50 = vpop.f32.mrf.mxu1 }
 0x1c7   : > { %v1507_v45 = vmul.f32 0.01, %v1229_v46  ;;  %v1244_v51 = vadd.f32 %v2659_v50, %v3465_v4  ;;  %2779 = vmatprep.mubr.f32.mxu0 %v1569_v43  ;;  %v1572_v54 = vmax.f32 %v1234_v18, %v1508_v7 }
 0x1c8   : > { %v1238_v52 = vpop.f32.mrf.mxu1  ;;  %2780 = vmatmul.mubr.f32.gmra.mxu0 %v1570_v48 }
 0x1c9   : > { %v1571_v53 = vmax.f32 %v1229_v46, %v1507_v45  ;;  %v1239_v31 = vadd.f32 %v3465_v4, %v1238_v52  ;;  %v1510_v55 = vmul.f32 0.01, %v1244_v51 }
 0x1ca   : > { %v2662_v2 = vpop.f32.mrf.mxu1 }
 0x1cb   : > { %v1509_v57 = vmul.f32 0.01, %v1239_v31  ;;  %v1254_v59 = vadd.f32 %v2662_v2, %v3465_v4  ;;  %2782 = vmatprep.mubr.f32.mxu0 %v1571_v53  ;;  %v1574_v0 = vmax.f32 %v1244_v51, %v1510_v55 }
 0x1cc   : > { %v1248_v61 = vpop.f32.mrf.mxu1  ;;  %2783 = vmatmul.mubr.f32.gmra.mxu0 %v1572_v54 }
 0x1cd   : > { %v1573_v62 = vmax.f32 %v1239_v31, %v1509_v57  ;;  %v1249_v63 = vadd.f32 %v3465_v4, %v1248_v61  ;;  %v1512_v1 = vmul.f32 0.01, %v1254_v59 }
 0x1ce   : > { %v2665_v56 = vpop.f32.mrf.mxu1 }
 0x1cf   : > { %v1511_v3 = vmul.f32 0.01, %v1249_v63  ;;  %v1264_v22 = vadd.f32 %v2665_v56, %v3465_v4  ;;  %2785 = vmatprep.mubr.f32.mxu0 %v1573_v62  ;;  %v1576_v9 = vmax.f32 %v1254_v59, %v1512_v1 }
 0x1d0   : > { %v1258_v5 = vpop.f32.mrf.mxu1  ;;  %2786 = vmatmul.mubr.f32.gmra.mxu0 %v1574_v0 }
 0x1d1   : > { %v1575_v24 = vmax.f32 %v1249_v63, %v1511_v3  ;;  %v1259_v8 = vadd.f32 %v3465_v4, %v1258_v5  ;;  %v1514_v12 = vmul.f32 0.01, %v1264_v22 }
 0x1d2   : > { %v2668_v10 = vpop.f32.mrf.mxu1 }
 0x1d3   : > { %v1513_v11 = vmul.f32 0.01, %v1259_v8  ;;  %v1274_v47 = vadd.f32 %v2668_v10, %v3465_v4  ;;  %2788 = vmatprep.mubr.f32.mxu0 %v1575_v24  ;;  %v1578_v35 = vmax.f32 %v1264_v22, %v1514_v12 }
 0x1d4   : > { %v1268_v13 = vpop.f32.mrf.mxu1  ;;  %2789 = vmatmul.mubr.f32.gmra.mxu0 %v1576_v9 }
 0x1d5   : > { %v1577_v14 = vmax.f32 %v1259_v8, %v1513_v11  ;;  %v1269_v15 = vadd.f32 %v3465_v4, %v1268_v13  ;;  %v1516_v16 = vmul.f32 0.01, %v1274_v47 }
 0x1d6   : > { %v2671_v17 = vpop.f32.mrf.mxu1 }
 0x1d7   : > { %v1515_v6 = vmul.f32 0.01, %v1269_v15  ;;  %v1284_v19 = vadd.f32 %v2671_v17, %v3465_v4  ;;  %2791 = vmatprep.mubr.f32.mxu0 %v1577_v14  ;;  %v1580_v58 = vmax.f32 %v1274_v47, %v1516_v16 }
 0x1d8   : > { %v1278_v20 = vpop.f32.mrf.mxu1  ;;  %2792 = vmatmul.mubr.f32.gmra.mxu0 %v1578_v35 }
 0x1d9   : > { %v1579_v21 = vmax.f32 %v1269_v15, %v1515_v6  ;;  %v1279_v23 = vadd.f32 %v3465_v4, %v1278_v20  ;;  %v1518_v25 = vmul.f32 0.01, %v1284_v19 }
 0x1da   : > { %v2674_v28 = vpop.f32.mrf.mxu1 }
 0x1db   : > { %v1517_v26 = vmul.f32 0.01, %v1279_v23  ;;  %v1294_v44 = vadd.f32 %v2674_v28, %v3465_v4  ;;  %2794 = vmatprep.mubr.f32.mxu0 %v1579_v21  ;;  %v1582_v30 = vmax.f32 %v1284_v19, %v1518_v25 }
 0x1dc   : > { %v1288_v27 = vpop.f32.mrf.mxu1  ;;  %2795 = vmatmul.mubr.f32.gmra.mxu0 %v1580_v58 }
 0x1dd   : > { %v1581_v29 = vmax.f32 %v1279_v23, %v1517_v26  ;;  %v1289_v32 = vadd.f32 %v3465_v4, %v1288_v27  ;;  %v1520_v33 = vmul.f32 0.01, %v1294_v44 }
 0x1de   : > { %v2677_v36 = vpop.f32.mrf.mxu1 }
 0x1df   : > { %v1519_v37 = vmul.f32 0.01, %v1289_v32  ;;  %v1304_v60 = vadd.f32 %v2677_v36, %v3465_v4  ;;  %2797 = vmatprep.mubr.f32.mxu0 %v1581_v29  ;;  %v1584_v40 = vmax.f32 %v1294_v44, %v1520_v33 }
 0x1e0   : > { %v1298_v38 = vpop.f32.mrf.mxu1  ;;  %2798 = vmatmul.mubr.f32.gmra.mxu0 %v1582_v30 }
 0x1e1   : > { %v1583_v39 = vmax.f32 %v1289_v32, %v1519_v37  ;;  %v1299_v34 = vadd.f32 %v3465_v4, %v1298_v38  ;;  %v1522_v41 = vmul.f32 0.01, %v1304_v60 }
 0x1e2   : > { %v2680_v49 = vpop.f32.mrf.mxu1 }
 0x1e3   : > { %v1521_v18 = vmul.f32 0.01, %v1299_v34  ;;  %v1314_v42 = vadd.f32 %v2680_v49, %v3465_v4  ;;  %2800 = vmatprep.mubr.f32.mxu0 %v1583_v39  ;;  %v1586_v7 = vmax.f32 %v1304_v60, %v1522_v41 }
 0x1e4   : > { %v1308_v43 = vpop.f32.mrf.mxu1  ;;  %2801 = vmatmul.mubr.f32.gmra.mxu0 %v1584_v40 }
 0x1e5   : > { %v1585_v46 = vmax.f32 %v1299_v34, %v1521_v18  ;;  %v1309_v48 = vadd.f32 %v3465_v4, %v1308_v43  ;;  %v1524_v50 = vmul.f32 0.01, %v1314_v42 }
 0x1e6   : > { %v2683_v45 = vpop.f32.mrf.mxu1 }
 0x1e7   : > { %v1523_v51 = vmul.f32 0.01, %v1309_v48  ;;  %v1324_v52 = vadd.f32 %v2683_v45, %v3465_v4  ;;  %2803 = vmatprep.mubr.f32.mxu0 %v1585_v46  ;;  %v1588_v55 = vmax.f32 %v1314_v42, %v1524_v50 }
 0x1e8   : > { %v1318_v53 = vpop.f32.mrf.mxu1  ;;  %2804 = vmatmul.mubr.f32.gmra.mxu0 %v1586_v7 }
 0x1e9   : > { %v1587_v31 = vmax.f32 %v1309_v48, %v1523_v51  ;;  %v1319_v54 = vadd.f32 %v3465_v4, %v1318_v53  ;;  %v1526_v2 = vmul.f32 0.01, %v1324_v52 }
 0x1ea   : > { %v2686_v57 = vpop.f32.mrf.mxu1 }
 0x1eb   : > { %v1525_v59 = vmul.f32 0.01, %v1319_v54  ;;  %v1334_v61 = vadd.f32 %v2686_v57, %v3465_v4  ;;  %2806 = vmatprep.mubr.f32.mxu0 %v1587_v31  ;;  %v1590_v1 = vmax.f32 %v1324_v52, %v1526_v2 }
 0x1ec   : > { %v1328_v62 = vpop.f32.mrf.mxu1  ;;  %2807 = vmatmul.mubr.f32.gmra.mxu0 %v1588_v55 }
 0x1ed   : > { %v1589_v63 = vmax.f32 %v1319_v54, %v1525_v59  ;;  %v1329_v0 = vadd.f32 %v3465_v4, %v1328_v62  ;;  %v1528_v56 = vmul.f32 0.01, %v1334_v61 }
 0x1ee   : > { %v2689_v3 = vpop.f32.mrf.mxu1 }
 0x1ef   : > { %v1527_v22 = vmul.f32 0.01, %v1329_v0  ;;  %v1344_v5 = vadd.f32 %v2689_v3, %v3465_v4  ;;  %2809 = vmatprep.mubr.f32.mxu0 %v1589_v63  ;;  %v1592_v12 = vmax.f32 %v1334_v61, %v1528_v56 }
 0x1f0   : > { %v1338_v24 = vpop.f32.mrf.mxu1  ;;  %2810 = vmatmul.mubr.f32.gmra.mxu0 %v1590_v1 }
 0x1f1   : > { %v1591_v8 = vmax.f32 %v1329_v0, %v1527_v22  ;;  %v1339_v9 = vadd.f32 %v3465_v4, %v1338_v24  ;;  %v1530_v10 = vmul.f32 0.01, %v1344_v5 }
 0x1f2   : > { %v2692_v11 = vpop.f32.mrf.mxu1 }
 0x1f3   : > { %v1529_v47 = vmul.f32 0.01, %v1339_v9  ;;  %v1354_v13 = vadd.f32 %v2692_v11, %v3465_v4  ;;  %2812 = vmatprep.mubr.f32.mxu0 %v1591_v8  ;;  %v1594_v16 = vmax.f32 %v1344_v5, %v1530_v10 }
 0x1f4   : > { %v1348_v14 = vpop.f32.mrf.mxu1  ;;  %2813 = vmatmul.mubr.f32.gmra.mxu0 %v1592_v12 }
 0x1f5   : > { %v1593_v15 = vmax.f32 %v1339_v9, %v1529_v47  ;;  %v1349_v35 = vadd.f32 %v3465_v4, %v1348_v14  ;;  %v1532_v17 = vmul.f32 0.01, %v1354_v13 }
 0x1f6   : > { %v2695_v6 = vpop.f32.mrf.mxu1 }
 0x1f7   : > { %v1531_v19 = vmul.f32 0.01, %v1349_v35  ;;  %v1364_v20 = vadd.f32 %v2695_v6, %v3465_v4  ;;  %2815 = vmatprep.mubr.f32.mxu0 %v1593_v15  ;;  %v1596_v25 = vmax.f32 %v1354_v13, %v1532_v17 }
 0x1f8   : > { %v1358_v21 = vpop.f32.mrf.mxu1  ;;  %2816 = vmatmul.mubr.f32.gmra.mxu0 %v1594_v16 }
 0x1f9   : > { %v1595_v23 = vmax.f32 %v1349_v35, %v1531_v19  ;;  %v1359_v58 = vadd.f32 %v3465_v4, %v1358_v21  ;;  %v1534_v28 = vmul.f32 0.01, %v1364_v20 }
 0x1fa   : > { %v2698_v26 = vpop.f32.mrf.mxu1 }
 0x1fb   : > { %v1533_v44 = vmul.f32 0.01, %v1359_v58  ;;  %v1374_v27 = vadd.f32 %v2698_v26, %v3465_v4  ;;  %2818 = vmatprep.mubr.f32.mxu0 %v1595_v23  ;;  %v1598_v33 = vmax.f32 %v1364_v20, %v1534_v28 }
 0x1fc   : > { %v1368_v29 = vpop.f32.mrf.mxu1  ;;  %2819 = vmatmul.mubr.f32.gmra.mxu0 %v1596_v25 }
 0x1fd   : > { %v1597_v32 = vmax.f32 %v1359_v58, %v1533_v44  ;;  %v1369_v30 = vadd.f32 %v3465_v4, %v1368_v29  ;;  %v1536_v36 = vmul.f32 0.01, %v1374_v27 }
 0x1fe   : > { %v2701_v37 = vpop.f32.mrf.mxu1 }
 0x1ff   : > { %v1535_v60 = vmul.f32 0.01, %v1369_v30  ;;  %v1384_v38 = vadd.f32 %v2701_v37, %v3465_v4  ;;  %2821 = vmatprep.mubr.f32.mxu0 %v1597_v32  ;;  %v1600_v41 = vmax.f32 %v1374_v27, %v1536_v36 }
 0x200   : > { %v1378_v39 = vpop.f32.mrf.mxu1  ;;  %2822 = vmatmul.mubr.f32.gmra.mxu0 %v1598_v33 }
 0x201   : > { %v1599_v34 = vmax.f32 %v1369_v30, %v1535_v60  ;;  %v1379_v40 = vadd.f32 %v3465_v4, %v1378_v39  ;;  %v1538_v49 = vmul.f32 0.01, %v1384_v38 }
 0x202   : > { %v2704_v18 = vpop.f32.mrf.mxu1 }
 0x203   : > { %v1537_v42 = vmul.f32 0.01, %v1379_v40  ;;  %v1394_v43 = vadd.f32 %v2704_v18, %v3465_v4  ;;  %2824 = vmatprep.mubr.f32.mxu0 %v1599_v34  ;;  %v1602_v50 = vmax.f32 %v1384_v38, %v1538_v49 }
 0x204   : > { %v1388_v46 = vpop.f32.mrf.mxu1  ;;  %2825 = vmatmul.mubr.f32.gmra.mxu0 %v1600_v41 }
 0x205   : > { %v1601_v48 = vmax.f32 %v1379_v40, %v1537_v42  ;;  %v1389_v7 = vadd.f32 %v3465_v4, %v1388_v46  ;;  %v1540_v45 = vmul.f32 0.01, %v1394_v43 }
 0x206   : > { %v2707_v51 = vpop.f32.mrf.mxu1 }
 0x207   : > { %v1539_v52 = vmul.f32 0.01, %v1389_v7  ;;  %v1404_v53 = vadd.f32 %v2707_v51, %v3465_v4  ;;  %2827 = vmatprep.mubr.f32.mxu0 %v1601_v48  ;;  %v1604_v2 = vmax.f32 %v1394_v43, %v1540_v45 }
 0x208   : > { %v1398_v31 = vpop.f32.mrf.mxu1  ;;  %2828 = vmatmul.mubr.f32.gmra.mxu0 %v1602_v50 }
 0x209   : > { %v1603_v54 = vmax.f32 %v1389_v7, %v1539_v52  ;;  %v1399_v55 = vadd.f32 %v3465_v4, %v1398_v31  ;;  %v1542_v57 = vmul.f32 0.01, %v1404_v53 }
 0x20a   : > { %v2710_v59 = vpop.f32.mrf.mxu1 }
 0x20b   : > { %v1541_v61 = vmul.f32 0.01, %v1399_v55  ;;  %v1414_v62 = vadd.f32 %v2710_v59, %v3465_v4  ;;  %2830 = vmatprep.mubr.f32.mxu0 %v1603_v54  ;;  %v1606_v56 = vmax.f32 %v1404_v53, %v1542_v57 }
 0x20c   : > { %v1408_v63 = vpop.f32.mrf.mxu1  ;;  %2831 = vmatmul.mubr.f32.gmra.mxu0 %v1604_v2 }
 0x20d   : > { %v1605_v0 = vmax.f32 %v1399_v55, %v1541_v61  ;;  %v1409_v1 = vadd.f32 %v3465_v4, %v1408_v63  ;;  %v1544_v3 = vmul.f32 0.01, %v1414_v62 }
 0x20e   : > { %v2713_v22 = vpop.f32.mrf.mxu1 }
 0x20f   : > { %v1543_v5 = vmul.f32 0.01, %v1409_v1  ;;  %v1424_v24 = vadd.f32 %v2713_v22, %v3465_v4  ;;  %2833 = vmatprep.mubr.f32.mxu0 %v1605_v0  ;;  %v1608_v10 = vmax.f32 %v1414_v62, %v1544_v3 }
 0x210   : > { %v1418_v8 = vpop.f32.mrf.mxu1  ;;  %2834 = vmatmul.mubr.f32.gmra.mxu0 %v1606_v56 }
 0x211   : > { %v1607_v9 = vmax.f32 %v1409_v1, %v1543_v5  ;;  %v1419_v12 = vadd.f32 %v3465_v4, %v1418_v8  ;;  %v1546_v11 = vmul.f32 0.01, %v1424_v24 }
 0x212   : > { %v2716_v47 = vpop.f32.mrf.mxu1 }
 0x213   : > { %v1545_v13 = vmul.f32 0.01, %v1419_v12  ;;  %v1434_v14 = vadd.f32 %v2716_v47, %v3465_v4  ;;  %2836 = vmatprep.mubr.f32.mxu0 %v1607_v9  ;;  %v1610_v17 = vmax.f32 %v1424_v24, %v1546_v11  ;;  %v3537_v9 = vld [vmem:[%s3737_s6] ss:$0 sm:$0xff] }
 0x214   : > { %v1428_v15 = vpop.f32.mrf.mxu1  ;;  %2837 = vmatmul.mubr.f32.gmra.mxu0 %v1608_v10 }
 0x215   : > { %v1609_v35 = vmax.f32 %v1419_v12, %v1545_v13  ;;  %v1429_v16 = vadd.f32 %v3465_v4, %v1428_v15  ;;  %v1548_v6 = vmul.f32 0.01, %v1434_v14 }
 0x216   : > { %v2719_v19 = vpop.f32.mrf.mxu1 }
 0x217   : > { %v1547_v20 = vmul.f32 0.01, %v1429_v16  ;;  %v1444_v21 = vadd.f32 %v2719_v19, %v3465_v4  ;;  %2839 = vmatprep.mubr.f32.mxu0 %v1609_v35  ;;  %v1612_v28 = vmax.f32 %v1434_v14, %v1548_v6 }
 0x218   : > { %v1438_v23 = vpop.f32.mrf.mxu1  ;;  %2840 = vmatmul.mubr.f32.gmra.mxu0 %v1610_v17 }
 0x219   : > { %v1611_v58 = vmax.f32 %v1429_v16, %v1547_v20  ;;  %v1439_v25 = vadd.f32 %v3465_v4, %v1438_v23  ;;  %v1550_v26 = vmul.f32 0.01, %v1444_v21 }
 0x21a   : > { %v2722_v44 = vpop.f32.mrf.mxu1 }
 0x21b   : > { %v1549_v27 = vmul.f32 0.01, %v1439_v25  ;;  %v1454_v29 = vadd.f32 %v2722_v44, %v3465_v4  ;;  %2842 = vmatprep.mubr.f32.mxu0 %v1611_v58  ;;  %v1614_v36 = vmax.f32 %v1444_v21, %v1550_v26 }
 0x21c   : > { %v1448_v32 = vpop.f32.mrf.mxu1  ;;  %2843 = vmatmul.mubr.f32.gmra.mxu0 %v1612_v28 }
 0x21d   : > { %v1613_v30 = vmax.f32 %v1439_v25, %v1549_v27  ;;  %v1449_v33 = vadd.f32 %v3465_v4, %v1448_v32  ;;  %v1552_v37 = vmul.f32 0.01, %v1454_v29 }
 0x21e   : > { %v2725_v60 = vpop.f32.mrf.mxu1 }
 0x21f   : > { %v1551_v38 = vmul.f32 0.01, %v1449_v33  ;;  %v1464_v39 = vadd.f32 %v2725_v60, %v3465_v4  ;;  %2845 = vmatprep.mubr.f32.mxu0 %v1613_v30  ;;  %v1616_v49 = vmax.f32 %v1454_v29, %v1552_v37 }
 0x220   : > { %v1458_v34 = vpop.f32.mrf.mxu1  ;;  %2846 = vmatmul.mubr.f32.gmra.mxu0 %v1614_v36 }
 0x221   : > { %v1615_v40 = vmax.f32 %v1449_v33, %v1551_v38  ;;  %v1459_v41 = vadd.f32 %v3465_v4, %v1458_v34  ;;  %v1554_v18 = vmul.f32 0.01, %v1464_v39 }
 0x222   : > { %v2728_v42 = vpop.f32.mrf.mxu1 }
 0x223   : > { %v1553_v43 = vmul.f32 0.01, %v1459_v41  ;;  %v1474_v46 = vadd.f32 %v2728_v42, %v3465_v4  ;;  %2848 = vmatprep.mubr.f32.mxu0 %v1615_v40  ;;  %v1618_v45 = vmax.f32 %v1464_v39, %v1554_v18 }
 0x224   : > { %v1468_v48 = vpop.f32.mrf.mxu1  ;;  %2849 = vmatmul.mubr.f32.gmra.mxu0 %v1616_v49 }
 0x225   : > { %v1617_v7 = vmax.f32 %v1459_v41, %v1553_v43  ;;  %v1469_v50 = vadd.f32 %v3465_v4, %v1468_v48  ;;  %v1556_v51 = vmul.f32 0.01, %v1474_v46 }
 0x226   : > { %v2731_v52 = vpop.f32.mrf.mxu1 }
 0x227   : > { %v1555_v53 = vmul.f32 0.01, %v1469_v50  ;;  %v1484_v31 = vadd.f32 %v2731_v52, %v3465_v4  ;;  %2851 = vmatprep.mubr.f32.mxu0 %v1617_v7  ;;  %v1620_v57 = vmax.f32 %v1474_v46, %v1556_v51 }
 0x228   : > { %v1478_v54 = vpop.f32.mrf.mxu1  ;;  %2852 = vmatmul.mubr.f32.gmra.mxu0 %v1618_v45 }
 0x229   : > { %v1619_v55 = vmax.f32 %v1469_v50, %v1555_v53  ;;  %v1479_v2 = vadd.f32 %v3465_v4, %v1478_v54  ;;  %v1558_v59 = vmul.f32 0.01, %v1484_v31 }
 0x22a   : > { %v2734_v61 = vpop.f32.mrf.mxu1 }
 0x22b   : > { %v1557_v62 = vmul.f32 0.01, %v1479_v2  ;;  %v1494_v63 = vadd.f32 %v2734_v61, %v3465_v4  ;;  %2854 = vmatprep.mubr.f32.mxu0 %v1619_v55  ;;  %v1622_v3 = vmax.f32 %v1484_v31, %v1558_v59 }
 0x22c   : > { %v1488_v0 = vpop.f32.mrf.mxu1  ;;  %2855 = vmatmul.mubr.f32.gmra.mxu0 %v1620_v57 }
 0x22d   : > { %v1621_v1 = vmax.f32 %v1479_v2, %v1557_v62  ;;  %v1489_v56 = vadd.f32 %v3465_v4, %v1488_v0  ;;  %v1560_v22 = vmul.f32 0.01, %v1494_v63 }
 0x22f   : > { %v1559_v5 = vmul.f32 0.01, %v1489_v56  ;;  %2857 = vmatprep.mubr.f32.mxu0 %v1621_v1  ;;  %v1624_v8 = vmax.f32 %v1494_v63, %v1560_v22 }
 0x230   : > { %2858 = vmatmul.mubr.f32.gmra.mxu0 %v1622_v3 }
 0x231   : > { %v1623_v24 = vmax.f32 %v1489_v56, %v1559_v5 }
 0x233   : > { %2860 = vmatprep.mubr.f32.mxu0 %v1623_v24 }
 0x234   : > { %2861 = vmatmul.mubr.f32.gmra.mxu0 %v1624_v8 }
 0x278   : > { %v2769_v12 = vpop.f32.mrf.mxu0 }
 0x279   : > { %v1720_v4 = vadd.f32 %v2769_v12, %v3537_v9 }
 0x27a   : > { %v1714_v10 = vpop.f32.mrf.mxu0 }
 0x27b   : > { %2034 = vst [vmem:[%s3540_s19 + $0x8] sm:$0xff] %v1720_v4  ;;  %v1715_v11 = vadd.f32 %v3537_v9, %v1714_v10 }
 0x27c   : > { %v2772_v47 = vpop.f32.mrf.mxu0 }
 0x27d   : > { %2033 = vst [vmem:[%s3540_s19] sm:$0xff] %v1715_v11  ;;  %v1730_v13 = vadd.f32 %v2772_v47, %v3537_v9 }
 0x27e   : > { %v1724_v14 = vpop.f32.mrf.mxu0 }
 0x27f   : > { %2036 = vst [vmem:[%s3540_s19 + $0x18] sm:$0xff] %v1730_v13  ;;  %v1725_v15 = vadd.f32 %v3537_v9, %v1724_v14 }
 0x280   : > { %v2775_v35 = vpop.f32.mrf.mxu0 }
 0x281   : > { %2035 = vst [vmem:[%s3540_s19 + $0x10] sm:$0xff] %v1725_v15  ;;  %v1740_v16 = vadd.f32 %v2775_v35, %v3537_v9 }
 0x282   : > { %v1734_v17 = vpop.f32.mrf.mxu0 }
 0x283   : > { %2038 = vst [vmem:[%s3540_s19 + $0x28] sm:$0xff] %v1740_v16  ;;  %v1735_v6 = vadd.f32 %v3537_v9, %v1734_v17 }
 0x284   : > { %v2778_v19 = vpop.f32.mrf.mxu0 }
 0x285   : > { %2037 = vst [vmem:[%s3540_s19 + $0x20] sm:$0xff] %v1735_v6  ;;  %v1750_v20 = vadd.f32 %v2778_v19, %v3537_v9 }
 0x286   : > { %v1744_v21 = vpop.f32.mrf.mxu0 }
 0x287   : > { %2040 = vst [vmem:[%s3540_s19 + $0x38] sm:$0xff] %v1750_v20  ;;  %v1745_v23 = vadd.f32 %v3537_v9, %v1744_v21 }
 0x288   : > { %v2781_v58 = vpop.f32.mrf.mxu0 }
 0x289   : > { %2039 = vst [vmem:[%s3540_s19 + $0x30] sm:$0xff] %v1745_v23  ;;  %v1760_v25 = vadd.f32 %v2781_v58, %v3537_v9 }
 0x28a   : > { %v1754_v28 = vpop.f32.mrf.mxu0 }
 0x28b   : > { %2042 = vst [vmem:[%s3540_s19 + $0x48] sm:$0xff] %v1760_v25  ;;  %v1755_v26 = vadd.f32 %v3537_v9, %v1754_v28 }
 0x28c   : > { %v2784_v44 = vpop.f32.mrf.mxu0 }
 0x28d   : > { %2041 = vst [vmem:[%s3540_s19 + $0x40] sm:$0xff] %v1755_v26  ;;  %v1770_v27 = vadd.f32 %v2784_v44, %v3537_v9 }
 0x28e   : > { %v1764_v29 = vpop.f32.mrf.mxu0 }
 0x28f   : > { %2044 = vst [vmem:[%s3540_s19 + $0x58] sm:$0xff] %v1770_v27  ;;  %v1765_v32 = vadd.f32 %v3537_v9, %v1764_v29 }
 0x290   : > { %v2787_v30 = vpop.f32.mrf.mxu0 }
 0x291   : > { %2043 = vst [vmem:[%s3540_s19 + $0x50] sm:$0xff] %v1765_v32  ;;  %v1780_v33 = vadd.f32 %v2787_v30, %v3537_v9 }
 0x292   : > { %v1774_v36 = vpop.f32.mrf.mxu0 }
 0x293   : > { %2046 = vst [vmem:[%s3540_s19 + $0x68] sm:$0xff] %v1780_v33  ;;  %v1775_v37 = vadd.f32 %v3537_v9, %v1774_v36 }
 0x294   : > { %v2790_v60 = vpop.f32.mrf.mxu0 }
 0x295   : > { %2045 = vst [vmem:[%s3540_s19 + $0x60] sm:$0xff] %v1775_v37  ;;  %v1790_v38 = vadd.f32 %v2790_v60, %v3537_v9 }
 0x296   : > { %v1784_v39 = vpop.f32.mrf.mxu0 }
 0x297   : > { %2048 = vst [vmem:[%s3540_s19 + $0x78] sm:$0xff] %v1790_v38  ;;  %v1785_v34 = vadd.f32 %v3537_v9, %v1784_v39 }
 0x298   : > { %v2793_v40 = vpop.f32.mrf.mxu0 }
 0x299   : > { %2047 = vst [vmem:[%s3540_s19 + $0x70] sm:$0xff] %v1785_v34  ;;  %v1800_v41 = vadd.f32 %v2793_v40, %v3537_v9 }
 0x29a   : > { %v1794_v49 = vpop.f32.mrf.mxu0 }
 0x29b   : > { %2050 = vst [vmem:[%s3540_s19 + $0x88] sm:$0xff] %v1800_v41  ;;  %v1795_v18 = vadd.f32 %v3537_v9, %v1794_v49 }
 0x29c   : > { %v2796_v42 = vpop.f32.mrf.mxu0 }
 0x29d   : > { %2049 = vst [vmem:[%s3540_s19 + $0x80] sm:$0xff] %v1795_v18  ;;  %v1810_v43 = vadd.f32 %v2796_v42, %v3537_v9 }
 0x29e   : > { %v1804_v46 = vpop.f32.mrf.mxu0 }
 0x29f   : > { %2052 = vst [vmem:[%s3540_s19 + $0x98] sm:$0xff] %v1810_v43  ;;  %v1805_v48 = vadd.f32 %v3537_v9, %v1804_v46 }
 0x2a0   : > { %v2799_v7 = vpop.f32.mrf.mxu0 }
 0x2a1   : > { %2051 = vst [vmem:[%s3540_s19 + $0x90] sm:$0xff] %v1805_v48  ;;  %v1820_v50 = vadd.f32 %v2799_v7, %v3537_v9 }
 0x2a2   : > { %v1814_v45 = vpop.f32.mrf.mxu0 }
 0x2a3   : > { %2054 = vst [vmem:[%s3540_s19 + $0xa8] sm:$0xff] %v1820_v50  ;;  %v1815_v51 = vadd.f32 %v3537_v9, %v1814_v45 }
 0x2a4   : > { %v2802_v52 = vpop.f32.mrf.mxu0 }
 0x2a5   : > { %2053 = vst [vmem:[%s3540_s19 + $0xa0] sm:$0xff] %v1815_v51  ;;  %v1830_v53 = vadd.f32 %v2802_v52, %v3537_v9 }
 0x2a6   : > { %v1824_v31 = vpop.f32.mrf.mxu0 }
 0x2a7   : > { %2056 = vst [vmem:[%s3540_s19 + $0xb8] sm:$0xff] %v1830_v53  ;;  %v1825_v54 = vadd.f32 %v3537_v9, %v1824_v31 }
 0x2a8   : > { %v2805_v55 = vpop.f32.mrf.mxu0 }
 0x2a9   : > { %2055 = vst [vmem:[%s3540_s19 + $0xb0] sm:$0xff] %v1825_v54  ;;  %v1840_v2 = vadd.f32 %v2805_v55, %v3537_v9 }
 0x2aa   : > { %v1834_v57 = vpop.f32.mrf.mxu0 }
 0x2ab   : > { %2058 = vst [vmem:[%s3540_s19 + $0xc8] sm:$0xff] %v1840_v2  ;;  %v1835_v59 = vadd.f32 %v3537_v9, %v1834_v57 }
 0x2ac   : > { %v2808_v61 = vpop.f32.mrf.mxu0 }
 0x2ad   : > { %2057 = vst [vmem:[%s3540_s19 + $0xc0] sm:$0xff] %v1835_v59  ;;  %v1850_v62 = vadd.f32 %v2808_v61, %v3537_v9 }
 0x2ae   : > { %v1844_v63 = vpop.f32.mrf.mxu0 }
 0x2af   : > { %2060 = vst [vmem:[%s3540_s19 + $0xd8] sm:$0xff] %v1850_v62  ;;  %v1845_v0 = vadd.f32 %v3537_v9, %v1844_v63 }
 0x2b0   : > { %v2811_v1 = vpop.f32.mrf.mxu0 }
 0x2b1   : > { %2059 = vst [vmem:[%s3540_s19 + $0xd0] sm:$0xff] %v1845_v0  ;;  %v1860_v56 = vadd.f32 %v2811_v1, %v3537_v9 }
 0x2b2   : > { %v1854_v3 = vpop.f32.mrf.mxu0 }
 0x2b3   : > { %2062 = vst [vmem:[%s3540_s19 + $0xe8] sm:$0xff] %v1860_v56  ;;  %v1855_v22 = vadd.f32 %v3537_v9, %v1854_v3 }
 0x2b4   : > { %v2814_v5 = vpop.f32.mrf.mxu0 }
 0x2b5   : > { %2061 = vst [vmem:[%s3540_s19 + $0xe0] sm:$0xff] %v1855_v22  ;;  %v1870_v24 = vadd.f32 %v2814_v5, %v3537_v9 }
 0x2b6   : > { %v1864_v8 = vpop.f32.mrf.mxu0 }
 0x2b7   : > { %2064 = vst [vmem:[%s3540_s19 + $0xf8] sm:$0xff] %v1870_v24  ;;  %v1865_v12 = vadd.f32 %v3537_v9, %v1864_v8 }
 0x2b8   : > { %v2817_v4 = vpop.f32.mrf.mxu0 }
 0x2b9   : > { %2063 = vst [vmem:[%s3540_s19 + $0xf0] sm:$0xff] %v1865_v12  ;;  %v1880_v10 = vadd.f32 %v2817_v4, %v3537_v9 }
 0x2ba   : > { %v1874_v11 = vpop.f32.mrf.mxu0 }
 0x2bb   : > { %2066 = vst [vmem:[%s3540_s19 + $0x108] sm:$0xff] %v1880_v10  ;;  %v1875_v47 = vadd.f32 %v3537_v9, %v1874_v11 }
 0x2bc   : > { %v2820_v13 = vpop.f32.mrf.mxu0 }
 0x2bd   : > { %2065 = vst [vmem:[%s3540_s19 + $0x100] sm:$0xff] %v1875_v47  ;;  %v1890_v14 = vadd.f32 %v2820_v13, %v3537_v9 }
 0x2be   : > { %v1884_v15 = vpop.f32.mrf.mxu0 }
 0x2bf   : > { %2068 = vst [vmem:[%s3540_s19 + $0x118] sm:$0xff] %v1890_v14  ;;  %v1885_v35 = vadd.f32 %v3537_v9, %v1884_v15 }
 0x2c0   : > { %v2823_v16 = vpop.f32.mrf.mxu0 }
 0x2c1   : > { %2067 = vst [vmem:[%s3540_s19 + $0x110] sm:$0xff] %v1885_v35  ;;  %v1900_v17 = vadd.f32 %v2823_v16, %v3537_v9 }
 0x2c2   : > { %v1894_v6 = vpop.f32.mrf.mxu0 }
 0x2c3   : > { %2070 = vst [vmem:[%s3540_s19 + $0x128] sm:$0xff] %v1900_v17  ;;  %v1895_v19 = vadd.f32 %v3537_v9, %v1894_v6 }
 0x2c4   : > { %v2826_v20 = vpop.f32.mrf.mxu0 }
 0x2c5   : > { %2069 = vst [vmem:[%s3540_s19 + $0x120] sm:$0xff] %v1895_v19  ;;  %v1910_v21 = vadd.f32 %v2826_v20, %v3537_v9 }
 0x2c6   : > { %v1904_v23 = vpop.f32.mrf.mxu0 }
 0x2c7   : > { %2072 = vst [vmem:[%s3540_s19 + $0x138] sm:$0xff] %v1910_v21  ;;  %v1905_v58 = vadd.f32 %v3537_v9, %v1904_v23 }
 0x2c8   : > { %v2829_v25 = vpop.f32.mrf.mxu0 }
 0x2c9   : > { %2071 = vst [vmem:[%s3540_s19 + $0x130] sm:$0xff] %v1905_v58  ;;  %v1920_v28 = vadd.f32 %v2829_v25, %v3537_v9 }
 0x2ca   : > { %v1914_v26 = vpop.f32.mrf.mxu0 }
 0x2cb   : > { %2074 = vst [vmem:[%s3540_s19 + $0x148] sm:$0xff] %v1920_v28  ;;  %v1915_v44 = vadd.f32 %v3537_v9, %v1914_v26 }
 0x2cc   : > { %v2832_v27 = vpop.f32.mrf.mxu0 }
 0x2cd   : > { %2073 = vst [vmem:[%s3540_s19 + $0x140] sm:$0xff] %v1915_v44  ;;  %v1930_v29 = vadd.f32 %v2832_v27, %v3537_v9 }
 0x2ce   : > { %v1924_v32 = vpop.f32.mrf.mxu0 }
 0x2cf   : > { %2076 = vst [vmem:[%s3540_s19 + $0x158] sm:$0xff] %v1930_v29  ;;  %v1925_v30 = vadd.f32 %v3537_v9, %v1924_v32 }
 0x2d0   : > { %v2835_v33 = vpop.f32.mrf.mxu0 }
 0x2d1   : > { %2075 = vst [vmem:[%s3540_s19 + $0x150] sm:$0xff] %v1925_v30  ;;  %v1940_v36 = vadd.f32 %v2835_v33, %v3537_v9 }
 0x2d2   : > { %v1934_v37 = vpop.f32.mrf.mxu0 }
 0x2d3   : > { %2078 = vst [vmem:[%s3540_s19 + $0x168] sm:$0xff] %v1940_v36  ;;  %v1935_v60 = vadd.f32 %v3537_v9, %v1934_v37 }
 0x2d4   : > { %v2838_v38 = vpop.f32.mrf.mxu0 }
 0x2d5   : > { %2077 = vst [vmem:[%s3540_s19 + $0x160] sm:$0xff] %v1935_v60  ;;  %v1950_v39 = vadd.f32 %v2838_v38, %v3537_v9 }
 0x2d6   : > { %v1944_v34 = vpop.f32.mrf.mxu0 }
 0x2d7   : > { %2080 = vst [vmem:[%s3540_s19 + $0x178] sm:$0xff] %v1950_v39  ;;  %v1945_v40 = vadd.f32 %v3537_v9, %v1944_v34 }
 0x2d8   : > { %v2841_v41 = vpop.f32.mrf.mxu0 }
 0x2d9   : > { %2079 = vst [vmem:[%s3540_s19 + $0x170] sm:$0xff] %v1945_v40  ;;  %v1960_v49 = vadd.f32 %v2841_v41, %v3537_v9 }
 0x2da   : > { %v1954_v18 = vpop.f32.mrf.mxu0 }
 0x2db   : > { %2082 = vst [vmem:[%s3540_s19 + $0x188] sm:$0xff] %v1960_v49  ;;  %v1955_v42 = vadd.f32 %v3537_v9, %v1954_v18 }
 0x2dc   : > { %v2844_v43 = vpop.f32.mrf.mxu0 }
 0x2dd   : > { %2081 = vst [vmem:[%s3540_s19 + $0x180] sm:$0xff] %v1955_v42  ;;  %v1970_v46 = vadd.f32 %v2844_v43, %v3537_v9 }
 0x2de   : > { %v1964_v48 = vpop.f32.mrf.mxu0 }
 0x2df   : > { %2084 = vst [vmem:[%s3540_s19 + $0x198] sm:$0xff] %v1970_v46  ;;  %v1965_v7 = vadd.f32 %v3537_v9, %v1964_v48 }
 0x2e0   : > { %v2847_v50 = vpop.f32.mrf.mxu0 }
 0x2e1   : > { %2083 = vst [vmem:[%s3540_s19 + $0x190] sm:$0xff] %v1965_v7  ;;  %v1980_v45 = vadd.f32 %v2847_v50, %v3537_v9 }
 0x2e2   : > { %v1974_v51 = vpop.f32.mrf.mxu0 }
 0x2e3   : > { %2086 = vst [vmem:[%s3540_s19 + $0x1a8] sm:$0xff] %v1980_v45  ;;  %v1975_v52 = vadd.f32 %v3537_v9, %v1974_v51 }
 0x2e4   : > { %v2850_v53 = vpop.f32.mrf.mxu0 }
 0x2e5   : > { %2085 = vst [vmem:[%s3540_s19 + $0x1a0] sm:$0xff] %v1975_v52  ;;  %v1990_v31 = vadd.f32 %v2850_v53, %v3537_v9 }
 0x2e6   : > { %v1984_v54 = vpop.f32.mrf.mxu0 }
 0x2e7   : > { %2088 = vst [vmem:[%s3540_s19 + $0x1b8] sm:$0xff] %v1990_v31  ;;  %v1985_v55 = vadd.f32 %v3537_v9, %v1984_v54 }
 0x2e8   : > { %v2853_v2 = vpop.f32.mrf.mxu0 }
 0x2e9   : > { %2087 = vst [vmem:[%s3540_s19 + $0x1b0] sm:$0xff] %v1985_v55  ;;  %v2000_v57 = vadd.f32 %v2853_v2, %v3537_v9 }
 0x2ea   : > { %v1994_v59 = vpop.f32.mrf.mxu0 }
 0x2eb   : > { %2090 = vst [vmem:[%s3540_s19 + $0x1c8] sm:$0xff] %v2000_v57  ;;  %v1995_v61 = vadd.f32 %v3537_v9, %v1994_v59 }
 0x2ec   : > { %v2856_v62 = vpop.f32.mrf.mxu0 }
 0x2ed   : > { %2089 = vst [vmem:[%s3540_s19 + $0x1c0] sm:$0xff] %v1995_v61  ;;  %v2010_v63 = vadd.f32 %v2856_v62, %v3537_v9 }
 0x2ee   : > { %v2004_v0 = vpop.f32.mrf.mxu0 }
 0x2ef   : > { %2092 = vst [vmem:[%s3540_s19 + $0x1d8] sm:$0xff] %v2010_v63  ;;  %v2005_v1 = vadd.f32 %v3537_v9, %v2004_v0 }
 0x2f0   : > { %v2859_v56 = vpop.f32.mrf.mxu0 }
 0x2f1   : > { %2091 = vst [vmem:[%s3540_s19 + $0x1d0] sm:$0xff] %v2005_v1  ;;  %v2020_v3 = vadd.f32 %v2859_v56, %v3537_v9 }
 0x2f2   : > { %v2014_v22 = vpop.f32.mrf.mxu0 }
 0x2f3   : > { %2094 = vst [vmem:[%s3540_s19 + $0x1e8] sm:$0xff] %v2020_v3  ;;  %v2015_v5 = vadd.f32 %v3537_v9, %v2014_v22 }
 0x2f4   : > { %v2862_v24 = vpop.f32.mrf.mxu0 }
 0x2f5   : > { %2093 = vst [vmem:[%s3540_s19 + $0x1e0] sm:$0xff] %v2015_v5  ;;  %v2030_v8 = vadd.f32 %v2862_v24, %v3537_v9  ;;  %2104 = sbr.rel (!%p3062_p5) target bundleno = 789 (0x315), region = 52 }
 0x2f6   : > { %v2024_v12 = vpop.f32.mrf.mxu0 }
 0x2f7   : > { %2096 = vst [vmem:[%s3540_s19 + $0x1f8] sm:$0xff] %v2030_v8  ;;  %v2025_v4 = vadd.f32 %v3537_v9, %v2024_v12 }
 0x2f9   : > { %2095 = vst [vmem:[%s3540_s19 + $0x1f0] sm:$0xff] %v2025_v4 }
 0x2fa   : > { %s3746_s20 = smov (!%p2107_p11, %s2106_s20), 64 }
 0x2fb   : > { %s3676_s21 = sshll.u32 %s3746_s20, 7 }
 0x2fc   : > { %s2111_s22 = ssub.s32 8192, %s3676_s21 }
 0x2fd   : > { %2112 = vsyncadd %s3671_s14, %s2111_s22  ;;  %p2256_p12 = scmp.ne.s32.totalorder %s3676_s21, 0  ;;  %s2262_s23 = sshll.u32 %s3045_s28, 13 }
 0x2fe   : > { %s3685_s8 = scalar_lea.hbm %s3738_s7, %s2262_s23  ;;  %s2117_s17 = sshll.u32 %s3540_s19, 4  ;;  %s3688_s17 = int_to_ptr.vmem [resolvable:$true] %s2117_s17 }
 0x2ff   : > { %s2919_s9 = scalar_lea.vmem %s3688_s17, %s3676_s21  ;;  %s2981_s13 = smov [#allocation2]  }
 0x300   : > { %p2920_p13 = scmp.ne.s32.totalorder %s3688_s17, %s2919_s9  ;;  %s2923_s15 = sshll.u32 %s2981_s13, 4  ;;  %s2924_s15 = int_to_ptr.vmem [resolvable:$false] %s2923_s15 }
 0x301   : > { %s2925_s28 = scalar_lea.vmem %s2924_s15, 16384  ;;  %p2926_p2 = scmp.lt.s32.totalorder %s3688_s17, %s2924_s15 }
 0x302   : > { %p2921_p0 = pnand %p2920_p13, %p2256_p12  ;;  %p2927_p3 = scmp.lt.s32.totalorder %s2925_s28, %s2919_s9 }
 0x304   : > { %p2922_p1 = pneg %p2921_p0  ;;  %p2928_p4 = por %p2927_p3, %p2926_p2 }
 0x306   : > { %p2929_p5 = pnand %p2928_p4, %p2922_p1 }
 0x308   : > { %2932 = shalt.err (!%p2929_p5)
}
 0x309   : > { %s2933_s16 = scalar_lea.hbm %s3685_s8, %s3676_s21  ;;  %s2937_s20 = scalar_lea.hbm %s3738_s7, 16000 }
 0x30a   : > { %p2934_p7 = scmp.ne.s32.totalorder %s3685_s8, %s2933_s16  ;;  %p2938_p10 = scmp.lt.s32.totalorder %s3685_s8, %s3738_s7 }
 0x30b   : > { %p2939_p11 = scmp.lt.s32.totalorder %s2937_s20, %s2933_s16 }
 0x30c   : > { %p2935_p8 = pnand %p2934_p7, %p2256_p12 }
 0x30d   : > { %p2940_p13 = por %p2939_p11, %p2938_p10 }
 0x30e   : > { %p2936_p9 = pneg %p2935_p8 }
 0x310   : > { %p2941_p0 = pnand %p2940_p13, %p2936_p9 }
 0x312   : > { %2944 = shalt.err (!%p2941_p0)
}
 0x313   : > { %s2982_s29 = smov 128   ;;  %s2983_s11 = smov 8  }
 0x314   : > { %2123 = dma.vmem_to_hbm [thread:$0]  (%p2256_p12), %s3688_s17, %s3676_s21, %s3685_s8, %s3671_s14, %s2982_s29, %s2982_s29, %s2983_s11  }
 0x315 PF: > { %p2884_p1 = scmp.ge.s32.totalorder %s2979_s27, 2  ;;  %s2132_s9 = sand.u32 1, %s2967_s24  }
 0x316   : > { %s2133_s13 = scalar_lea.sflag [#allocation3], %s2132_s9 }
 0x317   : > { %p2881_p2 = pnand %p2884_p1, %p3066_p6 }
 0x319   : > { %p2882_p3 = pneg %p2881_p2 }
 0x31b   : > { %2962 = dma.done.wait (%p2882_p3), %s2133_s13, 8192  }
 0x31c   : > { %2964 = vsyncadd (%p2882_p3), %s2133_s13, 4294959104  ;;  %p17_p4 = scmp.ge.s32.totalorder %s3049_s30, 4   ;;  %s3741_s24 = smov %s2971_s25 }
 0x31d   : > { %s3742_s25 = smov %s2975_s26  ;;  %s3743_s26 = smov %s3060_s10 }
 0x31e   : > { %s3744_s27 = smov %s3049_s30  ;;  %19 = sbr.rel (!%p17_p4) target bundleno = 3 (0x3), region = 83 }
 0x323   :  { %2138 = vsyncpa [#allocation3], 1 }
 0x324   :  { %2140 = vsyncpa [#allocation3 + $0x1], 1 }

// kernel: tpu_custom_call.1
= control target key start
LH: loop header
LB: loop body
LE: loop exit
PB: predicated region body
PF: predicated region fallthrough
CT: control target
= control target key end

     0   :  { %12 = vsyncpa [#allocation3], 0  ;;  %s3731_s0 = inlined_call_operand.vmem [shape: f32[1000,64], index: 0, kind: input, shape index: {}]   ;;  %s3732_s1 = inlined_call_operand.vmem [shape: f32[64,128], index: 1, kind: input, shape index: {}]   ;;  %s3733_s2 = inlined_call_operand.vmem [shape: f32[1,128], index: 2, kind: input, shape index: {}]   ;;  %s3734_s3 = inlined_call_operand.vmem [shape: f32[128,128], index: 3, kind: input, shape index: {}]   ;;  %s3735_s4 = inlined_call_operand.vmem [shape: f32[1,128], index: 4, kind: input, shape index: {}]   ;;  %s3736_s5 = inlined_call_operand.vmem [shape: f32[128,128], index: 5, kind: input, shape index: {}]   ;;  %s3737_s6 = inlined_call_operand.vmem [shape: f32[1,128], index: 6, kind: input, shape index: {}]   ;;  %s3738_s7 = inlined_call_operand.hbm [shape: f32[1000,128], index: 7, kind: output, shape index: {}]  }
   0x1   :  { %14 = vsyncpa [#allocation3 + $0x1], 0  ;;  %s3024_s24 = smov 0   ;;  %s3026_s25 = smov 0  }
   0x2   :  { %s3028_s26 = smov 0   ;;  %s3030_s27 = smov 0  }
   0x3 LB: > { %s3045_s28 = sadd.s32 4294967295, %s2979_s27   ;;  %s2179_s29 = sadd.s32 4294967294, %s2979_s27   ;;  %s2979_s27 = sphi %s3030_s27, %s3744_s27   ;;  %s2975_s26 = sphi %s3028_s26, %s3743_s26   ;;  %s2971_s25 = sphi %s3026_s25, %s3742_s25   ;;  %s2967_s24 = sphi %s3024_s24, %s3741_s24  }
   0x4   : > { %s3049_s30 = sadd.s32 1, %s2979_s27   ;;  %s179_s8 = sadd.s32 1, %s2975_s26 }
   0x5   : > { %s176_s9 = ssub.s32 %s2979_s27, %s3049_s30  ;;  %p189_p0 = scmp.ne.s32.totalorder %s2975_s26, %s2971_s25 }
   0x6   : > { %p177_p1 = scmp.eq.s32.totalorder %s176_s9, 0  ;;  %p190_p2 = scmp.eq.s32.totalorder %s3045_s28, 1 }
   0x7   : > { %p195_p3 = scmp.ne.s32.totalorder %s2971_s25, %s2967_s24  ;;  %p196_p4 = scmp.eq.s32.totalorder %s2179_s29, 1 }
   0x8   : > { %s3060_s10 = scalar_select %p177_p1, %s2975_s26, %s179_s8  }
   0x9   : > { %p3062_p5 = por %p190_p2, %p189_p0  ;;  %p3066_p6 = por %p196_p4, %p195_p3 }
   0xa   : > { %p2182_p7 = scmp.ge.s32.totalorder %s2979_s27, 1  ;;  %p249_p8 = scmp.lt.s32.totalorder %s2979_s27, 3 }
   0xc   : > { %p250_p9 = pnand %p2182_p7, %p249_p8 }
   0xd   : > { %s3079_s17 = sshll.u32 (!%p250_p9), %s3045_s28, 6  ;;  %s282_s13 = sand.u32 (!%p250_p9), 1, %s2971_s25  }
   0xe   : > { %253 = sbr.rel (%p250_p9) target bundleno = 789 (0x315), region = 48  ;;  %p290_p10 = scmp.lt.s32.totalorder (!%p250_p9), %s3079_s17, 124 }
   0xf   : > { %s2183_s15 = sshll.u32 (!%p250_p9), %s282_s13, 9 }
  0x10   : > { %s3540_s19 = scalar_lea.vmem (!%p250_p9), [#allocation2], %s2183_s15 }
  0x13   : > { %v375_v0 = vld [vmem:[%s3732_s1 + $0x38] sm:$0xff]  ;;  %v374_v1 = vld [vmem:[%s3732_s1 + $0x30] sm:$0xff]  ;;  %v373_v2 = vld [vmem:[%s3732_s1 + $0x28] sm:$0xff]  ;;  %s291_s20 = scalar_select %p290_p10, %s3079_s17, 124  ;;  %vm383_vm0 = vcmask 523264  }
  0x14   : > { %2495 = vmatprep.subr.mxu0 %v375_v0  ;;  %2863 = vmatprep.subr.mxu1 %v375_v0  ;;  %v372_v3 = vld [vmem:[%s3732_s1 + $0x20] sm:$0xff]  ;;  %v371_v4 = vld [vmem:[%s3732_s1 + $0x18] sm:$0xff]  ;;  %v370_v6 = vld [vmem:[%s3732_s1 + $0x10] sm:$0xff] }
  0x15   : > { %2496 = vmatpush3.msra.mxu0 %v375_v0  ;;  %2871 = vmatpush3.msra.mxu1 %v375_v0  ;;  %s2185_s23 = sshll.u32 %s291_s20, 3  ;;  %v369_v7 = vld [vmem:[%s3732_s1 + $0x8] sm:$0xff]  ;;  %v368_v8 = vld [vmem:[%s3732_s1] sm:$0xff]  ;;  %v1104_v11 = vld [vmem:[%s3734_s3 + $0x78] sm:$0xff]  ;;  %s2106_s20 = ssub.s32 (%p3062_p5), 125, %s3079_s17 }
  0x16   : > { %2497 = vmatprep.subr.mxu0 %v374_v1  ;;  %2864 = vmatprep.subr.mxu1 %v374_v1  ;;  %s3095_s14 = scalar_lea.vmem %s3731_s0, %s2185_s23  ;;  %v1103_v13 = vld [vmem:[%s3734_s3 + $0x70] sm:$0xff]  ;;  %v1102_v19 = vld [vmem:[%s3734_s3 + $0x68] sm:$0xff]  ;;  %v1101_v22 = vld [vmem:[%s3734_s3 + $0x60] sm:$0xff]  ;;  %p2107_p11 = scmp.lt.s32.totalorder (%p3062_p5), %s2106_s20, 64 }
  0x17   : > { %2498 = vmatpush3.msra.mxu0 %v374_v1  ;;  %2872 = vmatpush3.msra.mxu1 %v374_v1  ;;  %v304_v5 = vld [vmem:[%s3095_s14] sm:$0xff]  ;;  %v305_v9 = vld [vmem:[%s3095_s14 + $0x8] sm:$0xff]  ;;  %v306_v10 = vld [vmem:[%s3095_s14 + $0x10] sm:$0xff] }
  0x18   : > { %2499 = vmatprep.subr.mxu0 %v373_v2  ;;  %2865 = vmatprep.subr.mxu1 %v373_v2  ;;  %v336_v12 = vld [vmem:[%s3095_s14 + $0x100] sm:$0xff]  ;;  %v307_v14 = vld [vmem:[%s3095_s14 + $0x18] sm:$0xff]  ;;  %v337_v15 = vld [vmem:[%s3095_s14 + $0x108] sm:$0xff] }
  0x19   : > { %2500 = vmatpush3.msra.mxu0 %v373_v2  ;;  %2873 = vmatpush3.msra.mxu1 %v373_v2  ;;  %v338_v16 = vld [vmem:[%s3095_s14 + $0x110] sm:$0xff]  ;;  %v308_v17 = vld [vmem:[%s3095_s14 + $0x20] sm:$0xff]  ;;  %v339_v18 = vld [vmem:[%s3095_s14 + $0x118] sm:$0xff] }
  0x1a   : > { %2501 = vmatprep.subr.mxu0 %v372_v3  ;;  %2866 = vmatprep.subr.mxu1 %v372_v3  ;;  %v340_v20 = vld [vmem:[%s3095_s14 + $0x120] sm:$0xff]  ;;  %v309_v21 = vld [vmem:[%s3095_s14 + $0x28] sm:$0xff]  ;;  %v310_v23 = vld [vmem:[%s3095_s14 + $0x30] sm:$0xff] }
  0x1b   : > { %2502 = vmatpush3.msra.mxu0 %v372_v3  ;;  %2511 = vmatprep.mubr.msk.f32.mxu0 %vm383_vm0, %v304_v5  ;;  %v341_v24 = vld [vmem:[%s3095_s14 + $0x128] sm:$0xff]  ;;  %v1100_v25 = vld [vmem:[%s3734_s3 + $0x58] sm:$0xff]  ;;  %v342_v26 = vld [vmem:[%s3095_s14 + $0x130] sm:$0xff] }
  0x1c   : > { %2503 = vmatprep.subr.mxu0 %v371_v4  ;;  %2874 = vmatpush3.msra.mxu1 %v372_v3  ;;  %v311_v27 = vld [vmem:[%s3095_s14 + $0x38] sm:$0xff]  ;;  %v1099_v28 = vld [vmem:[%s3734_s3 + $0x50] sm:$0xff]  ;;  %v312_v29 = vld [vmem:[%s3095_s14 + $0x40] sm:$0xff] }
  0x1d   : > { %2504 = vmatpush3.msra.mxu0 %v371_v4  ;;  %2867 = vmatprep.subr.mxu1 %v371_v4  ;;  %v343_v30 = vld [vmem:[%s3095_s14 + $0x138] sm:$0xff]  ;;  %v1098_v31 = vld [vmem:[%s3734_s3 + $0x48] sm:$0xff]  ;;  %v344_v32 = vld [vmem:[%s3095_s14 + $0x140] sm:$0xff] }
  0x1e   : > { %2505 = vmatprep.subr.mxu0 %v370_v6  ;;  %2875 = vmatpush3.msra.mxu1 %v371_v4  ;;  %v313_v33 = vld [vmem:[%s3095_s14 + $0x48] sm:$0xff]  ;;  %v1097_v34 = vld [vmem:[%s3734_s3 + $0x40] sm:$0xff]  ;;  %v314_v35 = vld [vmem:[%s3095_s14 + $0x50] sm:$0xff] }
  0x1f   : > { %2506 = vmatpush3.msra.mxu0 %v370_v6  ;;  %2868 = vmatprep.subr.mxu1 %v370_v6  ;;  %v345_v36 = vld [vmem:[%s3095_s14 + $0x148] sm:$0xff]  ;;  %v1096_v37 = vld [vmem:[%s3734_s3 + $0x38] sm:$0xff]  ;;  %v346_v38 = vld [vmem:[%s3095_s14 + $0x150] sm:$0xff] }
  0x20   : > { %2507 = vmatprep.subr.mxu0 %v369_v7  ;;  %2876 = vmatpush3.msra.mxu1 %v370_v6  ;;  %v315_v39 = vld [vmem:[%s3095_s14 + $0x58] sm:$0xff]  ;;  %v1095_v40 = vld [vmem:[%s3734_s3 + $0x30] sm:$0xff]  ;;  %v316_v41 = vld [vmem:[%s3095_s14 + $0x60] sm:$0xff] }
  0x21   : > { %2508 = vmatpush3.msra.mxu0 %v369_v7  ;;  %2869 = vmatprep.subr.mxu1 %v369_v7  ;;  %v347_v42 = vld [vmem:[%s3095_s14 + $0x158] sm:$0xff]  ;;  %v1094_v43 = vld [vmem:[%s3734_s3 + $0x28] sm:$0xff]  ;;  %v348_v44 = vld [vmem:[%s3095_s14 + $0x160] sm:$0xff] }
  0x22   : > { %2509 = vmatprep.subr.mxu0 %v368_v8  ;;  %2877 = vmatpush3.msra.mxu1 %v369_v7  ;;  %v317_v45 = vld [vmem:[%s3095_s14 + $0x68] sm:$0xff]  ;;  %v1093_v46 = vld [vmem:[%s3734_s3 + $0x20] sm:$0xff]  ;;  %v318_v47 = vld [vmem:[%s3095_s14 + $0x70] sm:$0xff] }
  0x23   : > { %2510 = vmatpush3.msra.mxu0 %v368_v8  ;;  %2870 = vmatprep.subr.mxu1 %v368_v8  ;;  %v349_v48 = vld [vmem:[%s3095_s14 + $0x168] sm:$0xff]  ;;  %v1092_v49 = vld [vmem:[%s3734_s3 + $0x18] sm:$0xff]  ;;  %v350_v50 = vld [vmem:[%s3095_s14 + $0x170] sm:$0xff] }
  0x24   : > { %2512 = vmatmul.mubr.msk.f32.vlgmr.msra.gmra.mxu0 %vm383_vm0, %v305_v9  ;;  %2878 = vmatpush3.msra.mxu1 %v368_v8  ;;  %v319_v51 = vld [vmem:[%s3095_s14 + $0x78] sm:$0xff]  ;;  %v1091_v52 = vld [vmem:[%s3734_s3 + $0x10] sm:$0xff]  ;;  %v320_v53 = vld [vmem:[%s3095_s14 + $0x80] sm:$0xff] }
  0x25   : > { %2514 = vmatprep.mubr.msk.f32.mxu0 %vm383_vm0, %v306_v10  ;;  %2559 = vmatprep.mubr.msk.f32.mxu1 %vm383_vm0, %v336_v12  ;;  %v351_v54 = vld [vmem:[%s3095_s14 + $0x178] sm:$0xff]  ;;  %v352_v55 = vld [vmem:[%s3095_s14 + $0x180] sm:$0xff]  ;;  %v321_v56 = vld [vmem:[%s3095_s14 + $0x88] sm:$0xff] }
  0x26   : > { %2560 = vmatmul.mubr.msk.f32.vlgmr.msra.gmra.mxu1 %vm383_vm0, %v337_v15  ;;  %2607 = vmatprep.subr.mxu1 %v1104_v11  ;;  %v322_v57 = vld [vmem:[%s3095_s14 + $0x90] sm:$0xff]  ;;  %v353_v58 = vld [vmem:[%s3095_s14 + $0x188] sm:$0xff]  ;;  %v323_v60 = vld [vmem:[%s3095_s14 + $0x98] sm:$0xff] }
  0x27   : > { %2562 = vmatprep.mubr.msk.f32.mxu1 %vm383_vm0, %v338_v16  ;;  %2608 = vmatpush3.msra.mxu1 %v1104_v11  ;;  %v354_v59 = vld [vmem:[%s3095_s14 + $0x190] sm:$0xff]  ;;  %v324_v61 = vld [vmem:[%s3095_s14 + $0xa0] sm:$0xff]  ;;  %v355_v62 = vld [vmem:[%s3095_s14 + $0x198] sm:$0xff] }
  0x28   : > { %2515 = vmatmul.mubr.msk.f32.gmra.mxu0 %vm383_vm0, %v307_v14  ;;  %2609 = vmatprep.subr.mxu1 %v1103_v13  ;;  %v356_v63 = vld [vmem:[%s3095_s14 + $0x1a0] sm:$0xff]  ;;  %v325_v0 = vld [vmem:[%s3095_s14 + $0xa8] sm:$0xff]  ;;  %v326_v1 = vld [vmem:[%s3095_s14 + $0xb0] sm:$0xff] }
  0x29   : > { %2517 = vmatprep.mubr.msk.f32.mxu0 %vm383_vm0, %v308_v17  ;;  %2610 = vmatpush3.msra.mxu1 %v1103_v13  ;;  %v357_v2 = vld [vmem:[%s3095_s14 + $0x1a8] sm:$0xff]  ;;  %v358_v3 = vld [vmem:[%s3095_s14 + $0x1b0] sm:$0xff]  ;;  %v327_v4 = vld [vmem:[%s3095_s14 + $0xb8] sm:$0xff] }
  0x2a   : > { %2563 = vmatmul.mubr.msk.f32.gmra.mxu1 %vm383_vm0, %v339_v18  ;;  %2611 = vmatprep.subr.mxu1 %v1102_v19  ;;  %v328_v5 = vld [vmem:[%s3095_s14 + $0xc0] sm:$0xff]  ;;  %v359_v6 = vld [vmem:[%s3095_s14 + $0x1b8] sm:$0xff]  ;;  %v329_v8 = vld [vmem:[%s3095_s14 + $0xc8] sm:$0xff] }
  0x2b   : > { %2565 = vmatprep.mubr.msk.f32.mxu1 %vm383_vm0, %v340_v20  ;;  %2612 = vmatpush3.msra.mxu1 %v1102_v19  ;;  %v360_v7 = vld [vmem:[%s3095_s14 + $0x1c0] sm:$0xff]  ;;  %v330_v9 = vld [vmem:[%s3095_s14 + $0xd0] sm:$0xff]  ;;  %v361_v10 = vld [vmem:[%s3095_s14 + $0x1c8] sm:$0xff] }
  0x2c   : > { %2518 = vmatmul.mubr.msk.f32.gmra.mxu0 %vm383_vm0, %v309_v21  ;;  %2613 = vmatprep.subr.mxu1 %v1101_v22  ;;  %v362_v11 = vld [vmem:[%s3095_s14 + $0x1d0] sm:$0xff]  ;;  %v331_v12 = vld [vmem:[%s3095_s14 + $0xd8] sm:$0xff]  ;;  %v332_v13 = vld [vmem:[%s3095_s14 + $0xe0] sm:$0xff] }
  0x2d   : > { %2520 = vmatprep.mubr.msk.f32.mxu0 %vm383_vm0, %v310_v23  ;;  %2614 = vmatpush3.msra.mxu1 %v1101_v22  ;;  %v363_v14 = vld [vmem:[%s3095_s14 + $0x1d8] sm:$0xff]  ;;  %v364_v15 = vld [vmem:[%s3095_s14 + $0x1e0] sm:$0xff]  ;;  %v333_v16 = vld [vmem:[%s3095_s14 + $0xe8] sm:$0xff] }
  0x2e   : > { %2566 = vmatmul.mubr.msk.f32.gmra.mxu1 %vm383_vm0, %v341_v24  ;;  %2615 = vmatprep.subr.mxu1 %v1100_v25  ;;  %v334_v17 = vld [vmem:[%s3095_s14 + $0xf0] sm:$0xff]  ;;  %v365_v18 = vld [vmem:[%s3095_s14 + $0x1e8] sm:$0xff]  ;;  %v335_v20 = vld [vmem:[%s3095_s14 + $0xf8] sm:$0xff] }
  0x2f   : > { %2568 = vmatprep.mubr.msk.f32.mxu1 %vm383_vm0, %v342_v26  ;;  %2616 = vmatpush3.msra.mxu1 %v1100_v25  ;;  %v366_v19 = vld [vmem:[%s3095_s14 + $0x1f0] sm:$0xff]  ;;  %v367_v21 = vld [vmem:[%s3095_s14 + $0x1f8] sm:$0xff]  ;;  %v1090_v22 = vld [vmem:[%s3734_s3 + $0x8] sm:$0xff]  ;;  %s3671_s14 = scalar_lea.sflag [#allocation3], %s282_s13 }
  0x30   : > { %2521 = vmatmul.mubr.msk.f32.gmra.mxu0 %vm383_vm0, %v311_v27  ;;  %2617 = vmatprep.subr.mxu1 %v1099_v28  ;;  %v1089_v23 = vld [vmem:[%s3734_s3] sm:$0xff] }
  0x31   : > { %2523 = vmatprep.mubr.msk.f32.mxu0 %vm383_vm0, %v312_v29  ;;  %2618 = vmatpush3.msra.mxu1 %v1099_v28  ;;  %v3285_v24 = vld [vmem:[%s3733_s2] ss:$0 sm:$0xff] }
  0x32   : > { %2569 = vmatmul.mubr.msk.f32.gmra.mxu1 %vm383_vm0, %v343_v30  ;;  %2619 = vmatprep.subr.mxu1 %v1098_v31 }
  0x33   : > { %2571 = vmatprep.mubr.msk.f32.mxu1 %vm383_vm0, %v344_v32  ;;  %2620 = vmatpush3.msra.mxu1 %v1098_v31 }
  0x34   : > { %2524 = vmatmul.mubr.msk.f32.gmra.mxu0 %vm383_vm0, %v313_v33  ;;  %2621 = vmatprep.subr.mxu1 %v1097_v34 }
  0x35   : > { %2526 = vmatprep.mubr.msk.f32.mxu0 %vm383_vm0, %v314_v35  ;;  %2622 = vmatpush3.msra.mxu1 %v1097_v34 }
  0x36   : > { %2572 = vmatmul.mubr.msk.f32.gmra.mxu1 %vm383_vm0, %v345_v36  ;;  %2623 = vmatprep.subr.mxu1 %v1096_v37 }
  0x37   : > { %2574 = vmatprep.mubr.msk.f32.mxu1 %vm383_vm0, %v346_v38  ;;  %2624 = vmatpush3.msra.mxu1 %v1096_v37  ;;  %v1640_v37 = vld [vmem:[%s3736_s5 + $0x78] sm:$0xff]  ;;  %v1639_v38 = vld [vmem:[%s3736_s5 + $0x70] sm:$0xff] }
  0x38   : > { %2527 = vmatmul.mubr.msk.f32.gmra.mxu0 %vm383_vm0, %v315_v39  ;;  %2625 = vmatprep.subr.mxu1 %v1095_v40 }
  0x39   : > { %2529 = vmatprep.mubr.msk.f32.mxu0 %vm383_vm0, %v316_v41  ;;  %2626 = vmatpush3.msra.mxu1 %v1095_v40 }
  0x3a   : > { %2575 = vmatmul.mubr.msk.f32.gmra.mxu1 %vm383_vm0, %v347_v42  ;;  %2627 = vmatprep.subr.mxu1 %v1094_v43 }
  0x3b   : > { %2577 = vmatprep.mubr.msk.f32.mxu1 %vm383_vm0, %v348_v44  ;;  %2628 = vmatpush3.msra.mxu1 %v1094_v43 }
  0x3c   : > { %2530 = vmatmul.mubr.msk.f32.gmra.mxu0 %vm383_vm0, %v317_v45  ;;  %2629 = vmatprep.subr.mxu1 %v1093_v46  ;;  %v1638_v45 = vld [vmem:[%s3736_s5 + $0x68] sm:$0xff] }
  0x3d   : > { %2532 = vmatprep.mubr.msk.f32.mxu0 %vm383_vm0, %v318_v47  ;;  %2630 = vmatpush3.msra.mxu1 %v1093_v46 }
  0x3e   : > { %2578 = vmatmul.mubr.msk.f32.gmra.mxu1 %vm383_vm0, %v349_v48  ;;  %2631 = vmatprep.subr.mxu1 %v1092_v49 }
  0x3f   : > { %2580 = vmatprep.mubr.msk.f32.mxu1 %vm383_vm0, %v350_v50  ;;  %2632 = vmatpush3.msra.mxu1 %v1092_v49  ;;  %v1637_v50 = vld [vmem:[%s3736_s5 + $0x60] sm:$0xff] }
  0x40   : > { %2533 = vmatmul.mubr.msk.f32.gmra.mxu0 %vm383_vm0, %v319_v51  ;;  %2633 = vmatprep.subr.mxu1 %v1091_v52 }
  0x41   : > { %2535 = vmatprep.mubr.msk.f32.mxu0 %vm383_vm0, %v320_v53  ;;  %2634 = vmatpush3.msra.mxu1 %v1091_v52 }
  0x42   : > { %2581 = vmatmul.mubr.msk.f32.gmra.mxu1 %vm383_vm0, %v351_v54  ;;  %2635 = vmatprep.subr.mxu1 %v1090_v22 }
  0x43   : > { %2583 = vmatprep.mubr.msk.f32.mxu1 %vm383_vm0, %v352_v55  ;;  %2636 = vmatpush3.msra.mxu1 %v1090_v22 }
  0x44   : > { %2536 = vmatmul.mubr.msk.f32.gmra.mxu0 %vm383_vm0, %v321_v56  ;;  %2637 = vmatprep.subr.mxu1 %v1089_v23  ;;  %v1636_v56 = vld [vmem:[%s3736_s5 + $0x58] sm:$0xff] }
  0x45   : > { %2538 = vmatprep.mubr.msk.f32.mxu0 %vm383_vm0, %v322_v57  ;;  %2638 = vmatpush3.msra.mxu1 %v1089_v23 }
  0x46   : > { %2584 = vmatmul.mubr.msk.f32.gmra.mxu1 %vm383_vm0, %v353_v58  ;;  %2735 = vmatprep.subr.mxu0 %v1640_v37 }
  0x47   : > { %2586 = vmatprep.mubr.msk.f32.mxu1 %vm383_vm0, %v354_v59  ;;  %2736 = vmatpush3.msra.mxu0 %v1640_v37 }
  0x48   : > { %2539 = vmatmul.mubr.msk.f32.gmra.mxu0 %vm383_vm0, %v323_v60  ;;  %2737 = vmatprep.subr.mxu0 %v1639_v38 }
  0x49   : > { %2541 = vmatprep.mubr.msk.f32.mxu0 %vm383_vm0, %v324_v61  ;;  %2738 = vmatpush3.msra.mxu0 %v1639_v38  ;;  %v1635_v61 = vld [vmem:[%s3736_s5 + $0x50] sm:$0xff] }
  0x4a   : > { %2587 = vmatmul.mubr.msk.f32.gmra.mxu1 %vm383_vm0, %v355_v62  ;;  %2739 = vmatprep.subr.mxu0 %v1638_v45 }
  0x4b   : > { %2589 = vmatprep.mubr.msk.f32.mxu1 %vm383_vm0, %v356_v63  ;;  %2740 = vmatpush3.msra.mxu0 %v1638_v45 }
  0x4c   : > { %2542 = vmatmul.mubr.msk.f32.gmra.mxu0 %vm383_vm0, %v325_v0  ;;  %2741 = vmatprep.subr.mxu0 %v1637_v50 }
  0x4d   : > { %2544 = vmatprep.mubr.msk.f32.mxu0 %vm383_vm0, %v326_v1  ;;  %2742 = vmatpush3.msra.mxu0 %v1637_v50 }
  0x4e   : > { %2590 = vmatmul.mubr.msk.f32.gmra.mxu1 %vm383_vm0, %v357_v2  ;;  %2743 = vmatprep.subr.mxu0 %v1636_v56 }
  0x4f   : > { %2592 = vmatprep.mubr.msk.f32.mxu1 %vm383_vm0, %v358_v3  ;;  %2744 = vmatpush3.msra.mxu0 %v1636_v56  ;;  %v1634_v3 = vld [vmem:[%s3736_s5 + $0x48] sm:$0xff] }
  0x50   : > { %2545 = vmatmul.mubr.msk.f32.gmra.mxu0 %vm383_vm0, %v327_v4  ;;  %2745 = vmatprep.subr.mxu0 %v1635_v61 }
  0x51   : > { %2547 = vmatprep.mubr.msk.f32.mxu0 %vm383_vm0, %v328_v5  ;;  %2746 = vmatpush3.msra.mxu0 %v1635_v61 }
  0x52   : > { %2593 = vmatmul.mubr.msk.f32.gmra.mxu1 %vm383_vm0, %v359_v6  ;;  %2747 = vmatprep.subr.mxu0 %v1634_v3 }
  0x53   : > { %2595 = vmatprep.mubr.msk.f32.mxu1 %vm383_vm0, %v360_v7  ;;  %2748 = vmatpush3.msra.mxu0 %v1634_v3 }
  0x54   : > { %2548 = vmatmul.mubr.msk.f32.gmra.mxu0 %vm383_vm0, %v329_v8  ;;  %v1633_v8 = vld [vmem:[%s3736_s5 + $0x40] sm:$0xff] }
  0x55   : > { %2550 = vmatprep.mubr.msk.f32.mxu0 %vm383_vm0, %v330_v9  ;;  %2749 = vmatprep.subr.mxu0 %v1633_v8 }
  0x56   : > { %2596 = vmatmul.mubr.msk.f32.gmra.mxu1 %vm383_vm0, %v361_v10  ;;  %2750 = vmatpush3.msra.mxu0 %v1633_v8 }
  0x57   : > { %2598 = vmatprep.mubr.msk.f32.mxu1 %vm383_vm0, %v362_v11 }
  0x58   : > { %2551 = vmatmul.mubr.msk.f32.gmra.mxu0 %vm383_vm0, %v331_v12 }
  0x59   : > { %2553 = vmatprep.mubr.msk.f32.mxu0 %vm383_vm0, %v332_v13 }
  0x5a   : > { %2599 = vmatmul.mubr.msk.f32.gmra.mxu1 %vm383_vm0, %v363_v14  ;;  %v1632_v14 = vld [vmem:[%s3736_s5 + $0x38] sm:$0xff] }
  0x5b   : > { %2601 = vmatprep.mubr.msk.f32.mxu1 %vm383_vm0, %v364_v15  ;;  %2751 = vmatprep.subr.mxu0 %v1632_v14 }
  0x5c   : > { %2554 = vmatmul.mubr.msk.f32.gmra.mxu0 %vm383_vm0, %v333_v16 }
  0x5d   : > { %2556 = vmatprep.mubr.msk.f32.mxu0 %vm383_vm0, %v334_v17  ;;  %2752 = vmatpush3.msra.mxu0 %v1632_v14 }
  0x5e   : > { %2602 = vmatmul.mubr.msk.f32.gmra.mxu1 %vm383_vm0, %v365_v18 }
  0x5f   : > { %2604 = vmatprep.mubr.msk.f32.mxu1 %vm383_vm0, %v366_v19  ;;  %v1631_v19 = vld [vmem:[%s3736_s5 + $0x30] sm:$0xff] }
  0x60   : > { %2557 = vmatmul.mubr.msk.f32.gmra.mxu0 %vm383_vm0, %v335_v20  ;;  %2753 = vmatprep.subr.mxu0 %v1631_v19 }
  0x61   : > { %2754 = vmatpush3.msra.mxu0 %v1631_v19 }
  0x62   : > { %2605 = vmatmul.mubr.msk.f32.gmra.mxu1 %vm383_vm0, %v367_v21 }
  0xe4   : > { %v2513_v25 = vpop.f32.mrf.mxu0 }
  0xe5   : > { %v648_v26 = vadd.f32 %v2513_v25, %v3285_v24 }
  0xe6   : > { %v642_v27 = vpop.f32.mrf.mxu0  ;;  %v3288_v28 = vpop.f32.mrf.mxu1 }
  0xe7   : > { %v643_v29 = vadd.f32 %v3285_v24, %v642_v27  ;;  %v962_v30 = vmul.f32 0.01, %v648_v26 }
  0xe8   : > { %v2516_v31 = vpop.f32.mrf.mxu0  ;;  %v3291_v32 = vpop.f32.mrf.mxu1 }
  0xe9   : > { %v961_v33 = vmul.f32 0.01, %v643_v29  ;;  %v658_v34 = vadd.f32 %v2516_v31, %v3285_v24  ;;  %v1026_v41 = vmax.f32 %v648_v26, %v962_v30  ;;  %v1630_v26 = vld [vmem:[%s3736_s5 + $0x28] sm:$0xff] }
  0xea   : > { %v652_v35 = vpop.f32.mrf.mxu0  ;;  %v3294_v36 = vpop.f32.mrf.mxu1  ;;  %2755 = vmatprep.subr.mxu0 %v1630_v26 }
  0xeb   : > { %v1025_v39 = vmax.f32 %v643_v29, %v961_v33  ;;  %v653_v40 = vadd.f32 %v3285_v24, %v652_v35  ;;  %v964_v42 = vmul.f32 0.01, %v658_v34  ;;  %v1629_v33 = vld [vmem:[%s3736_s5 + $0x20] sm:$0xff]  ;;  %2756 = vmatpush3.msra.mxu0 %v1630_v26 }
  0xec   : > { %v2519_v43 = vpop.f32.mrf.mxu0  ;;  %v3303_v44 = vpop.f32.mrf.mxu1  ;;  %2757 = vmatprep.subr.mxu0 %v1629_v33 }
  0xed   : > { %v963_v46 = vmul.f32 0.01, %v653_v40  ;;  %v668_v47 = vadd.f32 %v2519_v43, %v3285_v24  ;;  %2639 = vmatprep.mubr.f32.mxu1 %v1025_v39  ;;  %v1028_v53 = vmax.f32 %v658_v34, %v964_v42  ;;  %2758 = vmatpush3.msra.mxu0 %v1629_v33 }
  0xee   : > { %v662_v48 = vpop.f32.mrf.mxu0  ;;  %2640 = vmatmul.mubr.f32.vlgmr.msra.gmra.mxu1 %v1026_v41  ;;  %v3309_v49 = vpop.f32.mrf.mxu1 }
  0xef   : > { %v1027_v51 = vmax.f32 %v653_v40, %v963_v46  ;;  %v663_v52 = vadd.f32 %v3285_v24, %v662_v48  ;;  %v966_v54 = vmul.f32 0.01, %v668_v47  ;;  %v1628_v40 = vld [vmem:[%s3736_s5 + $0x18] sm:$0xff]  ;;  %v1627_v46 = vld [vmem:[%s3736_s5 + $0x10] sm:$0xff] }
  0xf0   : > { %v2522_v55 = vpop.f32.mrf.mxu0  ;;  %v3319_v60 = vpop.f32.mrf.mxu1  ;;  %2759 = vmatprep.subr.mxu0 %v1628_v40 }
  0xf1   : > { %v965_v57 = vmul.f32 0.01, %v663_v52  ;;  %v678_v58 = vadd.f32 %v2522_v55, %v3285_v24  ;;  %2642 = vmatprep.mubr.f32.mxu1 %v1027_v51  ;;  %v1030_v0 = vmax.f32 %v668_v47, %v966_v54  ;;  %2760 = vmatpush3.msra.mxu0 %v1628_v40 }
  0xf2   : > { %v672_v59 = vpop.f32.mrf.mxu0  ;;  %2643 = vmatmul.mubr.f32.gmra.mxu1 %v1028_v53  ;;  %v3329_v7 = vpop.f32.mrf.mxu1  ;;  %2761 = vmatprep.subr.mxu0 %v1627_v46 }
  0xf3   : > { %v1029_v62 = vmax.f32 %v663_v52, %v965_v57  ;;  %v673_v63 = vadd.f32 %v3285_v24, %v672_v59  ;;  %v968_v1 = vmul.f32 0.01, %v678_v58  ;;  %2762 = vmatpush3.msra.mxu0 %v1627_v46 }
  0xf4   : > { %v2525_v2 = vpop.f32.mrf.mxu0  ;;  %v3339_v18 = vpop.f32.mrf.mxu1 }
  0xf5   : > { %v967_v4 = vmul.f32 0.01, %v673_v63  ;;  %v688_v5 = vadd.f32 %v2525_v2, %v3285_v24  ;;  %2645 = vmatprep.mubr.f32.mxu1 %v1029_v62  ;;  %v1032_v11 = vmax.f32 %v678_v58, %v968_v1 }
  0xf6   : > { %v682_v6 = vpop.f32.mrf.mxu0  ;;  %2646 = vmatmul.mubr.f32.gmra.mxu1 %v1030_v0  ;;  %v3349_v31 = vpop.f32.mrf.mxu1 }
  0xf7   : > { %v1031_v9 = vmax.f32 %v673_v63, %v967_v4  ;;  %v683_v10 = vadd.f32 %v3285_v24, %v682_v6  ;;  %v970_v12 = vmul.f32 0.01, %v688_v5 }
  0xf8   : > { %v2528_v13 = vpop.f32.mrf.mxu0  ;;  %v3359_v45 = vpop.f32.mrf.mxu1 }
  0xf9   : > { %v969_v15 = vmul.f32 0.01, %v683_v10  ;;  %v698_v16 = vadd.f32 %v2528_v13, %v3285_v24  ;;  %2648 = vmatprep.mubr.f32.mxu1 %v1031_v9  ;;  %v1034_v22 = vmax.f32 %v688_v5, %v970_v12 }
  0xfa   : > { %v692_v17 = vpop.f32.mrf.mxu0  ;;  %2649 = vmatmul.mubr.f32.gmra.mxu1 %v1032_v11  ;;  %v3366_v56 = vpop.f32.mrf.mxu1 }
  0xfb   : > { %v1033_v20 = vmax.f32 %v683_v10, %v969_v15  ;;  %v693_v21 = vadd.f32 %v3285_v24, %v692_v17  ;;  %v972_v23 = vmul.f32 0.01, %v698_v16 }
  0xfc   : > { %v2531_v25 = vpop.f32.mrf.mxu0  ;;  %v3370_v2 = vpop.f32.mrf.mxu1 }
  0xfd   : > { %v971_v27 = vmul.f32 0.01, %v693_v21  ;;  %v708_v29 = vadd.f32 %v2531_v25, %v3285_v24  ;;  %2651 = vmatprep.mubr.f32.mxu1 %v1033_v20  ;;  %v1036_v37 = vmax.f32 %v698_v16, %v972_v23 }
  0xfe   : > { %v702_v30 = vpop.f32.mrf.mxu0  ;;  %2652 = vmatmul.mubr.f32.gmra.mxu1 %v1034_v22  ;;  %v3374_v12 = vpop.f32.mrf.mxu1 }
  0xff   : > { %v1035_v34 = vmax.f32 %v693_v21, %v971_v27  ;;  %v703_v35 = vadd.f32 %v3285_v24, %v702_v30  ;;  %v974_v38 = vmul.f32 0.01, %v708_v29 }
 0x100   : > { %v2534_v39 = vpop.f32.mrf.mxu0  ;;  %v3378_v22 = vpop.f32.mrf.mxu1 }
 0x101   : > { %v973_v41 = vmul.f32 0.01, %v703_v35  ;;  %v718_v42 = vadd.f32 %v2534_v39, %v3285_v24  ;;  %2654 = vmatprep.mubr.f32.mxu1 %v1035_v34  ;;  %v1038_v50 = vmax.f32 %v708_v29, %v974_v38 }
 0x102   : > { %v712_v43 = vpop.f32.mrf.mxu0  ;;  %2655 = vmatmul.mubr.f32.gmra.mxu1 %v1036_v37 }
 0x103   : > { %v1037_v47 = vmax.f32 %v703_v35, %v973_v41  ;;  %v713_v48 = vadd.f32 %v3285_v24, %v712_v43  ;;  %v976_v51 = vmul.f32 0.01, %v718_v42  ;;  %v3382_v35 = vpop.f32.mrf.mxu1 }
 0x104   : > { %v2537_v52 = vpop.f32.mrf.mxu0 }
 0x105   : > { %v975_v53 = vmul.f32 0.01, %v713_v48  ;;  %v728_v54 = vadd.f32 %v2537_v52, %v3285_v24  ;;  %2657 = vmatprep.mubr.f32.mxu1 %v1037_v47  ;;  %v1040_v59 = vmax.f32 %v718_v42, %v976_v51  ;;  %v3386_v47 = vpop.f32.mrf.mxu1 }
 0x106   : > { %v722_v55 = vpop.f32.mrf.mxu0  ;;  %2658 = vmatmul.mubr.f32.gmra.mxu1 %v1038_v50 }
 0x107   : > { %v1039_v57 = vmax.f32 %v713_v48, %v975_v53  ;;  %v723_v58 = vadd.f32 %v3285_v24, %v722_v55  ;;  %v978_v61 = vmul.f32 0.01, %v728_v54 }
 0x108   : > { %v2540_v62 = vpop.f32.mrf.mxu0 }
 0x109   : > { %v977_v63 = vmul.f32 0.01, %v723_v58  ;;  %v738_v0 = vadd.f32 %v2540_v62, %v3285_v24  ;;  %2660 = vmatprep.mubr.f32.mxu1 %v1039_v57  ;;  %v1042_v5 = vmax.f32 %v728_v54, %v978_v61 }
 0x10a   : > { %v732_v1 = vpop.f32.mrf.mxu0  ;;  %2661 = vmatmul.mubr.f32.gmra.mxu1 %v1040_v59 }
 0x10b   : > { %v1041_v3 = vmax.f32 %v723_v58, %v977_v63  ;;  %v733_v4 = vadd.f32 %v3285_v24, %v732_v1  ;;  %v980_v6 = vmul.f32 0.01, %v738_v0  ;;  %v3390_v58 = vpop.f32.mrf.mxu1 }
 0x10c   : > { %v2543_v8 = vpop.f32.mrf.mxu0 }
 0x10d   : > { %v979_v9 = vmul.f32 0.01, %v733_v4  ;;  %v748_v10 = vadd.f32 %v2543_v8, %v3285_v24  ;;  %2663 = vmatprep.mubr.f32.mxu1 %v1041_v3  ;;  %v1044_v15 = vmax.f32 %v738_v0, %v980_v6  ;;  %v3396_v6 = vpop.f32.mrf.mxu1 }
 0x10e   : > { %v742_v11 = vpop.f32.mrf.mxu0  ;;  %2664 = vmatmul.mubr.f32.gmra.mxu1 %v1042_v5 }
 0x10f   : > { %v1043_v13 = vmax.f32 %v733_v4, %v979_v9  ;;  %v743_v14 = vadd.f32 %v3285_v24, %v742_v11  ;;  %v982_v16 = vmul.f32 0.01, %v748_v10  ;;  %v803_v4 = vadd.f32 %v3285_v24, %v3291_v32  ;;  %v3403_v32 = vpop.f32.mrf.mxu1 }
 0x110   : > { %v2546_v17 = vpop.f32.mrf.mxu0 }
 0x111   : > { %v981_v19 = vmul.f32 0.01, %v743_v14  ;;  %v758_v20 = vadd.f32 %v2546_v17, %v3285_v24  ;;  %2666 = vmatprep.mubr.f32.mxu1 %v1043_v13  ;;  %v1046_v26 = vmax.f32 %v748_v10, %v982_v16  ;;  %v808_v13 = vadd.f32 %v3288_v28, %v3285_v24 }
 0x112   : > { %v752_v21 = vpop.f32.mrf.mxu0  ;;  %2667 = vmatmul.mubr.f32.gmra.mxu1 %v1044_v15  ;;  %v993_v15 = vmul.f32 0.01, %v803_v4  ;;  %v813_v16 = vadd.f32 %v3285_v24, %v3303_v44  ;;  %v823_v28 = vadd.f32 %v3285_v24, %v3319_v60 }
 0x113   : > { %v1045_v23 = vmax.f32 %v743_v14, %v981_v19  ;;  %v753_v25 = vadd.f32 %v3285_v24, %v752_v21  ;;  %v984_v27 = vmul.f32 0.01, %v758_v20  ;;  %v818_v21 = vadd.f32 %v3294_v36, %v3285_v24 }
 0x114   : > { %v2549_v29 = vpop.f32.mrf.mxu0  ;;  %v833_v36 = vadd.f32 %v3285_v24, %v3339_v18  ;;  %v1626_v18 = vld [vmem:[%s3736_s5 + $0x8] sm:$0xff] }
 0x115   : > { %v983_v30 = vmul.f32 0.01, %v753_v25  ;;  %v768_v33 = vadd.f32 %v2549_v29, %v3285_v24  ;;  %2669 = vmatprep.mubr.f32.mxu1 %v1045_v23  ;;  %v1048_v39 = vmax.f32 %v758_v20, %v984_v27  ;;  %v994_v20 = vmul.f32 0.01, %v808_v13  ;;  %2763 = vmatprep.subr.mxu0 %v1626_v18 }
 0x116   : > { %v762_v34 = vpop.f32.mrf.mxu0  ;;  %2670 = vmatmul.mubr.f32.gmra.mxu1 %v1046_v26  ;;  %v1057_v23 = vmax.f32 %v803_v4, %v993_v15  ;;  %v3409_v26 = vpop.f32.mrf.mxu1  ;;  %v996_v27 = vmul.f32 0.01, %v818_v21  ;;  %v828_v29 = vadd.f32 %v3309_v49, %v3285_v24  ;;  %2764 = vmatpush3.msra.mxu0 %v1626_v18 }
 0x117   : > { %v1047_v37 = vmax.f32 %v753_v25, %v983_v30  ;;  %v763_v38 = vadd.f32 %v3285_v24, %v762_v34  ;;  %v986_v40 = vmul.f32 0.01, %v768_v33  ;;  %v995_v25 = vmul.f32 0.01, %v813_v16 }
 0x118   : > { %v2552_v41 = vpop.f32.mrf.mxu0  ;;  %v1058_v44 = vmax.f32 %v808_v13, %v994_v20  ;;  %v3415_v34 = vpop.f32.mrf.mxu1  ;;  %v998_v60 = vmul.f32 0.01, %v828_v29  ;;  %v893_v15 = vadd.f32 %v3285_v24, %v3409_v26 }
 0x119   : > { %v985_v42 = vmul.f32 0.01, %v763_v38  ;;  %v778_v43 = vadd.f32 %v2552_v41, %v3285_v24  ;;  %2672 = vmatprep.mubr.f32.mxu1 %v1047_v37  ;;  %v1050_v51 = vmax.f32 %v768_v33, %v986_v40  ;;  %v1059_v30 = vmax.f32 %v813_v16, %v995_v25 }
 0x11a   : > { %v772_v46 = vpop.f32.mrf.mxu0  ;;  %2673 = vmatmul.mubr.f32.gmra.mxu1 %v1048_v39  ;;  %v997_v33 = vmul.f32 0.01, %v823_v28  ;;  %v1060_v37 = vmax.f32 %v818_v21, %v996_v27  ;;  %v999_v40 = vmul.f32 0.01, %v833_v36  ;;  %v843_v41 = vadd.f32 %v3285_v24, %v3359_v45  ;;  %v902_v49 = vpop.f32.mrf.mxu1  ;;  %v1625_v45 = vld [vmem:[%s3736_s5] sm:$0xff] }
 0x11b   : > { %v1049_v48 = vmax.f32 %v763_v38, %v985_v42  ;;  %v773_v50 = vadd.f32 %v3285_v24, %v772_v46  ;;  %v988_v52 = vmul.f32 0.01, %v778_v43  ;;  %v838_v38 = vadd.f32 %v3329_v7, %v3285_v24  ;;  %2765 = vmatprep.subr.mxu0 %v1625_v45 }
 0x11c   : > { %v2555_v53 = vpop.f32.mrf.mxu0  ;;  %v1061_v39 = vmax.f32 %v823_v28, %v997_v33  ;;  %v1062_v42 = vmax.f32 %v828_v29, %v998_v60  ;;  %v848_v46 = vadd.f32 %v3349_v31, %v3285_v24  ;;  %v1001_v7 = vmul.f32 0.01, %v843_v41  ;;  %2766 = vmatpush3.msra.mxu0 %v1625_v45 }
 0x11d   : > { %v987_v54 = vmul.f32 0.01, %v773_v50  ;;  %v788_v55 = vadd.f32 %v2555_v53, %v3285_v24  ;;  %2675 = vmatprep.mubr.f32.mxu1 %v1049_v48  ;;  %v1052_v62 = vmax.f32 %v778_v43, %v988_v52  ;;  %v1000_v43 = vmul.f32 0.01, %v838_v38 }
 0x11e   : > { %v782_v57 = vpop.f32.mrf.mxu0  ;;  %2676 = vmatmul.mubr.f32.gmra.mxu1 %v1050_v51  ;;  %v1063_v48 = vmax.f32 %v833_v36, %v999_v40  ;;  %v2594_v51 = vpop.f32.mrf.mxu1  ;;  %v1002_v53 = vmul.f32 0.01, %v848_v46  ;;  %v858_v31 = vadd.f32 %v3366_v56, %v3285_v24  ;;  %v1011_v20 = vmul.f32 0.01, %v893_v15 }
 0x11f   : > { %v1051_v59 = vmax.f32 %v773_v50, %v987_v54  ;;  %v783_v61 = vadd.f32 %v3285_v24, %v782_v57  ;;  %v990_v63 = vmul.f32 0.01, %v788_v55  ;;  %v853_v50 = vadd.f32 %v3285_v24, %v3370_v2 }
 0x120   : > { %v2558_v0 = vpop.f32.mrf.mxu0  ;;  %v1064_v52 = vmax.f32 %v838_v38, %v1000_v43  ;;  %v1065_v54 = vmax.f32 %v843_v41, %v1001_v7  ;;  %v863_v2 = vadd.f32 %v3285_v24, %v3378_v22  ;;  %v912_v57 = vpop.f32.mrf.mxu1  ;;  %v878_v22 = vadd.f32 %v3382_v35, %v3285_v24 }
 0x121   : > { %v989_v1 = vmul.f32 0.01, %v783_v61  ;;  %v798_v3 = vadd.f32 %v2558_v0, %v3285_v24  ;;  %2678 = vmatprep.mubr.f32.mxu1 %v1051_v59  ;;  %v1054_v10 = vmax.f32 %v788_v55, %v990_v63  ;;  %v1003_v55 = vmul.f32 0.01, %v853_v50 }
 0x122   : > { %v792_v5 = vpop.f32.mrf.mxu0  ;;  %2679 = vmatmul.mubr.f32.gmra.mxu1 %v1052_v62  ;;  %v1066_v59 = vmax.f32 %v848_v46, %v1002_v53  ;;  %v868_v62 = vadd.f32 %v3374_v12, %v3285_v24  ;;  %v1005_v0 = vmul.f32 0.01, %v863_v2  ;;  %v2597_v56 = vpop.f32.mrf.mxu1  ;;  %v903_v21 = vadd.f32 %v3285_v24, %v902_v49 }
 0x123   : > { %v1053_v8 = vmax.f32 %v783_v61, %v989_v1  ;;  %v793_v9 = vadd.f32 %v3285_v24, %v792_v5  ;;  %v992_v11 = vmul.f32 0.01, %v798_v3  ;;  %v1004_v61 = vmul.f32 0.01, %v858_v31 }
 0x124   : > { %v1067_v63 = vmax.f32 %v853_v50, %v1003_v55  ;;  %v873_v1 = vadd.f32 %v3285_v24, %v3386_v47  ;;  %v1006_v4 = vmul.f32 0.01, %v868_v62  ;;  %v1069_v5 = vmax.f32 %v863_v2, %v1005_v0  ;;  %v922_v12 = vpop.f32.mrf.mxu1 }
 0x125   : > { %v991_v14 = vmul.f32 0.01, %v793_v9  ;;  %2681 = vmatprep.mubr.f32.mxu1 %v1053_v8  ;;  %v1056_v19 = vmax.f32 %v798_v3, %v992_v11  ;;  %v1068_v3 = vmax.f32 %v858_v31, %v1004_v61  ;;  %v1008_v11 = vmul.f32 0.01, %v878_v22 }
 0x126   : > { %2682 = vmatmul.mubr.f32.gmra.mxu1 %v1054_v10  ;;  %v1007_v8 = vmul.f32 0.01, %v873_v1  ;;  %v1070_v10 = vmax.f32 %v868_v62, %v1006_v4  ;;  %v888_v47 = vadd.f32 %v3390_v58, %v3285_v24  ;;  %v2600_v35 = vpop.f32.mrf.mxu1  ;;  %v908_v28 = vadd.f32 %v3415_v34, %v3285_v24  ;;  %v3465_v4 = vld [vmem:[%s3735_s4] ss:$0 sm:$0xff] }
 0x127   : > { %v1055_v17 = vmax.f32 %v793_v9, %v991_v14  ;;  %v883_v9 = vadd.f32 %v3285_v24, %v3396_v6  ;;  %v1072_v16 = vmax.f32 %v878_v22, %v1008_v11  ;;  %v898_v6 = vadd.f32 %v3403_v32, %v3285_v24 }
 0x128   : > { %v1071_v13 = vmax.f32 %v873_v1, %v1007_v8  ;;  %v1075_v26 = vmax.f32 %v893_v15, %v1011_v20  ;;  %v913_v27 = vadd.f32 %v3285_v24, %v912_v57  ;;  %v918_v33 = vadd.f32 %v2594_v51, %v3285_v24 }
 0x129   : > { %2684 = vmatprep.mubr.f32.mxu1 %v1055_v17  ;;  %v1009_v14 = vmul.f32 0.01, %v883_v9  ;;  %v1010_v17 = vmul.f32 0.01, %v888_v47  ;;  %v1012_v25 = vmul.f32 0.01, %v898_v6  ;;  %v923_v60 = vadd.f32 %v3285_v24, %v922_v12 }
 0x12a   : > { %2685 = vmatmul.mubr.f32.gmra.mxu1 %v1056_v19  ;;  %v1016_v34 = vmul.f32 0.01, %v918_v33  ;;  %v928_v40 = vadd.f32 %v2597_v56, %v3285_v24 }
 0x12b   : > { %2687 = vmatprep.mubr.f32.mxu1 %v1057_v23  ;;  %v1073_v19 = vmax.f32 %v883_v9, %v1009_v14  ;;  %v932_v23 = vpop.f32.mrf.mxu1  ;;  %v1074_v58 = vmax.f32 %v888_v47, %v1010_v17  ;;  %v1076_v32 = vmax.f32 %v898_v6, %v1012_v25  ;;  %v1017_v49 = vmul.f32 0.01, %v923_v60 }
 0x12c   : > { %v933_v18 = vadd.f32 %v3285_v24, %v932_v23  ;;  %v1080_v43 = vmax.f32 %v918_v33, %v1016_v34  ;;  %v1018_v46 = vmul.f32 0.01, %v928_v40 }
 0x12d   : > { %v2603_v29 = vpop.f32.mrf.mxu1  ;;  %v1081_v7 = vmax.f32 %v923_v60, %v1017_v49 }
 0x12e   : > { %2688 = vmatmul.mubr.f32.gmra.mxu1 %v1058_v44  ;;  %v1013_v44 = vmul.f32 0.01, %v903_v21  ;;  %v1019_v50 = vmul.f32 0.01, %v933_v18  ;;  %v948_v31 = vadd.f32 %v2603_v29, %v3285_v24 }
 0x12f   : > { %2690 = vmatprep.mubr.f32.mxu1 %v1059_v30  ;;  %v1014_v30 = vmul.f32 0.01, %v908_v28  ;;  %v942_v38 = vpop.f32.mrf.mxu1 }
 0x130   : > { %v1077_v36 = vmax.f32 %v903_v21, %v1013_v44  ;;  %v943_v45 = vadd.f32 %v3285_v24, %v942_v38 }
 0x132   : > { %2691 = vmatmul.mubr.f32.gmra.mxu1 %v1060_v37  ;;  %v1015_v37 = vmul.f32 0.01, %v913_v27  ;;  %v1021_v55 = vmul.f32 0.01, %v943_v45 }
 0x133   : > { %2693 = vmatprep.mubr.f32.mxu1 %v1061_v39  ;;  %v1078_v39 = vmax.f32 %v908_v28, %v1014_v30 }
 0x134   : > { %v1079_v41 = vmax.f32 %v913_v27, %v1015_v37  ;;  %v1085_v62 = vmax.f32 %v943_v45, %v1021_v55 }
 0x136   : > { %2694 = vmatmul.mubr.f32.gmra.mxu1 %v1062_v42  ;;  %v2606_v42 = vpop.f32.mrf.mxu1 }
 0x137   : > { %2696 = vmatprep.mubr.f32.mxu1 %v1063_v48  ;;  %v938_v48 = vadd.f32 %v2600_v35, %v3285_v24  ;;  %v958_v61 = vadd.f32 %v2606_v42, %v3285_v24 }
 0x138   : > { %v952_v51 = vpop.f32.mrf.mxu1 }
 0x139   : > { %v1020_v53 = vmul.f32 0.01, %v938_v48  ;;  %v953_v2 = vadd.f32 %v3285_v24, %v952_v51  ;;  %v1024_v1 = vmul.f32 0.01, %v958_v61 }
 0x13a   : > { %2697 = vmatmul.mubr.f32.gmra.mxu1 %v1064_v52  ;;  %v1082_v52 = vmax.f32 %v928_v40, %v1018_v46 }
 0x13b   : > { %2699 = vmatprep.mubr.f32.mxu1 %v1065_v54  ;;  %v1083_v54 = vmax.f32 %v933_v18, %v1019_v50  ;;  %v1084_v57 = vmax.f32 %v938_v48, %v1020_v53 }
 0x13e   : > { %2700 = vmatmul.mubr.f32.gmra.mxu1 %v1066_v59  ;;  %v1022_v59 = vmul.f32 0.01, %v948_v31 }
 0x13f   : > { %2702 = vmatprep.mubr.f32.mxu1 %v1067_v63  ;;  %v1023_v63 = vmul.f32 0.01, %v953_v2 }
 0x140   : > { %v1086_v0 = vmax.f32 %v948_v31, %v1022_v59 }
 0x141   : > { %v1087_v56 = vmax.f32 %v953_v2, %v1023_v63 }
 0x142   : > { %2703 = vmatmul.mubr.f32.gmra.mxu1 %v1068_v3  ;;  %v1088_v3 = vmax.f32 %v958_v61, %v1024_v1 }
 0x143   : > { %2705 = vmatprep.mubr.f32.mxu1 %v1069_v5 }
 0x146   : > { %2706 = vmatmul.mubr.f32.gmra.mxu1 %v1070_v10 }
 0x147   : > { %2708 = vmatprep.mubr.f32.mxu1 %v1071_v13 }
 0x14a   : > { %2709 = vmatmul.mubr.f32.gmra.mxu1 %v1072_v16 }
 0x14b   : > { %2711 = vmatprep.mubr.f32.mxu1 %v1073_v19 }
 0x14e   : > { %2712 = vmatmul.mubr.f32.gmra.mxu1 %v1074_v58 }
 0x14f   : > { %2714 = vmatprep.mubr.f32.mxu1 %v1075_v26 }
 0x152   : > { %2715 = vmatmul.mubr.f32.gmra.mxu1 %v1076_v32 }
 0x153   : > { %2717 = vmatprep.mubr.f32.mxu1 %v1077_v36 }
 0x156   : > { %2718 = vmatmul.mubr.f32.gmra.mxu1 %v1078_v39 }
 0x157   : > { %2720 = vmatprep.mubr.f32.mxu1 %v1079_v41 }
 0x15a   : > { %2721 = vmatmul.mubr.f32.gmra.mxu1 %v1080_v43 }
 0x15b   : > { %2723 = vmatprep.mubr.f32.mxu1 %v1081_v7 }
 0x15e   : > { %2724 = vmatmul.mubr.f32.gmra.mxu1 %v1082_v52 }
 0x15f   : > { %2726 = vmatprep.mubr.f32.mxu1 %v1083_v54 }
 0x162   : > { %2727 = vmatmul.mubr.f32.gmra.mxu1 %v1084_v57 }
 0x163   : > { %2729 = vmatprep.mubr.f32.mxu1 %v1085_v62 }
 0x166   : > { %2730 = vmatmul.mubr.f32.gmra.mxu1 %v1086_v0 }
 0x167   : > { %2732 = vmatprep.mubr.f32.mxu1 %v1087_v56 }
 0x16a   : > { %2733 = vmatmul.mubr.f32.gmra.mxu1 %v1088_v3 }
 0x1ae   : > { %v2641_v22 = vpop.f32.mrf.mxu1 }
 0x1af   : > { %v1184_v5 = vadd.f32 %v2641_v22, %v3465_v4 }
 0x1b0   : > { %v1178_v24 = vpop.f32.mrf.mxu1 }
 0x1b1   : > { %v1179_v8 = vadd.f32 %v3465_v4, %v1178_v24  ;;  %v1498_v9 = vmul.f32 0.01, %v1184_v5 }
 0x1b2   : > { %v2644_v12 = vpop.f32.mrf.mxu1 }
 0x1b3   : > { %v1497_v10 = vmul.f32 0.01, %v1179_v8  ;;  %v1194_v11 = vadd.f32 %v2644_v12, %v3465_v4  ;;  %v1562_v15 = vmax.f32 %v1184_v5, %v1498_v9 }
 0x1b4   : > { %v1188_v47 = vpop.f32.mrf.mxu1 }
 0x1b5   : > { %v1561_v13 = vmax.f32 %v1179_v8, %v1497_v10  ;;  %v1189_v14 = vadd.f32 %v3465_v4, %v1188_v47  ;;  %v1500_v35 = vmul.f32 0.01, %v1194_v11 }
 0x1b6   : > { %v2647_v16 = vpop.f32.mrf.mxu1 }
 0x1b7   : > { %v1499_v17 = vmul.f32 0.01, %v1189_v14  ;;  %v1204_v6 = vadd.f32 %v2647_v16, %v3465_v4  ;;  %2767 = vmatprep.mubr.f32.mxu0 %v1561_v13  ;;  %v1564_v23 = vmax.f32 %v1194_v11, %v1500_v35 }
 0x1b8   : > { %v1198_v19 = vpop.f32.mrf.mxu1  ;;  %2768 = vmatmul.mubr.f32.vlgmr.msra.gmra.mxu0 %v1562_v15 }
 0x1b9   : > { %v1563_v20 = vmax.f32 %v1189_v14, %v1499_v17  ;;  %v1199_v21 = vadd.f32 %v3465_v4, %v1198_v19  ;;  %v1502_v58 = vmul.f32 0.01, %v1204_v6 }
 0x1ba   : > { %v2650_v25 = vpop.f32.mrf.mxu1 }
 0x1bb   : > { %v1501_v28 = vmul.f32 0.01, %v1199_v21  ;;  %v1214_v26 = vadd.f32 %v2650_v25, %v3465_v4  ;;  %2770 = vmatprep.mubr.f32.mxu0 %v1563_v20  ;;  %v1566_v32 = vmax.f32 %v1204_v6, %v1502_v58 }
 0x1bc   : > { %v1208_v44 = vpop.f32.mrf.mxu1  ;;  %2771 = vmatmul.mubr.f32.gmra.mxu0 %v1564_v23 }
 0x1bd   : > { %v1565_v27 = vmax.f32 %v1199_v21, %v1501_v28  ;;  %v1209_v29 = vadd.f32 %v3465_v4, %v1208_v44  ;;  %v1504_v30 = vmul.f32 0.01, %v1214_v26 }
 0x1be   : > { %v2653_v33 = vpop.f32.mrf.mxu1 }
 0x1bf   : > { %v1503_v36 = vmul.f32 0.01, %v1209_v29  ;;  %v1224_v37 = vadd.f32 %v2653_v33, %v3465_v4  ;;  %2773 = vmatprep.mubr.f32.mxu0 %v1565_v27  ;;  %v1568_v34 = vmax.f32 %v1214_v26, %v1504_v30 }
 0x1c0   : > { %v1218_v60 = vpop.f32.mrf.mxu1  ;;  %2774 = vmatmul.mubr.f32.gmra.mxu0 %v1566_v32 }
 0x1c1   : > { %v1567_v38 = vmax.f32 %v1209_v29, %v1503_v36  ;;  %v1219_v39 = vadd.f32 %v3465_v4, %v1218_v60  ;;  %v1506_v40 = vmul.f32 0.01, %v1224_v37 }
 0x1c2   : > { %v2656_v41 = vpop.f32.mrf.mxu1 }
 0x1c3   : > { %v1505_v49 = vmul.f32 0.01, %v1219_v39  ;;  %v1234_v18 = vadd.f32 %v2656_v41, %v3465_v4  ;;  %2776 = vmatprep.mubr.f32.mxu0 %v1567_v38  ;;  %v1570_v48 = vmax.f32 %v1224_v37, %v1506_v40 }
 0x1c4   : > { %v1228_v42 = vpop.f32.mrf.mxu1  ;;  %2777 = vmatmul.mubr.f32.gmra.mxu0 %v1568_v34 }
 0x1c5   : > { %v1569_v43 = vmax.f32 %v1219_v39, %v1505_v49  ;;  %v1229_v46 = vadd.f32 %v3465_v4, %v1228_v42  ;;  %v1508_v7 = vmul.f32 0.01, %v1234_v18 }
 0x1c6   : > { %v2659_v50 = vpop.f32.mrf.mxu1 }
 0x1c7   : > { %v1507_v45 = vmul.f32 0.01, %v1229_v46  ;;  %v1244_v51 = vadd.f32 %v2659_v50, %v3465_v4  ;;  %2779 = vmatprep.mubr.f32.mxu0 %v1569_v43  ;;  %v1572_v54 = vmax.f32 %v1234_v18, %v1508_v7 }
 0x1c8   : > { %v1238_v52 = vpop.f32.mrf.mxu1  ;;  %2780 = vmatmul.mubr.f32.gmra.mxu0 %v1570_v48 }
 0x1c9   : > { %v1571_v53 = vmax.f32 %v1229_v46, %v1507_v45  ;;  %v1239_v31 = vadd.f32 %v3465_v4, %v1238_v52  ;;  %v1510_v55 = vmul.f32 0.01, %v1244_v51 }
 0x1ca   : > { %v2662_v2 = vpop.f32.mrf.mxu1 }
 0x1cb   : > { %v1509_v57 = vmul.f32 0.01, %v1239_v31  ;;  %v1254_v59 = vadd.f32 %v2662_v2, %v3465_v4  ;;  %2782 = vmatprep.mubr.f32.mxu0 %v1571_v53  ;;  %v1574_v0 = vmax.f32 %v1244_v51, %v1510_v55 }
 0x1cc   : > { %v1248_v61 = vpop.f32.mrf.mxu1  ;;  %2783 = vmatmul.mubr.f32.gmra.mxu0 %v1572_v54 }
 0x1cd   : > { %v1573_v62 = vmax.f32 %v1239_v31, %v1509_v57  ;;  %v1249_v63 = vadd.f32 %v3465_v4, %v1248_v61  ;;  %v1512_v1 = vmul.f32 0.01, %v1254_v59 }
 0x1ce   : > { %v2665_v56 = vpop.f32.mrf.mxu1 }
 0x1cf   : > { %v1511_v3 = vmul.f32 0.01, %v1249_v63  ;;  %v1264_v22 = vadd.f32 %v2665_v56, %v3465_v4  ;;  %2785 = vmatprep.mubr.f32.mxu0 %v1573_v62  ;;  %v1576_v9 = vmax.f32 %v1254_v59, %v1512_v1 }
 0x1d0   : > { %v1258_v5 = vpop.f32.mrf.mxu1  ;;  %2786 = vmatmul.mubr.f32.gmra.mxu0 %v1574_v0 }
 0x1d1   : > { %v1575_v24 = vmax.f32 %v1249_v63, %v1511_v3  ;;  %v1259_v8 = vadd.f32 %v3465_v4, %v1258_v5  ;;  %v1514_v12 = vmul.f32 0.01, %v1264_v22 }
 0x1d2   : > { %v2668_v10 = vpop.f32.mrf.mxu1 }
 0x1d3   : > { %v1513_v11 = vmul.f32 0.01, %v1259_v8  ;;  %v1274_v47 = vadd.f32 %v2668_v10, %v3465_v4  ;;  %2788 = vmatprep.mubr.f32.mxu0 %v1575_v24  ;;  %v1578_v35 = vmax.f32 %v1264_v22, %v1514_v12 }
 0x1d4   : > { %v1268_v13 = vpop.f32.mrf.mxu1  ;;  %2789 = vmatmul.mubr.f32.gmra.mxu0 %v1576_v9 }
 0x1d5   : > { %v1577_v14 = vmax.f32 %v1259_v8, %v1513_v11  ;;  %v1269_v15 = vadd.f32 %v3465_v4, %v1268_v13  ;;  %v1516_v16 = vmul.f32 0.01, %v1274_v47 }
 0x1d6   : > { %v2671_v17 = vpop.f32.mrf.mxu1 }
 0x1d7   : > { %v1515_v6 = vmul.f32 0.01, %v1269_v15  ;;  %v1284_v19 = vadd.f32 %v2671_v17, %v3465_v4  ;;  %2791 = vmatprep.mubr.f32.mxu0 %v1577_v14  ;;  %v1580_v58 = vmax.f32 %v1274_v47, %v1516_v16 }
 0x1d8   : > { %v1278_v20 = vpop.f32.mrf.mxu1  ;;  %2792 = vmatmul.mubr.f32.gmra.mxu0 %v1578_v35 }
 0x1d9   : > { %v1579_v21 = vmax.f32 %v1269_v15, %v1515_v6  ;;  %v1279_v23 = vadd.f32 %v3465_v4, %v1278_v20  ;;  %v1518_v25 = vmul.f32 0.01, %v1284_v19 }
 0x1da   : > { %v2674_v28 = vpop.f32.mrf.mxu1 }
 0x1db   : > { %v1517_v26 = vmul.f32 0.01, %v1279_v23  ;;  %v1294_v44 = vadd.f32 %v2674_v28, %v3465_v4  ;;  %2794 = vmatprep.mubr.f32.mxu0 %v1579_v21  ;;  %v1582_v30 = vmax.f32 %v1284_v19, %v1518_v25 }
 0x1dc   : > { %v1288_v27 = vpop.f32.mrf.mxu1  ;;  %2795 = vmatmul.mubr.f32.gmra.mxu0 %v1580_v58 }
 0x1dd   : > { %v1581_v29 = vmax.f32 %v1279_v23, %v1517_v26  ;;  %v1289_v32 = vadd.f32 %v3465_v4, %v1288_v27  ;;  %v1520_v33 = vmul.f32 0.01, %v1294_v44 }
 0x1de   : > { %v2677_v36 = vpop.f32.mrf.mxu1 }
 0x1df   : > { %v1519_v37 = vmul.f32 0.01, %v1289_v32  ;;  %v1304_v60 = vadd.f32 %v2677_v36, %v3465_v4  ;;  %2797 = vmatprep.mubr.f32.mxu0 %v1581_v29  ;;  %v1584_v40 = vmax.f32 %v1294_v44, %v1520_v33 }
 0x1e0   : > { %v1298_v38 = vpop.f32.mrf.mxu1  ;;  %2798 = vmatmul.mubr.f32.gmra.mxu0 %v1582_v30 }
 0x1e1   : > { %v1583_v39 = vmax.f32 %v1289_v32, %v1519_v37  ;;  %v1299_v34 = vadd.f32 %v3465_v4, %v1298_v38  ;;  %v1522_v41 = vmul.f32 0.01, %v1304_v60 }
 0x1e2   : > { %v2680_v49 = vpop.f32.mrf.mxu1 }
 0x1e3   : > { %v1521_v18 = vmul.f32 0.01, %v1299_v34  ;;  %v1314_v42 = vadd.f32 %v2680_v49, %v3465_v4  ;;  %2800 = vmatprep.mubr.f32.mxu0 %v1583_v39  ;;  %v1586_v7 = vmax.f32 %v1304_v60, %v1522_v41 }
 0x1e4   : > { %v1308_v43 = vpop.f32.mrf.mxu1  ;;  %2801 = vmatmul.mubr.f32.gmra.mxu0 %v1584_v40 }
 0x1e5   : > { %v1585_v46 = vmax.f32 %v1299_v34, %v1521_v18  ;;  %v1309_v48 = vadd.f32 %v3465_v4, %v1308_v43  ;;  %v1524_v50 = vmul.f32 0.01, %v1314_v42 }
 0x1e6   : > { %v2683_v45 = vpop.f32.mrf.mxu1 }
 0x1e7   : > { %v1523_v51 = vmul.f32 0.01, %v1309_v48  ;;  %v1324_v52 = vadd.f32 %v2683_v45, %v3465_v4  ;;  %2803 = vmatprep.mubr.f32.mxu0 %v1585_v46  ;;  %v1588_v55 = vmax.f32 %v1314_v42, %v1524_v50 }
 0x1e8   : > { %v1318_v53 = vpop.f32.mrf.mxu1  ;;  %2804 = vmatmul.mubr.f32.gmra.mxu0 %v1586_v7 }
 0x1e9   : > { %v1587_v31 = vmax.f32 %v1309_v48, %v1523_v51  ;;  %v1319_v54 = vadd.f32 %v3465_v4, %v1318_v53  ;;  %v1526_v2 = vmul.f32 0.01, %v1324_v52 }
 0x1ea   : > { %v2686_v57 = vpop.f32.mrf.mxu1 }
 0x1eb   : > { %v1525_v59 = vmul.f32 0.01, %v1319_v54  ;;  %v1334_v61 = vadd.f32 %v2686_v57, %v3465_v4  ;;  %2806 = vmatprep.mubr.f32.mxu0 %v1587_v31  ;;  %v1590_v1 = vmax.f32 %v1324_v52, %v1526_v2 }
 0x1ec   : > { %v1328_v62 = vpop.f32.mrf.mxu1  ;;  %2807 = vmatmul.mubr.f32.gmra.mxu0 %v1588_v55 }
 0x1ed   : > { %v1589_v63 = vmax.f32 %v1319_v54, %v1525_v59  ;;  %v1329_v0 = vadd.f32 %v3465_v4, %v1328_v62  ;;  %v1528_v56 = vmul.f32 0.01, %v1334_v61 }
 0x1ee   : > { %v2689_v3 = vpop.f32.mrf.mxu1 }
 0x1ef   : > { %v1527_v22 = vmul.f32 0.01, %v1329_v0  ;;  %v1344_v5 = vadd.f32 %v2689_v3, %v3465_v4  ;;  %2809 = vmatprep.mubr.f32.mxu0 %v1589_v63  ;;  %v1592_v12 = vmax.f32 %v1334_v61, %v1528_v56 }
 0x1f0   : > { %v1338_v24 = vpop.f32.mrf.mxu1  ;;  %2810 = vmatmul.mubr.f32.gmra.mxu0 %v1590_v1 }
 0x1f1   : > { %v1591_v8 = vmax.f32 %v1329_v0, %v1527_v22  ;;  %v1339_v9 = vadd.f32 %v3465_v4, %v1338_v24  ;;  %v1530_v10 = vmul.f32 0.01, %v1344_v5 }
 0x1f2   : > { %v2692_v11 = vpop.f32.mrf.mxu1 }
 0x1f3   : > { %v1529_v47 = vmul.f32 0.01, %v1339_v9  ;;  %v1354_v13 = vadd.f32 %v2692_v11, %v3465_v4  ;;  %2812 = vmatprep.mubr.f32.mxu0 %v1591_v8  ;;  %v1594_v16 = vmax.f32 %v1344_v5, %v1530_v10 }
 0x1f4   : > { %v1348_v14 = vpop.f32.mrf.mxu1  ;;  %2813 = vmatmul.mubr.f32.gmra.mxu0 %v1592_v12 }
 0x1f5   : > { %v1593_v15 = vmax.f32 %v1339_v9, %v1529_v47  ;;  %v1349_v35 = vadd.f32 %v3465_v4, %v1348_v14  ;;  %v1532_v17 = vmul.f32 0.01, %v1354_v13 }
 0x1f6   : > { %v2695_v6 = vpop.f32.mrf.mxu1 }
 0x1f7   : > { %v1531_v19 = vmul.f32 0.01, %v1349_v35  ;;  %v1364_v20 = vadd.f32 %v2695_v6, %v3465_v4  ;;  %2815 = vmatprep.mubr.f32.mxu0 %v1593_v15  ;;  %v1596_v25 = vmax.f32 %v1354_v13, %v1532_v17 }
 0x1f8   : > { %v1358_v21 = vpop.f32.mrf.mxu1  ;;  %2816 = vmatmul.mubr.f32.gmra.mxu0 %v1594_v16 }
 0x1f9   : > { %v1595_v23 = vmax.f32 %v1349_v35, %v1531_v19  ;;  %v1359_v58 = vadd.f32 %v3465_v4, %v1358_v21  ;;  %v1534_v28 = vmul.f32 0.01, %v1364_v20 }
 0x1fa   : > { %v2698_v26 = vpop.f32.mrf.mxu1 }
 0x1fb   : > { %v1533_v44 = vmul.f32 0.01, %v1359_v58  ;;  %v1374_v27 = vadd.f32 %v2698_v26, %v3465_v4  ;;  %2818 = vmatprep.mubr.f32.mxu0 %v1595_v23  ;;  %v1598_v33 = vmax.f32 %v1364_v20, %v1534_v28 }
 0x1fc   : > { %v1368_v29 = vpop.f32.mrf.mxu1  ;;  %2819 = vmatmul.mubr.f32.gmra.mxu0 %v1596_v25 }
 0x1fd   : > { %v1597_v32 = vmax.f32 %v1359_v58, %v1533_v44  ;;  %v1369_v30 = vadd.f32 %v3465_v4, %v1368_v29  ;;  %v1536_v36 = vmul.f32 0.01, %v1374_v27 }
 0x1fe   : > { %v2701_v37 = vpop.f32.mrf.mxu1 }
 0x1ff   : > { %v1535_v60 = vmul.f32 0.01, %v1369_v30  ;;  %v1384_v38 = vadd.f32 %v2701_v37, %v3465_v4  ;;  %2821 = vmatprep.mubr.f32.mxu0 %v1597_v32  ;;  %v1600_v41 = vmax.f32 %v1374_v27, %v1536_v36 }
 0x200   : > { %v1378_v39 = vpop.f32.mrf.mxu1  ;;  %2822 = vmatmul.mubr.f32.gmra.mxu0 %v1598_v33 }
 0x201   : > { %v1599_v34 = vmax.f32 %v1369_v30, %v1535_v60  ;;  %v1379_v40 = vadd.f32 %v3465_v4, %v1378_v39  ;;  %v1538_v49 = vmul.f32 0.01, %v1384_v38 }
 0x202   : > { %v2704_v18 = vpop.f32.mrf.mxu1 }
 0x203   : > { %v1537_v42 = vmul.f32 0.01, %v1379_v40  ;;  %v1394_v43 = vadd.f32 %v2704_v18, %v3465_v4  ;;  %2824 = vmatprep.mubr.f32.mxu0 %v1599_v34  ;;  %v1602_v50 = vmax.f32 %v1384_v38, %v1538_v49 }
 0x204   : > { %v1388_v46 = vpop.f32.mrf.mxu1  ;;  %2825 = vmatmul.mubr.f32.gmra.mxu0 %v1600_v41 }
 0x205   : > { %v1601_v48 = vmax.f32 %v1379_v40, %v1537_v42  ;;  %v1389_v7 = vadd.f32 %v3465_v4, %v1388_v46  ;;  %v1540_v45 = vmul.f32 0.01, %v1394_v43 }
 0x206   : > { %v2707_v51 = vpop.f32.mrf.mxu1 }
 0x207   : > { %v1539_v52 = vmul.f32 0.01, %v1389_v7  ;;  %v1404_v53 = vadd.f32 %v2707_v51, %v3465_v4  ;;  %2827 = vmatprep.mubr.f32.mxu0 %v1601_v48  ;;  %v1604_v2 = vmax.f32 %v1394_v43, %v1540_v45 }
 0x208   : > { %v1398_v31 = vpop.f32.mrf.mxu1  ;;  %2828 = vmatmul.mubr.f32.gmra.mxu0 %v1602_v50 }
 0x209   : > { %v1603_v54 = vmax.f32 %v1389_v7, %v1539_v52  ;;  %v1399_v55 = vadd.f32 %v3465_v4, %v1398_v31  ;;  %v1542_v57 = vmul.f32 0.01, %v1404_v53 }
 0x20a   : > { %v2710_v59 = vpop.f32.mrf.mxu1 }
 0x20b   : > { %v1541_v61 = vmul.f32 0.01, %v1399_v55  ;;  %v1414_v62 = vadd.f32 %v2710_v59, %v3465_v4  ;;  %2830 = vmatprep.mubr.f32.mxu0 %v1603_v54  ;;  %v1606_v56 = vmax.f32 %v1404_v53, %v1542_v57 }
 0x20c   : > { %v1408_v63 = vpop.f32.mrf.mxu1  ;;  %2831 = vmatmul.mubr.f32.gmra.mxu0 %v1604_v2 }
 0x20d   : > { %v1605_v0 = vmax.f32 %v1399_v55, %v1541_v61  ;;  %v1409_v1 = vadd.f32 %v3465_v4, %v1408_v63  ;;  %v1544_v3 = vmul.f32 0.01, %v1414_v62 }
 0x20e   : > { %v2713_v22 = vpop.f32.mrf.mxu1 }
 0x20f   : > { %v1543_v5 = vmul.f32 0.01, %v1409_v1  ;;  %v1424_v24 = vadd.f32 %v2713_v22, %v3465_v4  ;;  %2833 = vmatprep.mubr.f32.mxu0 %v1605_v0  ;;  %v1608_v10 = vmax.f32 %v1414_v62, %v1544_v3 }
 0x210   : > { %v1418_v8 = vpop.f32.mrf.mxu1  ;;  %2834 = vmatmul.mubr.f32.gmra.mxu0 %v1606_v56 }
 0x211   : > { %v1607_v9 = vmax.f32 %v1409_v1, %v1543_v5  ;;  %v1419_v12 = vadd.f32 %v3465_v4, %v1418_v8  ;;  %v1546_v11 = vmul.f32 0.01, %v1424_v24 }
 0x212   : > { %v2716_v47 = vpop.f32.mrf.mxu1 }
 0x213   : > { %v1545_v13 = vmul.f32 0.01, %v1419_v12  ;;  %v1434_v14 = vadd.f32 %v2716_v47, %v3465_v4  ;;  %2836 = vmatprep.mubr.f32.mxu0 %v1607_v9  ;;  %v1610_v17 = vmax.f32 %v1424_v24, %v1546_v11  ;;  %v3537_v9 = vld [vmem:[%s3737_s6] ss:$0 sm:$0xff] }
 0x214   : > { %v1428_v15 = vpop.f32.mrf.mxu1  ;;  %2837 = vmatmul.mubr.f32.gmra.mxu0 %v1608_v10 }
 0x215   : > { %v1609_v35 = vmax.f32 %v1419_v12, %v1545_v13  ;;  %v1429_v16 = vadd.f32 %v3465_v4, %v1428_v15  ;;  %v1548_v6 = vmul.f32 0.01, %v1434_v14 }
 0x216   : > { %v2719_v19 = vpop.f32.mrf.mxu1 }
 0x217   : > { %v1547_v20 = vmul.f32 0.01, %v1429_v16  ;;  %v1444_v21 = vadd.f32 %v2719_v19, %v3465_v4  ;;  %2839 = vmatprep.mubr.f32.mxu0 %v1609_v35  ;;  %v1612_v28 = vmax.f32 %v1434_v14, %v1548_v6 }
 0x218   : > { %v1438_v23 = vpop.f32.mrf.mxu1  ;;  %2840 = vmatmul.mubr.f32.gmra.mxu0 %v1610_v17 }
 0x219   : > { %v1611_v58 = vmax.f32 %v1429_v16, %v1547_v20  ;;  %v1439_v25 = vadd.f32 %v3465_v4, %v1438_v23  ;;  %v1550_v26 = vmul.f32 0.01, %v1444_v21 }
 0x21a   : > { %v2722_v44 = vpop.f32.mrf.mxu1 }
 0x21b   : > { %v1549_v27 = vmul.f32 0.01, %v1439_v25  ;;  %v1454_v29 = vadd.f32 %v2722_v44, %v3465_v4  ;;  %2842 = vmatprep.mubr.f32.mxu0 %v1611_v58  ;;  %v1614_v36 = vmax.f32 %v1444_v21, %v1550_v26 }
 0x21c   : > { %v1448_v32 = vpop.f32.mrf.mxu1  ;;  %2843 = vmatmul.mubr.f32.gmra.mxu0 %v1612_v28 }
 0x21d   : > { %v1613_v30 = vmax.f32 %v1439_v25, %v1549_v27  ;;  %v1449_v33 = vadd.f32 %v3465_v4, %v1448_v32  ;;  %v1552_v37 = vmul.f32 0.01, %v1454_v29 }
 0x21e   : > { %v2725_v60 = vpop.f32.mrf.mxu1 }
 0x21f   : > { %v1551_v38 = vmul.f32 0.01, %v1449_v33  ;;  %v1464_v39 = vadd.f32 %v2725_v60, %v3465_v4  ;;  %2845 = vmatprep.mubr.f32.mxu0 %v1613_v30  ;;  %v1616_v49 = vmax.f32 %v1454_v29, %v1552_v37 }
 0x220   : > { %v1458_v34 = vpop.f32.mrf.mxu1  ;;  %2846 = vmatmul.mubr.f32.gmra.mxu0 %v1614_v36 }
 0x221   : > { %v1615_v40 = vmax.f32 %v1449_v33, %v1551_v38  ;;  %v1459_v41 = vadd.f32 %v3465_v4, %v1458_v34  ;;  %v1554_v18 = vmul.f32 0.01, %v1464_v39 }
 0x222   : > { %v2728_v42 = vpop.f32.mrf.mxu1 }
 0x223   : > { %v1553_v43 = vmul.f32 0.01, %v1459_v41  ;;  %v1474_v46 = vadd.f32 %v2728_v42, %v3465_v4  ;;  %2848 = vmatprep.mubr.f32.mxu0 %v1615_v40  ;;  %v1618_v45 = vmax.f32 %v1464_v39, %v1554_v18 }
 0x224   : > { %v1468_v48 = vpop.f32.mrf.mxu1  ;;  %2849 = vmatmul.mubr.f32.gmra.mxu0 %v1616_v49 }
 0x225   : > { %v1617_v7 = vmax.f32 %v1459_v41, %v1553_v43  ;;  %v1469_v50 = vadd.f32 %v3465_v4, %v1468_v48  ;;  %v1556_v51 = vmul.f32 0.01, %v1474_v46 }
 0x226   : > { %v2731_v52 = vpop.f32.mrf.mxu1 }
 0x227   : > { %v1555_v53 = vmul.f32 0.01, %v1469_v50  ;;  %v1484_v31 = vadd.f32 %v2731_v52, %v3465_v4  ;;  %2851 = vmatprep.mubr.f32.mxu0 %v1617_v7  ;;  %v1620_v57 = vmax.f32 %v1474_v46, %v1556_v51 }
 0x228   : > { %v1478_v54 = vpop.f32.mrf.mxu1  ;;  %2852 = vmatmul.mubr.f32.gmra.mxu0 %v1618_v45 }
 0x229   : > { %v1619_v55 = vmax.f32 %v1469_v50, %v1555_v53  ;;  %v1479_v2 = vadd.f32 %v3465_v4, %v1478_v54  ;;  %v1558_v59 = vmul.f32 0.01, %v1484_v31 }
 0x22a   : > { %v2734_v61 = vpop.f32.mrf.mxu1 }
 0x22b   : > { %v1557_v62 = vmul.f32 0.01, %v1479_v2  ;;  %v1494_v63 = vadd.f32 %v2734_v61, %v3465_v4  ;;  %2854 = vmatprep.mubr.f32.mxu0 %v1619_v55  ;;  %v1622_v3 = vmax.f32 %v1484_v31, %v1558_v59 }
 0x22c   : > { %v1488_v0 = vpop.f32.mrf.mxu1  ;;  %2855 = vmatmul.mubr.f32.gmra.mxu0 %v1620_v57 }
 0x22d   : > { %v1621_v1 = vmax.f32 %v1479_v2, %v1557_v62  ;;  %v1489_v56 = vadd.f32 %v3465_v4, %v1488_v0  ;;  %v1560_v22 = vmul.f32 0.01, %v1494_v63 }
 0x22f   : > { %v1559_v5 = vmul.f32 0.01, %v1489_v56  ;;  %2857 = vmatprep.mubr.f32.mxu0 %v1621_v1  ;;  %v1624_v8 = vmax.f32 %v1494_v63, %v1560_v22 }
 0x230   : > { %2858 = vmatmul.mubr.f32.gmra.mxu0 %v1622_v3 }
 0x231   : > { %v1623_v24 = vmax.f32 %v1489_v56, %v1559_v5 }
 0x233   : > { %2860 = vmatprep.mubr.f32.mxu0 %v1623_v24 }
 0x234   : > { %2861 = vmatmul.mubr.f32.gmra.mxu0 %v1624_v8 }
 0x278   : > { %v2769_v12 = vpop.f32.mrf.mxu0 }
 0x279   : > { %v1720_v4 = vadd.f32 %v2769_v12, %v3537_v9 }
 0x27a   : > { %v1714_v10 = vpop.f32.mrf.mxu0 }
 0x27b   : > { %2034 = vst [vmem:[%s3540_s19 + $0x8] sm:$0xff] %v1720_v4  ;;  %v1715_v11 = vadd.f32 %v3537_v9, %v1714_v10 }
 0x27c   : > { %v2772_v47 = vpop.f32.mrf.mxu0 }
 0x27d   : > { %2033 = vst [vmem:[%s3540_s19] sm:$0xff] %v1715_v11  ;;  %v1730_v13 = vadd.f32 %v2772_v47, %v3537_v9 }
 0x27e   : > { %v1724_v14 = vpop.f32.mrf.mxu0 }
 0x27f   : > { %2036 = vst [vmem:[%s3540_s19 + $0x18] sm:$0xff] %v1730_v13  ;;  %v1725_v15 = vadd.f32 %v3537_v9, %v1724_v14 }
 0x280   : > { %v2775_v35 = vpop.f32.mrf.mxu0 }
 0x281   : > { %2035 = vst [vmem:[%s3540_s19 + $0x10] sm:$0xff] %v1725_v15  ;;  %v1740_v16 = vadd.f32 %v2775_v35, %v3537_v9 }
 0x282   : > { %v1734_v17 = vpop.f32.mrf.mxu0 }
 0x283   : > { %2038 = vst [vmem:[%s3540_s19 + $0x28] sm:$0xff] %v1740_v16  ;;  %v1735_v6 = vadd.f32 %v3537_v9, %v1734_v17 }
 0x284   : > { %v2778_v19 = vpop.f32.mrf.mxu0 }
 0x285   : > { %2037 = vst [vmem:[%s3540_s19 + $0x20] sm:$0xff] %v1735_v6  ;;  %v1750_v20 = vadd.f32 %v2778_v19, %v3537_v9 }
 0x286   : > { %v1744_v21 = vpop.f32.mrf.mxu0 }
 0x287   : > { %2040 = vst [vmem:[%s3540_s19 + $0x38] sm:$0xff] %v1750_v20  ;;  %v1745_v23 = vadd.f32 %v3537_v9, %v1744_v21 }
 0x288   : > { %v2781_v58 = vpop.f32.mrf.mxu0 }
 0x289   : > { %2039 = vst [vmem:[%s3540_s19 + $0x30] sm:$0xff] %v1745_v23  ;;  %v1760_v25 = vadd.f32 %v2781_v58, %v3537_v9 }
 0x28a   : > { %v1754_v28 = vpop.f32.mrf.mxu0 }
 0x28b   : > { %2042 = vst [vmem:[%s3540_s19 + $0x48] sm:$0xff] %v1760_v25  ;;  %v1755_v26 = vadd.f32 %v3537_v9, %v1754_v28 }
 0x28c   : > { %v2784_v44 = vpop.f32.mrf.mxu0 }
 0x28d   : > { %2041 = vst [vmem:[%s3540_s19 + $0x40] sm:$0xff] %v1755_v26  ;;  %v1770_v27 = vadd.f32 %v2784_v44, %v3537_v9 }
 0x28e   : > { %v1764_v29 = vpop.f32.mrf.mxu0 }
 0x28f   : > { %2044 = vst [vmem:[%s3540_s19 + $0x58] sm:$0xff] %v1770_v27  ;;  %v1765_v32 = vadd.f32 %v3537_v9, %v1764_v29 }
 0x290   : > { %v2787_v30 = vpop.f32.mrf.mxu0 }
 0x291   : > { %2043 = vst [vmem:[%s3540_s19 + $0x50] sm:$0xff] %v1765_v32  ;;  %v1780_v33 = vadd.f32 %v2787_v30, %v3537_v9 }
 0x292   : > { %v1774_v36 = vpop.f32.mrf.mxu0 }
 0x293   : > { %2046 = vst [vmem:[%s3540_s19 + $0x68] sm:$0xff] %v1780_v33  ;;  %v1775_v37 = vadd.f32 %v3537_v9, %v1774_v36 }
 0x294   : > { %v2790_v60 = vpop.f32.mrf.mxu0 }
 0x295   : > { %2045 = vst [vmem:[%s3540_s19 + $0x60] sm:$0xff] %v1775_v37  ;;  %v1790_v38 = vadd.f32 %v2790_v60, %v3537_v9 }
 0x296   : > { %v1784_v39 = vpop.f32.mrf.mxu0 }
 0x297   : > { %2048 = vst [vmem:[%s3540_s19 + $0x78] sm:$0xff] %v1790_v38  ;;  %v1785_v34 = vadd.f32 %v3537_v9, %v1784_v39 }
 0x298   : > { %v2793_v40 = vpop.f32.mrf.mxu0 }
 0x299   : > { %2047 = vst [vmem:[%s3540_s19 + $0x70] sm:$0xff] %v1785_v34  ;;  %v1800_v41 = vadd.f32 %v2793_v40, %v3537_v9 }
 0x29a   : > { %v1794_v49 = vpop.f32.mrf.mxu0 }
 0x29b   : > { %2050 = vst [vmem:[%s3540_s19 + $0x88] sm:$0xff] %v1800_v41  ;;  %v1795_v18 = vadd.f32 %v3537_v9, %v1794_v49 }
 0x29c   : > { %v2796_v42 = vpop.f32.mrf.mxu0 }
 0x29d   : > { %2049 = vst [vmem:[%s3540_s19 + $0x80] sm:$0xff] %v1795_v18  ;;  %v1810_v43 = vadd.f32 %v2796_v42, %v3537_v9 }
 0x29e   : > { %v1804_v46 = vpop.f32.mrf.mxu0 }
 0x29f   : > { %2052 = vst [vmem:[%s3540_s19 + $0x98] sm:$0xff] %v1810_v43  ;;  %v1805_v48 = vadd.f32 %v3537_v9, %v1804_v46 }
 0x2a0   : > { %v2799_v7 = vpop.f32.mrf.mxu0 }
 0x2a1   : > { %2051 = vst [vmem:[%s3540_s19 + $0x90] sm:$0xff] %v1805_v48  ;;  %v1820_v50 = vadd.f32 %v2799_v7, %v3537_v9 }
 0x2a2   : > { %v1814_v45 = vpop.f32.mrf.mxu0 }
 0x2a3   : > { %2054 = vst [vmem:[%s3540_s19 + $0xa8] sm:$0xff] %v1820_v50  ;;  %v1815_v51 = vadd.f32 %v3537_v9, %v1814_v45 }
 0x2a4   : > { %v2802_v52 = vpop.f32.mrf.mxu0 }
 0x2a5   : > { %2053 = vst [vmem:[%s3540_s19 + $0xa0] sm:$0xff] %v1815_v51  ;;  %v1830_v53 = vadd.f32 %v2802_v52, %v3537_v9 }
 0x2a6   : > { %v1824_v31 = vpop.f32.mrf.mxu0 }
 0x2a7   : > { %2056 = vst [vmem:[%s3540_s19 + $0xb8] sm:$0xff] %v1830_v53  ;;  %v1825_v54 = vadd.f32 %v3537_v9, %v1824_v31 }
 0x2a8   : > { %v2805_v55 = vpop.f32.mrf.mxu0 }
 0x2a9   : > { %2055 = vst [vmem:[%s3540_s19 + $0xb0] sm:$0xff] %v1825_v54  ;;  %v1840_v2 = vadd.f32 %v2805_v55, %v3537_v9 }
 0x2aa   : > { %v1834_v57 = vpop.f32.mrf.mxu0 }
 0x2ab   : > { %2058 = vst [vmem:[%s3540_s19 + $0xc8] sm:$0xff] %v1840_v2  ;;  %v1835_v59 = vadd.f32 %v3537_v9, %v1834_v57 }
 0x2ac   : > { %v2808_v61 = vpop.f32.mrf.mxu0 }
 0x2ad   : > { %2057 = vst [vmem:[%s3540_s19 + $0xc0] sm:$0xff] %v1835_v59  ;;  %v1850_v62 = vadd.f32 %v2808_v61, %v3537_v9 }
 0x2ae   : > { %v1844_v63 = vpop.f32.mrf.mxu0 }
 0x2af   : > { %2060 = vst [vmem:[%s3540_s19 + $0xd8] sm:$0xff] %v1850_v62  ;;  %v1845_v0 = vadd.f32 %v3537_v9, %v1844_v63 }
 0x2b0   : > { %v2811_v1 = vpop.f32.mrf.mxu0 }
 0x2b1   : > { %2059 = vst [vmem:[%s3540_s19 + $0xd0] sm:$0xff] %v1845_v0  ;;  %v1860_v56 = vadd.f32 %v2811_v1, %v3537_v9 }
 0x2b2   : > { %v1854_v3 = vpop.f32.mrf.mxu0 }
 0x2b3   : > { %2062 = vst [vmem:[%s3540_s19 + $0xe8] sm:$0xff] %v1860_v56  ;;  %v1855_v22 = vadd.f32 %v3537_v9, %v1854_v3 }
 0x2b4   : > { %v2814_v5 = vpop.f32.mrf.mxu0 }
 0x2b5   : > { %2061 = vst [vmem:[%s3540_s19 + $0xe0] sm:$0xff] %v1855_v22  ;;  %v1870_v24 = vadd.f32 %v2814_v5, %v3537_v9 }
 0x2b6   : > { %v1864_v8 = vpop.f32.mrf.mxu0 }
 0x2b7   : > { %2064 = vst [vmem:[%s3540_s19 + $0xf8] sm:$0xff] %v1870_v24  ;;  %v1865_v12 = vadd.f32 %v3537_v9, %v1864_v8 }
 0x2b8   : > { %v2817_v4 = vpop.f32.mrf.mxu0 }
 0x2b9   : > { %2063 = vst [vmem:[%s3540_s19 + $0xf0] sm:$0xff] %v1865_v12  ;;  %v1880_v10 = vadd.f32 %v2817_v4, %v3537_v9 }
 0x2ba   : > { %v1874_v11 = vpop.f32.mrf.mxu0 }
 0x2bb   : > { %2066 = vst [vmem:[%s3540_s19 + $0x108] sm:$0xff] %v1880_v10  ;;  %v1875_v47 = vadd.f32 %v3537_v9, %v1874_v11 }
 0x2bc   : > { %v2820_v13 = vpop.f32.mrf.mxu0 }
 0x2bd   : > { %2065 = vst [vmem:[%s3540_s19 + $0x100] sm:$0xff] %v1875_v47  ;;  %v1890_v14 = vadd.f32 %v2820_v13, %v3537_v9 }
 0x2be   : > { %v1884_v15 = vpop.f32.mrf.mxu0 }
 0x2bf   : > { %2068 = vst [vmem:[%s3540_s19 + $0x118] sm:$0xff] %v1890_v14  ;;  %v1885_v35 = vadd.f32 %v3537_v9, %v1884_v15 }
 0x2c0   : > { %v2823_v16 = vpop.f32.mrf.mxu0 }
 0x2c1   : > { %2067 = vst [vmem:[%s3540_s19 + $0x110] sm:$0xff] %v1885_v35  ;;  %v1900_v17 = vadd.f32 %v2823_v16, %v3537_v9 }
 0x2c2   : > { %v1894_v6 = vpop.f32.mrf.mxu0 }
 0x2c3   : > { %2070 = vst [vmem:[%s3540_s19 + $0x128] sm:$0xff] %v1900_v17  ;;  %v1895_v19 = vadd.f32 %v3537_v9, %v1894_v6 }
 0x2c4   : > { %v2826_v20 = vpop.f32.mrf.mxu0 }
 0x2c5   : > { %2069 = vst [vmem:[%s3540_s19 + $0x120] sm:$0xff] %v1895_v19  ;;  %v1910_v21 = vadd.f32 %v2826_v20, %v3537_v9 }
 0x2c6   : > { %v1904_v23 = vpop.f32.mrf.mxu0 }
 0x2c7   : > { %2072 = vst [vmem:[%s3540_s19 + $0x138] sm:$0xff] %v1910_v21  ;;  %v1905_v58 = vadd.f32 %v3537_v9, %v1904_v23 }
 0x2c8   : > { %v2829_v25 = vpop.f32.mrf.mxu0 }
 0x2c9   : > { %2071 = vst [vmem:[%s3540_s19 + $0x130] sm:$0xff] %v1905_v58  ;;  %v1920_v28 = vadd.f32 %v2829_v25, %v3537_v9 }
 0x2ca   : > { %v1914_v26 = vpop.f32.mrf.mxu0 }
 0x2cb   : > { %2074 = vst [vmem:[%s3540_s19 + $0x148] sm:$0xff] %v1920_v28  ;;  %v1915_v44 = vadd.f32 %v3537_v9, %v1914_v26 }
 0x2cc   : > { %v2832_v27 = vpop.f32.mrf.mxu0 }
 0x2cd   : > { %2073 = vst [vmem:[%s3540_s19 + $0x140] sm:$0xff] %v1915_v44  ;;  %v1930_v29 = vadd.f32 %v2832_v27, %v3537_v9 }
 0x2ce   : > { %v1924_v32 = vpop.f32.mrf.mxu0 }
 0x2cf   : > { %2076 = vst [vmem:[%s3540_s19 + $0x158] sm:$0xff] %v1930_v29  ;;  %v1925_v30 = vadd.f32 %v3537_v9, %v1924_v32 }
 0x2d0   : > { %v2835_v33 = vpop.f32.mrf.mxu0 }
 0x2d1   : > { %2075 = vst [vmem:[%s3540_s19 + $0x150] sm:$0xff] %v1925_v30  ;;  %v1940_v36 = vadd.f32 %v2835_v33, %v3537_v9 }
 0x2d2   : > { %v1934_v37 = vpop.f32.mrf.mxu0 }
 0x2d3   : > { %2078 = vst [vmem:[%s3540_s19 + $0x168] sm:$0xff] %v1940_v36  ;;  %v1935_v60 = vadd.f32 %v3537_v9, %v1934_v37 }
 0x2d4   : > { %v2838_v38 = vpop.f32.mrf.mxu0 }
 0x2d5   : > { %2077 = vst [vmem:[%s3540_s19 + $0x160] sm:$0xff] %v1935_v60  ;;  %v1950_v39 = vadd.f32 %v2838_v38, %v3537_v9 }
 0x2d6   : > { %v1944_v34 = vpop.f32.mrf.mxu0 }
 0x2d7   : > { %2080 = vst [vmem:[%s3540_s19 + $0x178] sm:$0xff] %v1950_v39  ;;  %v1945_v40 = vadd.f32 %v3537_v9, %v1944_v34 }
 0x2d8   : > { %v2841_v41 = vpop.f32.mrf.mxu0 }
 0x2d9   : > { %2079 = vst [vmem:[%s3540_s19 + $0x170] sm:$0xff] %v1945_v40  ;;  %v1960_v49 = vadd.f32 %v2841_v41, %v3537_v9 }
 0x2da   : > { %v1954_v18 = vpop.f32.mrf.mxu0 }
 0x2db   : > { %2082 = vst [vmem:[%s3540_s19 + $0x188] sm:$0xff] %v1960_v49  ;;  %v1955_v42 = vadd.f32 %v3537_v9, %v1954_v18 }
 0x2dc   : > { %v2844_v43 = vpop.f32.mrf.mxu0 }
 0x2dd   : > { %2081 = vst [vmem:[%s3540_s19 + $0x180] sm:$0xff] %v1955_v42  ;;  %v1970_v46 = vadd.f32 %v2844_v43, %v3537_v9 }
 0x2de   : > { %v1964_v48 = vpop.f32.mrf.mxu0 }
 0x2df   : > { %2084 = vst [vmem:[%s3540_s19 + $0x198] sm:$0xff] %v1970_v46  ;;  %v1965_v7 = vadd.f32 %v3537_v9, %v1964_v48 }
 0x2e0   : > { %v2847_v50 = vpop.f32.mrf.mxu0 }
 0x2e1   : > { %2083 = vst [vmem:[%s3540_s19 + $0x190] sm:$0xff] %v1965_v7  ;;  %v1980_v45 = vadd.f32 %v2847_v50, %v3537_v9 }
 0x2e2   : > { %v1974_v51 = vpop.f32.mrf.mxu0 }
 0x2e3   : > { %2086 = vst [vmem:[%s3540_s19 + $0x1a8] sm:$0xff] %v1980_v45  ;;  %v1975_v52 = vadd.f32 %v3537_v9, %v1974_v51 }
 0x2e4   : > { %v2850_v53 = vpop.f32.mrf.mxu0 }
 0x2e5   : > { %2085 = vst [vmem:[%s3540_s19 + $0x1a0] sm:$0xff] %v1975_v52  ;;  %v1990_v31 = vadd.f32 %v2850_v53, %v3537_v9 }
 0x2e6   : > { %v1984_v54 = vpop.f32.mrf.mxu0 }
 0x2e7   : > { %2088 = vst [vmem:[%s3540_s19 + $0x1b8] sm:$0xff] %v1990_v31  ;;  %v1985_v55 = vadd.f32 %v3537_v9, %v1984_v54 }
 0x2e8   : > { %v2853_v2 = vpop.f32.mrf.mxu0 }
 0x2e9   : > { %2087 = vst [vmem:[%s3540_s19 + $0x1b0] sm:$0xff] %v1985_v55  ;;  %v2000_v57 = vadd.f32 %v2853_v2, %v3537_v9 }
 0x2ea   : > { %v1994_v59 = vpop.f32.mrf.mxu0 }
 0x2eb   : > { %2090 = vst [vmem:[%s3540_s19 + $0x1c8] sm:$0xff] %v2000_v57  ;;  %v1995_v61 = vadd.f32 %v3537_v9, %v1994_v59 }
 0x2ec   : > { %v2856_v62 = vpop.f32.mrf.mxu0 }
 0x2ed   : > { %2089 = vst [vmem:[%s3540_s19 + $0x1c0] sm:$0xff] %v1995_v61  ;;  %v2010_v63 = vadd.f32 %v2856_v62, %v3537_v9 }
 0x2ee   : > { %v2004_v0 = vpop.f32.mrf.mxu0 }
 0x2ef   : > { %2092 = vst [vmem:[%s3540_s19 + $0x1d8] sm:$0xff] %v2010_v63  ;;  %v2005_v1 = vadd.f32 %v3537_v9, %v2004_v0 }
 0x2f0   : > { %v2859_v56 = vpop.f32.mrf.mxu0 }
 0x2f1   : > { %2091 = vst [vmem:[%s3540_s19 + $0x1d0] sm:$0xff] %v2005_v1  ;;  %v2020_v3 = vadd.f32 %v2859_v56, %v3537_v9 }
 0x2f2   : > { %v2014_v22 = vpop.f32.mrf.mxu0 }
 0x2f3   : > { %2094 = vst [vmem:[%s3540_s19 + $0x1e8] sm:$0xff] %v2020_v3  ;;  %v2015_v5 = vadd.f32 %v3537_v9, %v2014_v22 }
 0x2f4   : > { %v2862_v24 = vpop.f32.mrf.mxu0 }
 0x2f5   : > { %2093 = vst [vmem:[%s3540_s19 + $0x1e0] sm:$0xff] %v2015_v5  ;;  %v2030_v8 = vadd.f32 %v2862_v24, %v3537_v9  ;;  %2104 = sbr.rel (!%p3062_p5) target bundleno = 789 (0x315), region = 52 }
 0x2f6   : > { %v2024_v12 = vpop.f32.mrf.mxu0 }
 0x2f7   : > { %2096 = vst [vmem:[%s3540_s19 + $0x1f8] sm:$0xff] %v2030_v8  ;;  %v2025_v4 = vadd.f32 %v3537_v9, %v2024_v12 }
 0x2f9   : > { %2095 = vst [vmem:[%s3540_s19 + $0x1f0] sm:$0xff] %v2025_v4 }
 0x2fa   : > { %s3746_s20 = smov (!%p2107_p11, %s2106_s20), 64 }
 0x2fb   : > { %s3676_s21 = sshll.u32 %s3746_s20, 7 }
 0x2fc   : > { %s2111_s22 = ssub.s32 8192, %s3676_s21 }
 0x2fd   : > { %2112 = vsyncadd %s3671_s14, %s2111_s22  ;;  %p2256_p12 = scmp.ne.s32.totalorder %s3676_s21, 0  ;;  %s2262_s23 = sshll.u32 %s3045_s28, 13 }
 0x2fe   : > { %s3685_s8 = scalar_lea.hbm %s3738_s7, %s2262_s23  ;;  %s2117_s17 = sshll.u32 %s3540_s19, 4  ;;  %s3688_s17 = int_to_ptr.vmem [resolvable:$true] %s2117_s17 }
 0x2ff   : > { %s2919_s9 = scalar_lea.vmem %s3688_s17, %s3676_s21  ;;  %s2981_s13 = smov [#allocation2]  }
 0x300   : > { %p2920_p13 = scmp.ne.s32.totalorder %s3688_s17, %s2919_s9  ;;  %s2923_s15 = sshll.u32 %s2981_s13, 4  ;;  %s2924_s15 = int_to_ptr.vmem [resolvable:$false] %s2923_s15 }
 0x301   : > { %s2925_s28 = scalar_lea.vmem %s2924_s15, 16384  ;;  %p2926_p2 = scmp.lt.s32.totalorder %s3688_s17, %s2924_s15 }
 0x302   : > { %p2921_p0 = pnand %p2920_p13, %p2256_p12  ;;  %p2927_p3 = scmp.lt.s32.totalorder %s2925_s28, %s2919_s9 }
 0x304   : > { %p2922_p1 = pneg %p2921_p0  ;;  %p2928_p4 = por %p2927_p3, %p2926_p2 }
 0x306   : > { %p2929_p5 = pnand %p2928_p4, %p2922_p1 }
 0x308   : > { %2932 = shalt.err (!%p2929_p5)
}
 0x309   : > { %s2933_s16 = scalar_lea.hbm %s3685_s8, %s3676_s21  ;;  %s2937_s20 = scalar_lea.hbm %s3738_s7, 16000 }
 0x30a   : > { %p2934_p7 = scmp.ne.s32.totalorder %s3685_s8, %s2933_s16  ;;  %p2938_p10 = scmp.lt.s32.totalorder %s3685_s8, %s3738_s7 }
 0x30b   : > { %p2939_p11 = scmp.lt.s32.totalorder %s2937_s20, %s2933_s16 }
 0x30c   : > { %p2935_p8 = pnand %p2934_p7, %p2256_p12 }
 0x30d   : > { %p2940_p13 = por %p2939_p11, %p2938_p10 }
 0x30e   : > { %p2936_p9 = pneg %p2935_p8 }
 0x310   : > { %p2941_p0 = pnand %p2940_p13, %p2936_p9 }
 0x312   : > { %2944 = shalt.err (!%p2941_p0)
}
 0x313   : > { %s2982_s29 = smov 128   ;;  %s2983_s11 = smov 8  }
 0x314   : > { %2123 = dma.vmem_to_hbm [thread:$0]  (%p2256_p12), %s3688_s17, %s3676_s21, %s3685_s8, %s3671_s14, %s2982_s29, %s2982_s29, %s2983_s11  }
 0x315 PF: > { %p2884_p1 = scmp.ge.s32.totalorder %s2979_s27, 2  ;;  %s2132_s9 = sand.u32 1, %s2967_s24  }
 0x316   : > { %s2133_s13 = scalar_lea.sflag [#allocation3], %s2132_s9 }
 0x317   : > { %p2881_p2 = pnand %p2884_p1, %p3066_p6 }
 0x319   : > { %p2882_p3 = pneg %p2881_p2 }
 0x31b   : > { %2962 = dma.done.wait (%p2882_p3), %s2133_s13, 8192  }
 0x31c   : > { %2964 = vsyncadd (%p2882_p3), %s2133_s13, 4294959104  ;;  %p17_p4 = scmp.ge.s32.totalorder %s3049_s30, 4   ;;  %s3741_s24 = smov %s2971_s25 }
 0x31d   : > { %s3742_s25 = smov %s2975_s26  ;;  %s3743_s26 = smov %s3060_s10 }
 0x31e   : > { %s3744_s27 = smov %s3049_s30  ;;  %19 = sbr.rel (!%p17_p4) target bundleno = 3 (0x3), region = 83 }
 0x323   :  { %2138 = vsyncpa [#allocation3], 1 }
 0x324   :  { %2140 = vsyncpa [#allocation3 + $0x1], 1 }

</bundles_post_ra>
